<compile_context>
chip_gen: v6e
topology: v6e:2x2x1
jax: 0.10.0
libtpu: 0.0.40
codegen_flags: <defaults>
</compile_context>

<pallas_src>
import functools
import numpy as np

import jax
import jax.numpy as jnp
from jax.experimental import pallas as pl
from jax.experimental.pallas import tpu as pltpu

NEG_SLOPE = 0.01          # nn.LeakyReLU default
SCALE_BOUND = 0.11        # GaussianConditional(scale_bound=0.11)
LIKELIHOOD_BOUND = 1e-9   # compressai default likelihood lower bound
INV_LN2 = float(1.0 / np.log(2.0))
INV_SQRT2 = 0.7071067811865476

VMEM_LIMIT_BYTES = 32 * 1024 * 1024   # safe on v5e/v6e (128 MiB phys) and v7x (64 MiB phys)
TM_TARGET = 2048                      # lane-tile target (multiple of 128)

# Abramowitz & Stegun 7.1.26 erf coefficients
_A1, _A2, _A3, _A4, _A5 = 0.254829592, -0.284496736, 1.421413741, -1.453152027, 1.061405429
_P_AS = 0.3275911


# ----------------------------------------------------------------------------
# In-kernel math helpers (f32 VPU/EUP math)
# ----------------------------------------------------------------------------
def _leaky(x):
    return jnp.where(x >= 0, x, NEG_SLOPE * x)


def _std_cdf(x):
    # standard normal CDF via A&S 7.1.26 erf approximation (exp + EUP reciprocal only)
    z = x * INV_SQRT2
    sgn = jnp.where(z >= 0.0, 1.0, -1.0)
    az = jnp.abs(z)
    t = pl.reciprocal(1.0 + _P_AS * az, approx=True)
    poly = ((((_A5 * t + _A4) * t + _A3) * t + _A2) * t + _A1) * t
    erf = sgn * (1.0 - poly * jnp.exp(-az * az))
    return 0.5 * (1.0 + erf)


def _self_information(v, sigma):
    # -log2 of the GaussianConditional pmf of already-quantized values (means=None).
    v = jnp.abs(v.astype(jnp.float32))
    s = jnp.maximum(sigma, SCALE_BOUND)                 # LowerBound(scale_bound)
    inv_s = pl.reciprocal(s, approx=True)
    upper = _std_cdf((0.5 - v) * inv_s)
    lower = _std_cdf((-0.5 - v) * inv_s)
    lik = jnp.maximum(upper - lower, LIKELIHOOD_BOUND)  # likelihood lower bound
    return -jnp.log(lik) * INV_LN2


# ----------------------------------------------------------------------------
# Pallas kernels
# ----------------------------------------------------------------------------
def _gemm_kernel(w_ref, b_ref, x_ref, o_ref, *, post_act):
    # (N,K)bf16 x (K,TM)bf16 -> f32 accum, +bias, optional LeakyReLU
    acc = jnp.dot(w_ref[...], x_ref[...], preferred_element_type=jnp.float32)
    acc = acc + b_ref[...]
    if post_act:
        acc = _leaky(acc)
    o_ref[...] = acc.astype(o_ref.dtype)


def _gemm_si_kernel(w_ref, b_ref, x_ref, v_ref, o_ref, *, csig):
    # final masked conv of the csc chain (with trailing LeakyReLU) fused with
    # the Gaussian-conditional self-information epilogue.
    acc = jnp.dot(w_ref[...], x_ref[...], preferred_element_type=jnp.float32)
    acc = _leaky(acc + b_ref[...])
    sigma = acc[:csig, :]          # channels [0:csig) are sigma; mu is unused (means=None)
    o_ref[...] = _self_information(v_ref[...], sigma)


def _cgp_si_kernel(tap_ref, csc_ref, v_ref,
                   wplc_ref, bplc_ref, w1a_ref, w1b_ref, b1_ref,
                   w2_ref, b2_ref, w3_ref, b3_ref, w4_ref, b4_ref, o_ref):
    # Fused per-subband conditioning:
    #   plc  = ConvTranspose2d(1,8,2,2) of the parent subband  (as (8,4)x(4,TM) GEMM)
    #   h    = cat(plc, csc) -> LReLU -> 1x1 chain (16->16->8->4->2)
    #   out  = -log2 pmf(v | sigma = h[0])
    bf16 = jnp.bfloat16
    f32 = jnp.float32
    plc = jnp.dot(wplc_ref[...], tap_ref[...], preferred_element_type=f32) + bplc_ref[...]
    csc = csc_ref[...].astype(f32)
    h = (jnp.dot(w1a_ref[...], _leaky(plc).astype(bf16), preferred_element_type=f32)
         + jnp.dot(w1b_ref[...], _leaky(csc).astype(bf16), preferred_element_type=f32)
         + b1_ref[...])
    h = jnp.dot(w2_ref[...], _leaky(h).astype(bf16), preferred_element_type=f32) + b2_ref[...]
    h = jnp.dot(w3_ref[...], _leaky(h).astype(bf16), preferred_element_type=f32) + b3_ref[...]
    h = jnp.dot(w4_ref[...], _leaky(h).astype(bf16), preferred_element_type=f32) + b4_ref[...]
    sigma = h[0:1, :]
    o_ref[...] = _self_information(v_ref[...], sigma)


# ----------------------------------------------------------------------------
# pallas_call wrappers (grid = (G subbands, M tiles), both parallel)
# ----------------------------------------------------------------------------
def _round_up(x, m):
    return ((x + m - 1) // m) * m


def _tile_m(m):
    tm = int(min(TM_TARGET, _round_up(m, 128)))
    return tm, _round_up(m, tm)


def _spec_bcast(arr):
    _, r, c = arr.shape
    return pl.BlockSpec((None, r, c), lambda g, i: (g, 0, 0))


def _spec_tiled(rows, tm):
    return pl.BlockSpec((None, rows, tm), lambda g, i: (g, 0, i))


def _compiler_params():
    return pltpu.CompilerParams(
        dimension_semantics=("parallel", "parallel"),
        vmem_limit_bytes=VMEM_LIMIT_BYTES)


def _pad_m(x, mp):
    m = x.shape[-1]
    if m == mp:
        return x
    return jnp.pad(x, ((0, 0), (0, 0), (0, mp - m)))


def gemm_cm(w, b, x, *, post_act, out_dtype=jnp.bfloat16):
    """w: (G,N,K) bf16, b: (G,N,1) f32, x: (G,K,M) bf16 -> (G,N,M)."""
    g, n, k = w.shape
    m = x.shape[-1]
    tm, mp = _tile_m(m)
    out = pl.pallas_call(
        functools.partial(_gemm_kernel, post_act=post_act),
        out_shape=jax.ShapeDtypeStruct((g, n, mp), out_dtype),
        grid=(g, mp // tm),
        in_specs=[_spec_bcast(w), _spec_bcast(b), _spec_tiled(k, tm)],
        out_specs=_spec_tiled(n, tm),
        compiler_params=_compiler_params(),
    )(w, b, _pad_m(x, mp))
    return out[:, :, :m]


def gemm_selfinfo_cm(w, b, x, v, *, csig):
    """Final masked conv + LeakyReLU + self-information. v: (G,csig,M) f32."""
    g, n, k = w.shape
    m = x.shape[-1]
    tm, mp = _tile_m(m)
    out = pl.pallas_call(
        functools.partial(_gemm_si_kernel, csig=csig),
        out_shape=jax.ShapeDtypeStruct((g, csig, mp), jnp.float32),
        grid=(g, mp // tm),
        in_specs=[_spec_bcast(w), _spec_bcast(b),
                  _spec_tiled(k, tm), _spec_tiled(csig, tm)],
        out_specs=_spec_tiled(csig, tm),
        compiler_params=_compiler_params(),
    )(w, b, _pad_m(x, mp), _pad_m(v, mp))
    return out[:, :, :m]


def cgp_selfinfo_cm(tap, csc, v, wplc, bplc, w1a, w1b, b1, w2, b2, w3, b3, w4, b4):
    """Fused plc + cgp chain + self-information, batched over G=3 subbands."""
    g, _, m = tap.shape
    tm, mp = _tile_m(m)
    weights = (wplc, bplc, w1a, w1b, b1, w2, b2, w3, b3, w4, b4)
    out = pl.pallas_call(
        _cgp_si_kernel,
        out_shape=jax.ShapeDtypeStruct((g, 1, mp), jnp.float32),
        grid=(g, mp // tm),
        in_specs=[_spec_tiled(tap.shape[1], tm), _spec_tiled(csc.shape[1], tm),
                  _spec_tiled(1, tm)] + [_spec_bcast(a) for a in weights],
        out_specs=_spec_tiled(1, tm),
        compiler_params=_compiler_params(),
    )(_pad_m(tap, mp), _pad_m(csc, mp), _pad_m(v, mp), *weights)
    return out[:, :, :m]


# ----------------------------------------------------------------------------
# Host-side glue (channels-first (C, B, H, W) layout end-to-end)
# ----------------------------------------------------------------------------
def _im2col_cm(x_cb, k, pad):
    """x_cb: (C,B,H,W) -> (C*k*k, B*H*W), K ordered as (cin, dy, dx)."""
    c, b, h, w = x_cb.shape
    xp = jnp.pad(x_cb, ((0, 0), (0, 0), (pad, pad), (pad, pad)))
    taps = [xp[:, :, dy:dy + h, dx:dx + w] for dy in range(k) for dx in range(k)]
    cols = jnp.stack(taps, axis=1)                    # (C, k*k, B, H, W)
    return cols.reshape(c * k * k, b * h * w)


def _tap_separated_upsample(parent):
    """parent: (B,h,w) -> (4, B*2h*2w): row t=(dy*2+dx) holds parent at child (2y+dy,2x+dx)."""
    bb, h, w = parent.shape
    oh = jnp.eye(4, dtype=parent.dtype).reshape(2, 2, 4)      # [dy, dx, t]
    oh_t = jnp.transpose(oh, (2, 0, 1))                        # [t, dy, dx]
    arr = parent[None, :, :, None, :, None] * oh_t[:, None, None, :, None, :]
    return arr.reshape(4, bb * (2 * h) * (2 * w))              # (4, M_child)


def masked_chain_selfinfo(layers, x_cb, v_cm, *, csig, k=3):
    """5-layer masked-conv chain (each +LeakyReLU); last layer fused with self-info."""
    _, b, h, w = x_cb.shape
    feat = x_cb.astype(jnp.bfloat16)
    for p in layers[:-1]:
        cols = _im2col_cm(feat, k, k // 2)[None]               # (1, K, M) bf16
        out = gemm_cm(p['wm'][None], p['b'][None], cols, post_act=True)
        feat = out[0].reshape(-1, b, h, w)
    p = layers[-1]
    cols = _im2col_cm(feat, k, k // 2)[None]
    si = gemm_selfinfo_cm(p['wm'][None], p['b'][None], cols, v_cm[None], csig=csig)
    return si[0].reshape(csig, b, h, w)


# ----------------------------------------------------------------------------
# Parameter initialization (deterministic, synthetic; pre-masked / pre-reshaped)
# ----------------------------------------------------------------------------
def _spatial_mask(k, mask_type):
    m = np.ones((k, k), np.float32)
    m[k // 2, k // 2 + (1 if mask_type == 'B' else 0):] = 0.0
    m[k // 2 + 1:, :] = 0.0
    return m


def _masked_conv(key, cout, cin, k, mask_type):
    kw_, kb = jax.random.split(key)
    w = jax.random.normal(kw_, (cout, cin, k, k), jnp.float32) / np.sqrt(cin * k * k)
    b = 0.01 * jax.random.normal(kb, (cout,), jnp.float32)
    wm = w * jnp.asarray(_spatial_mask(k, mask_type))[None, None]
    return {'wm': wm.reshape(cout, cin * k * k).astype(jnp.bfloat16),
            'b': b.reshape(cout, 1)}


def _conv1x1(key, cout, cin):
    kw_, kb = jax.random.split(key)
    w = jax.random.normal(kw_, (cout, cin), jnp.float32) / np.sqrt(cin)
    b = 0.01 * jax.random.normal(kb, (cout,), jnp.float32)
    return w.astype(jnp.bfloat16), b.reshape(cout, 1)


def _plc(key, cout):
    # TODO(synk): zeroTreeWaveletPreviousLayer modeled as ConvTranspose2d(1, cout, 2, stride=2)
    kw_, kb = jax.random.split(key)
    w = jax.random.normal(kw_, (cout, 4), jnp.float32) / 2.0   # [oc, t=dy*2+dx]
    b = 0.01 * jax.random.normal(kb, (cout,), jnp.float32)
    return {'wm': w.astype(jnp.bfloat16), 'b': b.reshape(cout, 1)}


def init_params(key, dwtlevels=2, clrch=1, multiplier=8):
    L = dwtlevels
    so, se = 3 * clrch, clrch
    keys = iter(jax.random.split(key, 32 + 32 * L))
    params = {'plc': [], 'csc': [], 'cgp': []}
    for _i in range(L - 1):
        for _j in range(3):
            params['plc'].append(_plc(next(keys), multiplier))
            params['csc'].append(_masked_conv(next(keys), multiplier, 1, 5, 'A'))
            inn = 2 * multiplier
            w1, b1 = _conv1x1(next(keys), inn, inn)
            w2, b2 = _conv1x1(next(keys), inn // 2, inn)
            w3, b3 = _conv1x1(next(keys), inn // 4, inn // 2)
            w4, b4 = _conv1x1(next(keys), 2, inn // 4)
            params['cgp'].append({
                'w1a': w1[:, :multiplier], 'w1b': w1[:, multiplier:], 'b1': b1,
                'w2': w2, 'b2': b2, 'w3': w3, 'b3': b3, 'w4': w4, 'b4': b4})
    oc = 3 * multiplier
    params['csc_last'] = [
        _masked_conv(next(keys), oc, 3, 3, 'A'),
        _masked_conv(next(keys), oc // 2, oc, 3, 'B'),
        _masked_conv(next(keys), oc // 4, oc // 2, 3, 'B'),
        _masked_conv(next(keys), oc // 4, oc // 4, 3, 'B'),
        _masked_conv(next(keys), so * 2, oc // 4, 3, 'B'),
    ]
    oc = multiplier
    params['csc_xe'] = [
        _masked_conv(next(keys), oc, 1, 3, 'A'),
        _masked_conv(next(keys), oc // 2, oc, 3, 'B'),
        _masked_conv(next(keys), oc // 4, oc // 2, 3, 'B'),
        _masked_conv(next(keys), oc // 4, oc // 4, 3, 'B'),
        _masked_conv(next(keys), se * 2, oc // 4, 3, 'B'),
    ]
    return params


# ----------------------------------------------------------------------------
# Module forward (eval mode)
# ----------------------------------------------------------------------------
def forward(params, out_xe, out_xo_list, dwtlevels=2):
    L = dwtlevels
    bf16 = jnp.bfloat16

    # ---- xe branch -----------------------------------------------------------
    out_xe_qnt = jnp.round(out_xe)                              # quantize('dequantize')
    _, ce, _, _ = out_xe_qnt.shape
    xe_cb = jnp.transpose(out_xe_qnt, (1, 0, 2, 3))             # (C, B, H, W)
    si_xe = masked_chain_selfinfo(params['csc_xe'], xe_cb,
                                  xe_cb.reshape(ce, -1), csig=ce)
    si_xe = jnp.transpose(si_xe, (1, 0, 2, 3))

    # ---- coarsest xo level ---------------------------------------------------
    xo_qnt = jnp.round(out_xo_list[L - 1])
    _, co, _, _ = xo_qnt.shape
    xo_cb = jnp.transpose(xo_qnt, (1, 0, 2, 3))
    si_c = masked_chain_selfinfo(params['csc_last'], xo_cb,
                                 xo_cb.reshape(co, -1), csig=co)
    si_list = [jnp.transpose(si_c, (1, 0, 2, 3))]
    xo_qnt_list = [xo_qnt]
    con = xo_qnt                                                # (B, 3, h, w)

    # ---- finer xo levels, subband-separate ZeroTree conditioning -------------
    for i in range(L - 1):
        level = L - i - 2
        x_level = out_xo_list[level]                            # (B, 3, H, W)
        bb, _, hh, ww = x_level.shape
        m = bb * hh * ww
        idxs = [(L - i - 1) * 3 - j - 1 for j in range(3)]

        xq = jnp.round(x_level)                                 # (B, 3, H, W)
        xq_cb = jnp.transpose(xq, (1, 0, 2, 3))                 # (3, B, H, W)
        v = xq_cb.reshape(3, 1, m)                              # (G, 1, M) f32

        cols = jnp.stack([_im2col_cm(xq_cb[j:j + 1].astype(bf16), 5, 2) for j in range(3)])
        taps = jnp.stack([_tap_separated_upsample(con[:, j]).astype(bf16) for j in range(3)])

        w_csc = jnp.stack([params['csc'][ix]['wm'] for ix in idxs])
        b_csc = jnp.stack([params['csc'][ix]['b'] for ix in idxs])
        csc_feat = gemm_cm(w_csc, b_csc, cols, post_act=False)  # (3, 8, M) bf16

        def stk(name, plist):
            return jnp.stack([plist[ix][name] for ix in idxs])

        si3 = cgp_selfinfo_cm(
            taps, csc_feat, v,
            stk('wm', params['plc']), stk('b', params['plc']),
            stk('w1a', params['cgp']), stk('w1b', params['cgp']), stk('b1', params['cgp']),
            stk('w2', params['cgp']), stk('b2', params['cgp']),
            stk('w3', params['cgp']), stk('b3', params['cgp']),
            stk('w4', params['cgp']), stk('b4', params['cgp']))
        si_level = jnp.transpose(si3.reshape(3, bb, hh, ww), (1, 0, 2, 3))
        si_list.append(si_level)

        con = xq
        xo_qnt_list.append(xq)

    xo_qnt_list = xo_qnt_list[::-1]
    si_list = si_list[::-1]
    return si_xe, si_list, out_xe_qnt, xo_qnt_list


# ----------------------------------------------------------------------------
if __name__ == "__main__":
    dwtlevels, clrch = 2, 1
    key = jax.random.PRNGKey(0)
    kparams, kxe, *kxo = jax.random.split(key, 2 + dwtlevels)

    params = init_params(kparams, dwtlevels=dwtlevels, clrch=clrch, multiplier=8)

    B, Hc, Wc = 2, 8, 8                                   # coarsest-level spatial size
    out_xe = 4.0 * jax.random.normal(kxe, (B, clrch, Hc, Wc), jnp.float32)
    out_xo_list = []
    for lvl in range(dwtlevels):
        sc = 2 ** (dwtlevels - 1 - lvl)                   # finest first, coarsest last
        out_xo_list.append(
            3.0 * jax.random.normal(kxo[lvl], (B, 3 * clrch, Hc * sc, Wc * sc), jnp.float32)
        )

    fwd = jax.jit(functools.partial(forward, dwtlevels=dwtlevels))
    results = fwd(params, out_xe, out_xo_list)
    jax.block_until_ready(results)

    si_xe, si_list, xe_qnt, xo_qnt_list = results
    assert si_xe.shape == (B, clrch, Hc, Wc)
    assert si_list[0].shape == (B, 3 * clrch, Hc * 2, Wc * 2)
    assert si_list[1].shape == (B, 3 * clrch, Hc, Wc)
    assert xe_qnt.shape == out_xe.shape
    assert xo_qnt_list[0].shape == out_xo_list[0].shape
    assert xo_qnt_list[1].shape == out_xo_list[1].shape
    assert bool(jnp.all(jnp.isfinite(si_xe)))
    assert all(bool(jnp.all(jnp.isfinite(s))) for s in si_list)
    print("KERNEL_OK")
</pallas_src>

<mosaic_0001>
module attributes {stable_mosaic.version = 11 : i64} {
  func.func @_gemm_kernel(%arg0: i32, %arg1: i32, %arg2: memref<1x24x27xbf16, #tpu.memory_space<vmem>>, %arg3: memref<1x24x1xf32, #tpu.memory_space<vmem>>, %arg4: memref<1x27x128xbf16, #tpu.memory_space<vmem>>, %arg5: memref<1x24x128xbf16, #tpu.memory_space<vmem>>) attributes {dimension_semantics = [#tpu.dimension_semantics<parallel>, #tpu.dimension_semantics<parallel>], iteration_bounds = array<i64: 1, 1>, scalar_prefetch = 0 : i64, scratch_operands = 0 : i64, tpu.core_type = #tpu.core_type<tc>, window_params = [{transform_indices = @transform_0, window_bounds = array<i64: 1, 24, 27>}, {transform_indices = @transform_1, window_bounds = array<i64: 1, 24, 1>}, {transform_indices = @transform_2, window_bounds = array<i64: 1, 27, 128>}, {transform_indices = @transform_3, window_bounds = array<i64: 1, 24, 128>}]} {
    %c0 = arith.constant 0 : index
    %c0_0 = arith.constant 0 : index
    %c0_1 = arith.constant 0 : index
    %0 = vector.load %arg2[%c0, %c0_0, %c0_1] : memref<1x24x27xbf16, #tpu.memory_space<vmem>>, vector<1x24x27xbf16>
    %1 = vector.shape_cast %0 : vector<1x24x27xbf16> to vector<24x27xbf16>
    %c0_2 = arith.constant 0 : index
    %c0_3 = arith.constant 0 : index
    %c0_4 = arith.constant 0 : index
    %2 = vector.load %arg4[%c0_2, %c0_3, %c0_4] : memref<1x27x128xbf16, #tpu.memory_space<vmem>>, vector<1x27x128xbf16>
    %3 = vector.shape_cast %2 : vector<1x27x128xbf16> to vector<27x128xbf16>
    %cst = arith.constant dense<0.000000e+00> : vector<24x128xf32>
    %4 = tpu.matmul %1, %3, %cst {dimension_numbers = #tpu.dot_dimension_numbers<[1], [0], [0], [1], [0, 0, 1, 1], [], []>} : vector<24x27xbf16>, vector<27x128xbf16>, vector<24x128xf32> -> vector<24x128xf32>
    %c0_5 = arith.constant 0 : index
    %c0_6 = arith.constant 0 : index
    %c0_7 = arith.constant 0 : index
    %5 = vector.load %arg3[%c0_5, %c0_6, %c0_7] : memref<1x24x1xf32, #tpu.memory_space<vmem>>, vector<1x24x1xf32>
    %6 = vector.shape_cast %5 : vector<1x24x1xf32> to vector<24x1xf32>
    %7 = vector.broadcast %6 : vector<24x1xf32> to vector<24x128xf32>
    %8 = arith.addf %4, %7 : vector<24x128xf32>
    %cst_8 = arith.constant 0.000000e+00 : f32
    %9 = vector.broadcast %cst_8 : f32 to vector<24x128xf32>
    %10 = arith.cmpf oge, %8, %9 : vector<24x128xf32>
    %cst_9 = arith.constant 0.00999999977 : f32
    %11 = vector.broadcast %cst_9 : f32 to vector<24x128xf32>
    %12 = arith.mulf %11, %8 : vector<24x128xf32>
    %13 = arith.select %10, %8, %12 : vector<24x128xi1>, vector<24x128xf32>
    %14 = arith.truncf %13 : vector<24x128xf32> to vector<24x128xbf16>
    %c0_10 = arith.constant 0 : index
    %c0_11 = arith.constant 0 : index
    %c0_12 = arith.constant 0 : index
    %15 = vector.load %arg5[%c0_10, %c0_11, %c0_12] : memref<1x24x128xbf16, #tpu.memory_space<vmem>>, vector<1x24x128xbf16>
    %16 = vector.shape_cast %15 : vector<1x24x128xbf16> to vector<24x128xbf16>
    %17 = vector.shape_cast %14 : vector<24x128xbf16> to vector<1x24x128xbf16>
    tpu.vector_store %arg5[%c0_10, %c0_11, %c0_12], %17 {strides = array<i32>} : memref<1x24x128xbf16, #tpu.memory_space<vmem>>, vector<1x24x128xbf16>,
    return
  }
  func.func @transform_0(%arg0: i32, %arg1: i32) -> (i32, i32, i32) {
    %c0_i32 = arith.constant 0 : i32
    %c0_i32_0 = arith.constant 0 : i32
    %c0_i32_1 = arith.constant 0 : i32
    return %arg0, %c0_i32, %c0_i32_0 : i32, i32, i32
  }
  func.func @transform_1(%arg0: i32, %arg1: i32) -> (i32, i32, i32) {
    %c0_i32 = arith.constant 0 : i32
    %c0_i32_0 = arith.constant 0 : i32
    %c0_i32_1 = arith.constant 0 : i32
    return %arg0, %c0_i32, %c0_i32_0 : i32, i32, i32
  }
  func.func @transform_2(%arg0: i32, %arg1: i32) -> (i32, i32, i32) {
    %c0_i32 = arith.constant 0 : i32
    %c0_i32_0 = arith.constant 0 : i32
    return %arg0, %c0_i32, %arg1 : i32, i32, i32
  }
  func.func @transform_3(%arg0: i32, %arg1: i32) -> (i32, i32, i32) {
    %c0_i32 = arith.constant 0 : i32
    %c0_i32_0 = arith.constant 0 : i32
    return %arg0, %c0_i32, %arg1 : i32, i32, i32
  }
}

module attributes {stable_mosaic.version = 11 : i64} {
  func.func @_gemm_kernel(%arg0: i32, %arg1: i32, %arg2: memref<1x12x216xbf16, #tpu.memory_space<vmem>>, %arg3: memref<1x12x1xf32, #tpu.memory_space<vmem>>, %arg4: memref<1x216x128xbf16, #tpu.memory_space<vmem>>, %arg5: memref<1x12x128xbf16, #tpu.memory_space<vmem>>) attributes {dimension_semantics = [#tpu.dimension_semantics<parallel>, #tpu.dimension_semantics<parallel>], iteration_bounds = array<i64: 1, 1>, scalar_prefetch = 0 : i64, scratch_operands = 0 : i64, tpu.core_type = #tpu.core_type<tc>, window_params = [{transform_indices = @transform_0, window_bounds = array<i64: 1, 12, 216>}, {transform_indices = @transform_1, window_bounds = array<i64: 1, 12, 1>}, {transform_indices = @transform_2, window_bounds = array<i64: 1, 216, 128>}, {transform_indices = @transform_3, window_bounds = array<i64: 1, 12, 128>}]} {
    %c0 = arith.constant 0 : index
    %c0_0 = arith.constant 0 : index
    %c0_1 = arith.constant 0 : index
    %0 = vector.load %arg2[%c0, %c0_0, %c0_1] : memref<1x12x216xbf16, #tpu.memory_space<vmem>>, vector<1x12x216xbf16>
    %1 = vector.shape_cast %0 : vector<1x12x216xbf16> to vector<12x216xbf16>
    %c0_2 = arith.constant 0 : index
    %c0_3 = arith.constant 0 : index
    %c0_4 = arith.constant 0 : index
    %2 = vector.load %arg4[%c0_2, %c0_3, %c0_4] : memref<1x216x128xbf16, #tpu.memory_space<vmem>>, vector<1x216x128xbf16>
    %3 = vector.shape_cast %2 : vector<1x216x128xbf16> to vector<216x128xbf16>
    %cst = arith.constant dense<0.000000e+00> : vector<12x128xf32>
    %4 = tpu.matmul %1, %3, %cst {dimension_numbers = #tpu.dot_dimension_numbers<[1], [0], [0], [1], [0, 0, 1, 1], [], []>} : vector<12x216xbf16>, vector<216x128xbf16>, vector<12x128xf32> -> vector<12x128xf32>
    %c0_5 = arith.constant 0 : index
    %c0_6 = arith.constant 0 : index
    %c0_7 = arith.constant 0 : index
    %5 = vector.load %arg3[%c0_5, %c0_6, %c0_7] : memref<1x12x1xf32, #tpu.memory_space<vmem>>, vector<1x12x1xf32>
    %6 = vector.shape_cast %5 : vector<1x12x1xf32> to vector<12x1xf32>
    %7 = vector.broadcast %6 : vector<12x1xf32> to vector<12x128xf32>
    %8 = arith.addf %4, %7 : vector<12x128xf32>
    %cst_8 = arith.constant 0.000000e+00 : f32
    %9 = vector.broadcast %cst_8 : f32 to vector<12x128xf32>
    %10 = arith.cmpf oge, %8, %9 : vector<12x128xf32>
    %cst_9 = arith.constant 0.00999999977 : f32
    %11 = vector.broadcast %cst_9 : f32 to vector<12x128xf32>
    %12 = arith.mulf %11, %8 : vector<12x128xf32>
    %13 = arith.select %10, %8, %12 : vector<12x128xi1>, vector<12x128xf32>
    %14 = arith.truncf %13 : vector<12x128xf32> to vector<12x128xbf16>
    %c0_10 = arith.constant 0 : index
    %c0_11 = arith.constant 0 : index
    %c0_12 = arith.constant 0 : index
    %15 = vector.load %arg5[%c0_10, %c0_11, %c0_12] : memref<1x12x128xbf16, #tpu.memory_space<vmem>>, vector<1x12x128xbf16>
    %16 = vector.shape_cast %15 : vector<1x12x128xbf16> to vector<12x128xbf16>
    %17 = vector.shape_cast %14 : vector<12x128xbf16> to vector<1x12x128xbf16>
    tpu.vector_store %arg5[%c0_10, %c0_11, %c0_12], %17 {strides = array<i32>} : memref<1x12x128xbf16, #tpu.memory_space<vmem>>, vector<1x12x128xbf16>,
    return
  }
  func.func @transform_0(%arg0: i32, %arg1: i32) -> (i32, i32, i32) {
    %c0_i32 = arith.constant 0 : i32
    %c0_i32_0 = arith.constant 0 : i32
    %c0_i32_1 = arith.constant 0 : i32
    return %arg0, %c0_i32, %c0_i32_0 : i32, i32, i32
  }
  func.func @transform_1(%arg0: i32, %arg1: i32) -> (i32, i32, i32) {
    %c0_i32 = arith.constant 0 : i32
    %c0_i32_0 = arith.constant 0 : i32
    %c0_i32_1 = arith.constant 0 : i32
    return %arg0, %c0_i32, %c0_i32_0 : i32, i32, i32
  }
  func.func @transform_2(%arg0: i32, %arg1: i32) -> (i32, i32, i32) {
    %c0_i32 = arith.constant 0 : i32
    %c0_i32_0 = arith.constant 0 : i32
    return %arg0, %c0_i32, %arg1 : i32, i32, i32
  }
  func.func @transform_3(%arg0: i32, %arg1: i32) -> (i32, i32, i32) {
    %c0_i32 = arith.constant 0 : i32
    %c0_i32_0 = arith.constant 0 : i32
    return %arg0, %c0_i32, %arg1 : i32, i32, i32
  }
}

module attributes {stable_mosaic.version = 11 : i64} {
  func.func @_gemm_kernel(%arg0: i32, %arg1: i32, %arg2: memref<1x6x108xbf16, #tpu.memory_space<vmem>>, %arg3: memref<1x6x1xf32, #tpu.memory_space<vmem>>, %arg4: memref<1x108x128xbf16, #tpu.memory_space<vmem>>, %arg5: memref<1x6x128xbf16, #tpu.memory_space<vmem>>) attributes {dimension_semantics = [#tpu.dimension_semantics<parallel>, #tpu.dimension_semantics<parallel>], iteration_bounds = array<i64: 1, 1>, scalar_prefetch = 0 : i64, scratch_operands = 0 : i64, tpu.core_type = #tpu.core_type<tc>, window_params = [{transform_indices = @transform_0, window_bounds = array<i64: 1, 6, 108>}, {transform_indices = @transform_1, window_bounds = array<i64: 1, 6, 1>}, {transform_indices = @transform_2, window_bounds = array<i64: 1, 108, 128>}, {transform_indices = @transform_3, window_bounds = array<i64: 1, 6, 128>}]} {
    %c0 = arith.constant 0 : index
    %c0_0 = arith.constant 0 : index
    %c0_1 = arith.constant 0 : index
    %0 = vector.load %arg2[%c0, %c0_0, %c0_1] : memref<1x6x108xbf16, #tpu.memory_space<vmem>>, vector<1x6x108xbf16>
    %1 = vector.shape_cast %0 : vector<1x6x108xbf16> to vector<6x108xbf16>
    %c0_2 = arith.constant 0 : index
    %c0_3 = arith.constant 0 : index
    %c0_4 = arith.constant 0 : index
    %2 = vector.load %arg4[%c0_2, %c0_3, %c0_4] : memref<1x108x128xbf16, #tpu.memory_space<vmem>>, vector<1x108x128xbf16>
    %3 = vector.shape_cast %2 : vector<1x108x128xbf16> to vector<108x128xbf16>
    %cst = arith.constant dense<0.000000e+00> : vector<6x128xf32>
    %4 = tpu.matmul %1, %3, %cst {dimension_numbers = #tpu.dot_dimension_numbers<[1], [0], [0], [1], [0, 0, 1, 1], [], []>} : vector<6x108xbf16>, vector<108x128xbf16>, vector<6x128xf32> -> vector<6x128xf32>
    %c0_5 = arith.constant 0 : index
    %c0_6 = arith.constant 0 : index
    %c0_7 = arith.constant 0 : index
    %5 = vector.load %arg3[%c0_5, %c0_6, %c0_7] : memref<1x6x1xf32, #tpu.memory_space<vmem>>, vector<1x6x1xf32>
    %6 = vector.shape_cast %5 : vector<1x6x1xf32> to vector<6x1xf32>
    %7 = vector.broadcast %6 : vector<6x1xf32> to vector<6x128xf32>
    %8 = arith.addf %4, %7 : vector<6x128xf32>
    %cst_8 = arith.constant 0.000000e+00 : f32
    %9 = vector.broadcast %cst_8 : f32 to vector<6x128xf32>
    %10 = arith.cmpf oge, %8, %9 : vector<6x128xf32>
    %cst_9 = arith.constant 0.00999999977 : f32
    %11 = vector.broadcast %cst_9 : f32 to vector<6x128xf32>
    %12 = arith.mulf %11, %8 : vector<6x128xf32>
    %13 = arith.select %10, %8, %12 : vector<6x128xi1>, vector<6x128xf32>
    %14 = arith.truncf %13 : vector<6x128xf32> to vector<6x128xbf16>
    %c0_10 = arith.constant 0 : index
    %c0_11 = arith.constant 0 : index
    %c0_12 = arith.constant 0 : index
    %15 = vector.load %arg5[%c0_10, %c0_11, %c0_12] : memref<1x6x128xbf16, #tpu.memory_space<vmem>>, vector<1x6x128xbf16>
    %16 = vector.shape_cast %15 : vector<1x6x128xbf16> to vector<6x128xbf16>
    %17 = vector.shape_cast %14 : vector<6x128xbf16> to vector<1x6x128xbf16>
    tpu.vector_store %arg5[%c0_10, %c0_11, %c0_12], %17 {strides = array<i32>} : memref<1x6x128xbf16, #tpu.memory_space<vmem>>, vector<1x6x128xbf16>,
    return
  }
  func.func @transform_0(%arg0: i32, %arg1: i32) -> (i32, i32, i32) {
    %c0_i32 = arith.constant 0 : i32
    %c0_i32_0 = arith.constant 0 : i32
    %c0_i32_1 = arith.constant 0 : i32
    return %arg0, %c0_i32, %c0_i32_0 : i32, i32, i32
  }
  func.func @transform_1(%arg0: i32, %arg1: i32) -> (i32, i32, i32) {
    %c0_i32 = arith.constant 0 : i32
    %c0_i32_0 = arith.constant 0 : i32
    %c0_i32_1 = arith.constant 0 : i32
    return %arg0, %c0_i32, %c0_i32_0 : i32, i32, i32
  }
  func.func @transform_2(%arg0: i32, %arg1: i32) -> (i32, i32, i32) {
    %c0_i32 = arith.constant 0 : i32
    %c0_i32_0 = arith.constant 0 : i32
    return %arg0, %c0_i32, %arg1 : i32, i32, i32
  }
  func.func @transform_3(%arg0: i32, %arg1: i32) -> (i32, i32, i32) {
    %c0_i32 = arith.constant 0 : i32
    %c0_i32_0 = arith.constant 0 : i32
    return %arg0, %c0_i32, %arg1 : i32, i32, i32
  }
}

module attributes {stable_mosaic.version = 11 : i64} {
  func.func @_gemm_kernel(%arg0: i32, %arg1: i32, %arg2: memref<1x6x54xbf16, #tpu.memory_space<vmem>>, %arg3: memref<1x6x1xf32, #tpu.memory_space<vmem>>, %arg4: memref<1x54x128xbf16, #tpu.memory_space<vmem>>, %arg5: memref<1x6x128xbf16, #tpu.memory_space<vmem>>) attributes {dimension_semantics = [#tpu.dimension_semantics<parallel>, #tpu.dimension_semantics<parallel>], iteration_bounds = array<i64: 1, 1>, scalar_prefetch = 0 : i64, scratch_operands = 0 : i64, tpu.core_type = #tpu.core_type<tc>, window_params = [{transform_indices = @transform_0, window_bounds = array<i64: 1, 6, 54>}, {transform_indices = @transform_1, window_bounds = array<i64: 1, 6, 1>}, {transform_indices = @transform_2, window_bounds = array<i64: 1, 54, 128>}, {transform_indices = @transform_3, window_bounds = array<i64: 1, 6, 128>}]} {
    %c0 = arith.constant 0 : index
    %c0_0 = arith.constant 0 : index
    %c0_1 = arith.constant 0 : index
    %0 = vector.load %arg2[%c0, %c0_0, %c0_1] : memref<1x6x54xbf16, #tpu.memory_space<vmem>>, vector<1x6x54xbf16>
    %1 = vector.shape_cast %0 : vector<1x6x54xbf16> to vector<6x54xbf16>
    %c0_2 = arith.constant 0 : index
    %c0_3 = arith.constant 0 : index
    %c0_4 = arith.constant 0 : index
    %2 = vector.load %arg4[%c0_2, %c0_3, %c0_4] : memref<1x54x128xbf16, #tpu.memory_space<vmem>>, vector<1x54x128xbf16>
    %3 = vector.shape_cast %2 : vector<1x54x128xbf16> to vector<54x128xbf16>
    %cst = arith.constant dense<0.000000e+00> : vector<6x128xf32>
    %4 = tpu.matmul %1, %3, %cst {dimension_numbers = #tpu.dot_dimension_numbers<[1], [0], [0], [1], [0, 0, 1, 1], [], []>} : vector<6x54xbf16>, vector<54x128xbf16>, vector<6x128xf32> -> vector<6x128xf32>
    %c0_5 = arith.constant 0 : index
    %c0_6 = arith.constant 0 : index
    %c0_7 = arith.constant 0 : index
    %5 = vector.load %arg3[%c0_5, %c0_6, %c0_7] : memref<1x6x1xf32, #tpu.memory_space<vmem>>, vector<1x6x1xf32>
    %6 = vector.shape_cast %5 : vector<1x6x1xf32> to vector<6x1xf32>
    %7 = vector.broadcast %6 : vector<6x1xf32> to vector<6x128xf32>
    %8 = arith.addf %4, %7 : vector<6x128xf32>
    %cst_8 = arith.constant 0.000000e+00 : f32
    %9 = vector.broadcast %cst_8 : f32 to vector<6x128xf32>
    %10 = arith.cmpf oge, %8, %9 : vector<6x128xf32>
    %cst_9 = arith.constant 0.00999999977 : f32
    %11 = vector.broadcast %cst_9 : f32 to vector<6x128xf32>
    %12 = arith.mulf %11, %8 : vector<6x128xf32>
    %13 = arith.select %10, %8, %12 : vector<6x128xi1>, vector<6x128xf32>
    %14 = arith.truncf %13 : vector<6x128xf32> to vector<6x128xbf16>
    %c0_10 = arith.constant 0 : index
    %c0_11 = arith.constant 0 : index
    %c0_12 = arith.constant 0 : index
    %15 = vector.load %arg5[%c0_10, %c0_11, %c0_12] : memref<1x6x128xbf16, #tpu.memory_space<vmem>>, vector<1x6x128xbf16>
    %16 = vector.shape_cast %15 : vector<1x6x128xbf16> to vector<6x128xbf16>
    %17 = vector.shape_cast %14 : vector<6x128xbf16> to vector<1x6x128xbf16>
    tpu.vector_store %arg5[%c0_10, %c0_11, %c0_12], %17 {strides = array<i32>} : memref<1x6x128xbf16, #tpu.memory_space<vmem>>, vector<1x6x128xbf16>,
    return
  }
  func.func @transform_0(%arg0: i32, %arg1: i32) -> (i32, i32, i32) {
    %c0_i32 = arith.constant 0 : i32
    %c0_i32_0 = arith.constant 0 : i32
    %c0_i32_1 = arith.constant 0 : i32
    return %arg0, %c0_i32, %c0_i32_0 : i32, i32, i32
  }
  func.func @transform_1(%arg0: i32, %arg1: i32) -> (i32, i32, i32) {
    %c0_i32 = arith.constant 0 : i32
    %c0_i32_0 = arith.constant 0 : i32
    %c0_i32_1 = arith.constant 0 : i32
    return %arg0, %c0_i32, %c0_i32_0 : i32, i32, i32
  }
  func.func @transform_2(%arg0: i32, %arg1: i32) -> (i32, i32, i32) {
    %c0_i32 = arith.constant 0 : i32
    %c0_i32_0 = arith.constant 0 : i32
    return %arg0, %c0_i32, %arg1 : i32, i32, i32
  }
  func.func @transform_3(%arg0: i32, %arg1: i32) -> (i32, i32, i32) {
    %c0_i32 = arith.constant 0 : i32
    %c0_i32_0 = arith.constant 0 : i32
    return %arg0, %c0_i32, %arg1 : i32, i32, i32
  }
}

module attributes {stable_mosaic.version = 11 : i64} {
  func.func @_gemm_si_kernel(%arg0: i32, %arg1: i32, %arg2: memref<1x6x54xbf16, #tpu.memory_space<vmem>>, %arg3: memref<1x6x1xf32, #tpu.memory_space<vmem>>, %arg4: memref<1x54x128xbf16, #tpu.memory_space<vmem>>, %arg5: memref<1x3x128xf32, #tpu.memory_space<vmem>>, %arg6: memref<1x3x128xf32, #tpu.memory_space<vmem>>) attributes {dimension_semantics = [#tpu.dimension_semantics<parallel>, #tpu.dimension_semantics<parallel>], iteration_bounds = array<i64: 1, 1>, scalar_prefetch = 0 : i64, scratch_operands = 0 : i64, tpu.core_type = #tpu.core_type<tc>, window_params = [{transform_indices = @transform_0, window_bounds = array<i64: 1, 6, 54>}, {transform_indices = @transform_1, window_bounds = array<i64: 1, 6, 1>}, {transform_indices = @transform_2, window_bounds = array<i64: 1, 54, 128>}, {transform_indices = @transform_3, window_bounds = array<i64: 1, 3, 128>}, {transform_indices = @transform_4, window_bounds = array<i64: 1, 3, 128>}]} {
    %c0 = arith.constant 0 : index
    %c0_0 = arith.constant 0 : index
    %c0_1 = arith.constant 0 : index
    %0 = vector.load %arg2[%c0, %c0_0, %c0_1] : memref<1x6x54xbf16, #tpu.memory_space<vmem>>, vector<1x6x54xbf16>
    %1 = vector.shape_cast %0 : vector<1x6x54xbf16> to vector<6x54xbf16>
    %c0_2 = arith.constant 0 : index
    %c0_3 = arith.constant 0 : index
    %c0_4 = arith.constant 0 : index
    %2 = vector.load %arg4[%c0_2, %c0_3, %c0_4] : memref<1x54x128xbf16, #tpu.memory_space<vmem>>, vector<1x54x128xbf16>
    %3 = vector.shape_cast %2 : vector<1x54x128xbf16> to vector<54x128xbf16>
    %cst = arith.constant dense<0.000000e+00> : vector<6x128xf32>
    %4 = tpu.matmul %1, %3, %cst {dimension_numbers = #tpu.dot_dimension_numbers<[1], [0], [0], [1], [0, 0, 1, 1], [], []>} : vector<6x54xbf16>, vector<54x128xbf16>, vector<6x128xf32> -> vector<6x128xf32>
    %c0_5 = arith.constant 0 : index
    %c0_6 = arith.constant 0 : index
    %c0_7 = arith.constant 0 : index
    %5 = vector.load %arg3[%c0_5, %c0_6, %c0_7] : memref<1x6x1xf32, #tpu.memory_space<vmem>>, vector<1x6x1xf32>
    %6 = vector.shape_cast %5 : vector<1x6x1xf32> to vector<6x1xf32>
    %7 = vector.broadcast %6 : vector<6x1xf32> to vector<6x128xf32>
    %8 = arith.addf %4, %7 : vector<6x128xf32>
    %cst_8 = arith.constant 0.000000e+00 : f32
    %9 = vector.broadcast %cst_8 : f32 to vector<6x128xf32>
    %10 = arith.cmpf oge, %8, %9 : vector<6x128xf32>
    %cst_9 = arith.constant 0.00999999977 : f32
    %11 = vector.broadcast %cst_9 : f32 to vector<6x128xf32>
    %12 = arith.mulf %11, %8 : vector<6x128xf32>
    %13 = arith.select %10, %8, %12 : vector<6x128xi1>, vector<6x128xf32>
    %14 = vector.extract_strided_slice %13 {offsets = [0, 0], sizes = [3, 128], strides = [1, 1]} : vector<6x128xf32> to vector<3x128xf32>
    %c0_10 = arith.constant 0 : index
    %c0_11 = arith.constant 0 : index
    %c0_12 = arith.constant 0 : index
    %15 = vector.load %arg5[%c0_10, %c0_11, %c0_12] : memref<1x3x128xf32, #tpu.memory_space<vmem>>, vector<1x3x128xf32>
    %16 = vector.shape_cast %15 : vector<1x3x128xf32> to vector<3x128xf32>
    %17 = math.absf %16 : vector<3x128xf32>
    %cst_13 = arith.constant 1.100000e-01 : f32
    %18 = vector.broadcast %cst_13 : f32 to vector<3x128xf32>
    %19 = arith.maximumf %14, %18 : vector<3x128xf32>
    %20 = tpu.reciprocal %19 {approx = true} : vector<3x128xf32> -> vector<3x128xf32>
    %cst_14 = arith.constant 5.000000e-01 : f32
    %21 = vector.broadcast %cst_14 : f32 to vector<3x128xf32>
    %22 = arith.subf %21, %17 : vector<3x128xf32>
    %23 = arith.mulf %22, %20 : vector<3x128xf32>
    %cst_15 = arith.constant 0.707106769 : f32
    %24 = vector.broadcast %cst_15 : f32 to vector<3x128xf32>
    %25 = arith.mulf %23, %24 : vector<3x128xf32>
    %cst_16 = arith.constant 0.000000e+00 : f32
    %26 = vector.broadcast %cst_16 : f32 to vector<3x128xf32>
    %27 = arith.cmpf oge, %25, %26 : vector<3x128xf32>
    %cst_17 = arith.constant 1.000000e+00 : f32
    %cst_18 = arith.constant -1.000000e+00 : f32
    %28 = vector.broadcast %cst_17 : f32 to vector<3x128xf32>
    %29 = vector.broadcast %cst_18 : f32 to vector<3x128xf32>
    %30 = arith.select %27, %28, %29 : vector<3x128xi1>, vector<3x128xf32>
    %31 = math.absf %25 : vector<3x128xf32>
    %cst_19 = arith.constant 0.327591091 : f32
    %32 = vector.broadcast %cst_19 : f32 to vector<3x128xf32>
    %33 = arith.mulf %32, %31 : vector<3x128xf32>
    %cst_20 = arith.constant 1.000000e+00 : f32
    %34 = vector.broadcast %cst_20 : f32 to vector<3x128xf32>
    %35 = arith.addf %34, %33 : vector<3x128xf32>
    %36 = tpu.reciprocal %35 {approx = true} : vector<3x128xf32> -> vector<3x128xf32>
    %cst_21 = arith.constant 1.06140542 : f32
    %37 = vector.broadcast %cst_21 : f32 to vector<3x128xf32>
    %38 = arith.mulf %37, %36 : vector<3x128xf32>
    %cst_22 = arith.constant -1.45315206 : f32
    %39 = vector.broadcast %cst_22 : f32 to vector<3x128xf32>
    %40 = arith.addf %38, %39 : vector<3x128xf32>
    %41 = arith.mulf %40, %36 : vector<3x128xf32>
    %cst_23 = arith.constant 1.42141378 : f32
    %42 = vector.broadcast %cst_23 : f32 to vector<3x128xf32>
    %43 = arith.addf %41, %42 : vector<3x128xf32>
    %44 = arith.mulf %43, %36 : vector<3x128xf32>
    %cst_24 = arith.constant -0.284496725 : f32
    %45 = vector.broadcast %cst_24 : f32 to vector<3x128xf32>
    %46 = arith.addf %44, %45 : vector<3x128xf32>
    %47 = arith.mulf %46, %36 : vector<3x128xf32>
    %cst_25 = arith.constant 0.254829586 : f32
    %48 = vector.broadcast %cst_25 : f32 to vector<3x128xf32>
    %49 = arith.addf %47, %48 : vector<3x128xf32>
    %50 = arith.mulf %49, %36 : vector<3x128xf32>
    %cst_26 = arith.constant 0.000000e+00 : f32
    %51 = vector.broadcast %cst_26 : f32 to vector<3x128xf32>
    %52 = arith.subf %51, %31 : vector<3x128xf32>
    %53 = arith.mulf %52, %31 : vector<3x128xf32>
    %54 = math.exp %53 : vector<3x128xf32>
    %55 = arith.mulf %50, %54 : vector<3x128xf32>
    %cst_27 = arith.constant 1.000000e+00 : f32
    %56 = vector.broadcast %cst_27 : f32 to vector<3x128xf32>
    %57 = arith.subf %56, %55 : vector<3x128xf32>
    %58 = arith.mulf %30, %57 : vector<3x128xf32>
    %cst_28 = arith.constant 1.000000e+00 : f32
    %59 = vector.broadcast %cst_28 : f32 to vector<3x128xf32>
    %60 = arith.addf %59, %58 : vector<3x128xf32>
    %cst_29 = arith.constant 5.000000e-01 : f32
    %61 = vector.broadcast %cst_29 : f32 to vector<3x128xf32>
    %62 = arith.mulf %61, %60 : vector<3x128xf32>
    %cst_30 = arith.constant -5.000000e-01 : f32
    %63 = vector.broadcast %cst_30 : f32 to vector<3x128xf32>
    %64 = arith.subf %63, %17 : vector<3x128xf32>
    %65 = arith.mulf %64, %20 : vector<3x128xf32>
    %cst_31 = arith.constant 0.707106769 : f32
    %66 = vector.broadcast %cst_31 : f32 to vector<3x128xf32>
    %67 = arith.mulf %65, %66 : vector<3x128xf32>
    %cst_32 = arith.constant 0.000000e+00 : f32
    %68 = vector.broadcast %cst_32 : f32 to vector<3x128xf32>
    %69 = arith.cmpf oge, %67, %68 : vector<3x128xf32>
    %cst_33 = arith.constant 1.000000e+00 : f32
    %cst_34 = arith.constant -1.000000e+00 : f32
    %70 = vector.broadcast %cst_33 : f32 to vector<3x128xf32>
    %71 = vector.broadcast %cst_34 : f32 to vector<3x128xf32>
    %72 = arith.select %69, %70, %71 : vector<3x128xi1>, vector<3x128xf32>
    %73 = math.absf %67 : vector<3x128xf32>
    %cst_35 = arith.constant 0.327591091 : f32
    %74 = vector.broadcast %cst_35 : f32 to vector<3x128xf32>
    %75 = arith.mulf %74, %73 : vector<3x128xf32>
    %cst_36 = arith.constant 1.000000e+00 : f32
    %76 = vector.broadcast %cst_36 : f32 to vector<3x128xf32>
    %77 = arith.addf %76, %75 : vector<3x128xf32>
    %78 = tpu.reciprocal %77 {approx = true} : vector<3x128xf32> -> vector<3x128xf32>
    %cst_37 = arith.constant 1.06140542 : f32
    %79 = vector.broadcast %cst_37 : f32 to vector<3x128xf32>
    %80 = arith.mulf %79, %78 : vector<3x128xf32>
    %cst_38 = arith.constant -1.45315206 : f32
    %81 = vector.broadcast %cst_38 : f32 to vector<3x128xf32>
    %82 = arith.addf %80, %81 : vector<3x128xf32>
    %83 = arith.mulf %82, %78 : vector<3x128xf32>
    %cst_39 = arith.constant 1.42141378 : f32
    %84 = vector.broadcast %cst_39 : f32 to vector<3x128xf32>
    %85 = arith.addf %83, %84 : vector<3x128xf32>
    %86 = arith.mulf %85, %78 : vector<3x128xf32>
    %cst_40 = arith.constant -0.284496725 : f32
    %87 = vector.broadcast %cst_40 : f32 to vector<3x128xf32>
    %88 = arith.addf %86, %87 : vector<3x128xf32>
    %89 = arith.mulf %88, %78 : vector<3x128xf32>
    %cst_41 = arith.constant 0.254829586 : f32
    %90 = vector.broadcast %cst_41 : f32 to vector<3x128xf32>
    %91 = arith.addf %89, %90 : vector<3x128xf32>
    %92 = arith.mulf %91, %78 : vector<3x128xf32>
    %cst_42 = arith.constant 0.000000e+00 : f32
    %93 = vector.broadcast %cst_42 : f32 to vector<3x128xf32>
    %94 = arith.subf %93, %73 : vector<3x128xf32>
    %95 = arith.mulf %94, %73 : vector<3x128xf32>
    %96 = math.exp %95 : vector<3x128xf32>
    %97 = arith.mulf %92, %96 : vector<3x128xf32>
    %cst_43 = arith.constant 1.000000e+00 : f32
    %98 = vector.broadcast %cst_43 : f32 to vector<3x128xf32>
    %99 = arith.subf %98, %97 : vector<3x128xf32>
    %100 = arith.mulf %72, %99 : vector<3x128xf32>
    %cst_44 = arith.constant 1.000000e+00 : f32
    %101 = vector.broadcast %cst_44 : f32 to vector<3x128xf32>
    %102 = arith.addf %101, %100 : vector<3x128xf32>
    %cst_45 = arith.constant 5.000000e-01 : f32
    %103 = vector.broadcast %cst_45 : f32 to vector<3x128xf32>
    %104 = arith.mulf %103, %102 : vector<3x128xf32>
    %105 = arith.subf %62, %104 : vector<3x128xf32>
    %cst_46 = arith.constant 9.99999971E-10 : f32
    %106 = vector.broadcast %cst_46 : f32 to vector<3x128xf32>
    %107 = arith.maximumf %105, %106 : vector<3x128xf32>
    %108 = math.log %107 : vector<3x128xf32>
    %cst_47 = arith.constant 0.000000e+00 : f32
    %109 = vector.broadcast %cst_47 : f32 to vector<3x128xf32>
    %110 = arith.subf %109, %108 : vector<3x128xf32>
    %cst_48 = arith.constant 1.44269502 : f32
    %111 = vector.broadcast %cst_48 : f32 to vector<3x128xf32>
    %112 = arith.mulf %110, %111 : vector<3x128xf32>
    %c0_49 = arith.constant 0 : index
    %c0_50 = arith.constant 0 : index
    %c0_51 = arith.constant 0 : index
    %113 = vector.load %arg6[%c0_49, %c0_50, %c0_51] : memref<1x3x128xf32, #tpu.memory_space<vmem>>, vector<1x3x128xf32>
    %114 = vector.shape_cast %113 : vector<1x3x128xf32> to vector<3x128xf32>
    %115 = vector.shape_cast %112 : vector<3x128xf32> to vector<1x3x128xf32>
    tpu.vector_store %arg6[%c0_49, %c0_50, %c0_51], %115 {strides = array<i32>} : memref<1x3x128xf32, #tpu.memory_space<vmem>>, vector<1x3x128xf32>,
    return
  }
  func.func @transform_0(%arg0: i32, %arg1: i32) -> (i32, i32, i32) {
    %c0_i32 = arith.constant 0 : i32
    %c0_i32_0 = arith.constant 0 : i32
    %c0_i32_1 = arith.constant 0 : i32
    return %arg0, %c0_i32, %c0_i32_0 : i32, i32, i32
  }
  func.func @transform_1(%arg0: i32, %arg1: i32) -> (i32, i32, i32) {
    %c0_i32 = arith.constant 0 : i32
    %c0_i32_0 = arith.constant 0 : i32
    %c0_i32_1 = arith.constant 0 : i32
    return %arg0, %c0_i32, %c0_i32_0 : i32, i32, i32
  }
  func.func @transform_2(%arg0: i32, %arg1: i32) -> (i32, i32, i32) {
    %c0_i32 = arith.constant 0 : i32
    %c0_i32_0 = arith.constant 0 : i32
    return %arg0, %c0_i32, %arg1 : i32, i32, i32
  }
  func.func @transform_3(%arg0: i32, %arg1: i32) -> (i32, i32, i32) {
    %c0_i32 = arith.constant 0 : i32
    %c0_i32_0 = arith.constant 0 : i32
    return %arg0, %c0_i32, %arg1 : i32, i32, i32
  }
  func.func @transform_4(%arg0: i32, %arg1: i32) -> (i32, i32, i32) {
    %c0_i32 = arith.constant 0 : i32
    %c0_i32_0 = arith.constant 0 : i32
    return %arg0, %c0_i32, %arg1 : i32, i32, i32
  }
}

module attributes {stable_mosaic.version = 11 : i64} {
  func.func @_gemm_kernel(%arg0: i32, %arg1: i32, %arg2: memref<1x8x25xbf16, #tpu.memory_space<vmem>>, %arg3: memref<1x8x1xf32, #tpu.memory_space<vmem>>, %arg4: memref<1x25x512xbf16, #tpu.memory_space<vmem>>, %arg5: memref<1x8x512xbf16, #tpu.memory_space<vmem>>) attributes {dimension_semantics = [#tpu.dimension_semantics<parallel>, #tpu.dimension_semantics<parallel>], iteration_bounds = array<i64: 3, 1>, scalar_prefetch = 0 : i64, scratch_operands = 0 : i64, tpu.core_type = #tpu.core_type<tc>, window_params = [{transform_indices = @transform_0, window_bounds = array<i64: 1, 8, 25>}, {transform_indices = @transform_1, window_bounds = array<i64: 1, 8, 1>}, {transform_indices = @transform_2, window_bounds = array<i64: 1, 25, 512>}, {transform_indices = @transform_3, window_bounds = array<i64: 1, 8, 512>}]} {
    %c0 = arith.constant 0 : index
    %c0_0 = arith.constant 0 : index
    %c0_1 = arith.constant 0 : index
    %0 = vector.load %arg2[%c0, %c0_0, %c0_1] : memref<1x8x25xbf16, #tpu.memory_space<vmem>>, vector<1x8x25xbf16>
    %1 = vector.shape_cast %0 : vector<1x8x25xbf16> to vector<8x25xbf16>
    %c0_2 = arith.constant 0 : index
    %c0_3 = arith.constant 0 : index
    %c0_4 = arith.constant 0 : index
    %2 = vector.load %arg4[%c0_2, %c0_3, %c0_4] : memref<1x25x512xbf16, #tpu.memory_space<vmem>>, vector<1x25x512xbf16>
    %3 = vector.shape_cast %2 : vector<1x25x512xbf16> to vector<25x512xbf16>
    %cst = arith.constant dense<0.000000e+00> : vector<8x512xf32>
    %4 = tpu.matmul %1, %3, %cst {dimension_numbers = #tpu.dot_dimension_numbers<[1], [0], [0], [1], [0, 0, 1, 1], [], []>} : vector<8x25xbf16>, vector<25x512xbf16>, vector<8x512xf32> -> vector<8x512xf32>
    %c0_5 = arith.constant 0 : index
    %c0_6 = arith.constant 0 : index
    %c0_7 = arith.constant 0 : index
    %5 = vector.load %arg3[%c0_5, %c0_6, %c0_7] : memref<1x8x1xf32, #tpu.memory_space<vmem>>, vector<1x8x1xf32>
    %6 = vector.shape_cast %5 : vector<1x8x1xf32> to vector<8x1xf32>
    %7 = vector.broadcast %6 : vector<8x1xf32> to vector<8x512xf32>
    %8 = arith.addf %4, %7 : vector<8x512xf32>
    %9 = arith.truncf %8 : vector<8x512xf32> to vector<8x512xbf16>
    %c0_8 = arith.constant 0 : index
    %c0_9 = arith.constant 0 : index
    %c0_10 = arith.constant 0 : index
    %10 = vector.load %arg5[%c0_8, %c0_9, %c0_10] : memref<1x8x512xbf16, #tpu.memory_space<vmem>>, vector<1x8x512xbf16>
    %11 = vector.shape_cast %10 : vector<1x8x512xbf16> to vector<8x512xbf16>
    %12 = vector.shape_cast %9 : vector<8x512xbf16> to vector<1x8x512xbf16>
    tpu.vector_store %arg5[%c0_8, %c0_9, %c0_10], %12 {strides = array<i32>} : memref<1x8x512xbf16, #tpu.memory_space<vmem>>, vector<1x8x512xbf16>,
    return
  }
  func.func @transform_0(%arg0: i32, %arg1: i32) -> (i32, i32, i32) {
    %c0_i32 = arith.constant 0 : i32
    %c0_i32_0 = arith.constant 0 : i32
    %c0_i32_1 = arith.constant 0 : i32
    return %arg0, %c0_i32, %c0_i32_0 : i32, i32, i32
  }
  func.func @transform_1(%arg0: i32, %arg1: i32) -> (i32, i32, i32) {
    %c0_i32 = arith.constant 0 : i32
    %c0_i32_0 = arith.constant 0 : i32
    %c0_i32_1 = arith.constant 0 : i32
    return %arg0, %c0_i32, %c0_i32_0 : i32, i32, i32
  }
  func.func @transform_2(%arg0: i32, %arg1: i32) -> (i32, i32, i32) {
    %c0_i32 = arith.constant 0 : i32
    %c0_i32_0 = arith.constant 0 : i32
    return %arg0, %c0_i32, %arg1 : i32, i32, i32
  }
  func.func @transform_3(%arg0: i32, %arg1: i32) -> (i32, i32, i32) {
    %c0_i32 = arith.constant 0 : i32
    %c0_i32_0 = arith.constant 0 : i32
    return %arg0, %c0_i32, %arg1 : i32, i32, i32
  }
}

module attributes {stable_mosaic.version = 11 : i64} {
  func.func @_cgp_si_kernel(%arg0: i32, %arg1: i32, %arg2: memref<1x4x512xbf16, #tpu.memory_space<vmem>>, %arg3: memref<1x8x512xbf16, #tpu.memory_space<vmem>>, %arg4: memref<1x1x512xf32, #tpu.memory_space<vmem>>, %arg5: memref<1x8x4xbf16, #tpu.memory_space<vmem>>, %arg6: memref<1x8x1xf32, #tpu.memory_space<vmem>>, %arg7: memref<1x16x8xbf16, #tpu.memory_space<vmem>>, %arg8: memref<1x16x8xbf16, #tpu.memory_space<vmem>>, %arg9: memref<1x16x1xf32, #tpu.memory_space<vmem>>, %arg10: memref<1x8x16xbf16, #tpu.memory_space<vmem>>, %arg11: memref<1x8x1xf32, #tpu.memory_space<vmem>>, %arg12: memref<1x4x8xbf16, #tpu.memory_space<vmem>>, %arg13: memref<1x4x1xf32, #tpu.memory_space<vmem>>, %arg14: memref<1x2x4xbf16, #tpu.memory_space<vmem>>, %arg15: memref<1x2x1xf32, #tpu.memory_space<vmem>>, %arg16: memref<1x1x512xf32, #tpu.memory_space<vmem>>) attributes {dimension_semantics = [#tpu.dimension_semantics<parallel>, #tpu.dimension_semantics<parallel>], iteration_bounds = array<i64: 3, 1>, scalar_prefetch = 0 : i64, scratch_operands = 0 : i64, tpu.core_type = #tpu.core_type<tc>, window_params = [{transform_indices = @transform_0, window_bounds = array<i64: 1, 4, 512>}, {transform_indices = @transform_1, window_bounds = array<i64: 1, 8, 512>}, {transform_indices = @transform_2, window_bounds = array<i64: 1, 1, 512>}, {transform_indices = @transform_3, window_bounds = array<i64: 1, 8, 4>}, {transform_indices = @transform_4, window_bounds = array<i64: 1, 8, 1>}, {transform_indices = @transform_5, window_bounds = array<i64: 1, 16, 8>}, {transform_indices = @transform_6, window_bounds = array<i64: 1, 16, 8>}, {transform_indices = @transform_7, window_bounds = array<i64: 1, 16, 1>}, {transform_indices = @transform_8, window_bounds = array<i64: 1, 8, 16>}, {transform_indices = @transform_9, window_bounds = array<i64: 1, 8, 1>}, {transform_indices = @transform_10, window_bounds = array<i64: 1, 4, 8>}, {transform_indices = @transform_11, window_bounds = array<i64: 1, 4, 1>}, {transform_indices = @transform_12, window_bounds = array<i64: 1, 2, 4>}, {transform_indices = @transform_13, window_bounds = array<i64: 1, 2, 1>}, {transform_indices = @transform_14, window_bounds = array<i64: 1, 1, 512>}]} {
    %c0 = arith.constant 0 : index
    %c0_0 = arith.constant 0 : index
    %c0_1 = arith.constant 0 : index
    %0 = vector.load %arg5[%c0, %c0_0, %c0_1] : memref<1x8x4xbf16, #tpu.memory_space<vmem>>, vector<1x8x4xbf16>
    %1 = vector.shape_cast %0 : vector<1x8x4xbf16> to vector<8x4xbf16>
    %c0_2 = arith.constant 0 : index
    %c0_3 = arith.constant 0 : index
    %c0_4 = arith.constant 0 : index
    %2 = vector.load %arg2[%c0_2, %c0_3, %c0_4] : memref<1x4x512xbf16, #tpu.memory_space<vmem>>, vector<1x4x512xbf16>
    %3 = vector.shape_cast %2 : vector<1x4x512xbf16> to vector<4x512xbf16>
    %cst = arith.constant dense<0.000000e+00> : vector<8x512xf32>
    %4 = tpu.matmul %1, %3, %cst {dimension_numbers = #tpu.dot_dimension_numbers<[1], [0], [0], [1], [0, 0, 1, 1], [], []>} : vector<8x4xbf16>, vector<4x512xbf16>, vector<8x512xf32> -> vector<8x512xf32>
    %c0_5 = arith.constant 0 : index
    %c0_6 = arith.constant 0 : index
    %c0_7 = arith.constant 0 : index
    %5 = vector.load %arg6[%c0_5, %c0_6, %c0_7] : memref<1x8x1xf32, #tpu.memory_space<vmem>>, vector<1x8x1xf32>
    %6 = vector.shape_cast %5 : vector<1x8x1xf32> to vector<8x1xf32>
    %7 = vector.broadcast %6 : vector<8x1xf32> to vector<8x512xf32>
    %8 = arith.addf %4, %7 : vector<8x512xf32>
    %c0_8 = arith.constant 0 : index
    %c0_9 = arith.constant 0 : index
    %c0_10 = arith.constant 0 : index
    %9 = vector.load %arg3[%c0_8, %c0_9, %c0_10] : memref<1x8x512xbf16, #tpu.memory_space<vmem>>, vector<1x8x512xbf16>
    %10 = vector.shape_cast %9 : vector<1x8x512xbf16> to vector<8x512xbf16>
    %11 = arith.extf %10 : vector<8x512xbf16> to vector<8x512xf32>
    %c0_11 = arith.constant 0 : index
    %c0_12 = arith.constant 0 : index
    %c0_13 = arith.constant 0 : index
    %12 = vector.load %arg7[%c0_11, %c0_12, %c0_13] : memref<1x16x8xbf16, #tpu.memory_space<vmem>>, vector<1x16x8xbf16>
    %13 = vector.shape_cast %12 : vector<1x16x8xbf16> to vector<16x8xbf16>
    %cst_14 = arith.constant 0.000000e+00 : f32
    %14 = vector.broadcast %cst_14 : f32 to vector<8x512xf32>
    %15 = arith.cmpf oge, %8, %14 : vector<8x512xf32>
    %cst_15 = arith.constant 0.00999999977 : f32
    %16 = vector.broadcast %cst_15 : f32 to vector<8x512xf32>
    %17 = arith.mulf %16, %8 : vector<8x512xf32>
    %18 = arith.select %15, %8, %17 : vector<8x512xi1>, vector<8x512xf32>
    %19 = arith.truncf %18 : vector<8x512xf32> to vector<8x512xbf16>
    %cst_16 = arith.constant dense<0.000000e+00> : vector<16x512xf32>
    %20 = tpu.matmul %13, %19, %cst_16 {dimension_numbers = #tpu.dot_dimension_numbers<[1], [0], [0], [1], [0, 0, 1, 1], [], []>} : vector<16x8xbf16>, vector<8x512xbf16>, vector<16x512xf32> -> vector<16x512xf32>
    %c0_17 = arith.constant 0 : index
    %c0_18 = arith.constant 0 : index
    %c0_19 = arith.constant 0 : index
    %21 = vector.load %arg8[%c0_17, %c0_18, %c0_19] : memref<1x16x8xbf16, #tpu.memory_space<vmem>>, vector<1x16x8xbf16>
    %22 = vector.shape_cast %21 : vector<1x16x8xbf16> to vector<16x8xbf16>
    %cst_20 = arith.constant 0.000000e+00 : f32
    %23 = vector.broadcast %cst_20 : f32 to vector<8x512xf32>
    %24 = arith.cmpf oge, %11, %23 : vector<8x512xf32>
    %cst_21 = arith.constant 0.00999999977 : f32
    %25 = vector.broadcast %cst_21 : f32 to vector<8x512xf32>
    %26 = arith.mulf %25, %11 : vector<8x512xf32>
    %27 = arith.select %24, %11, %26 : vector<8x512xi1>, vector<8x512xf32>
    %28 = arith.truncf %27 : vector<8x512xf32> to vector<8x512xbf16>
    %cst_22 = arith.constant dense<0.000000e+00> : vector<16x512xf32>
    %29 = tpu.matmul %22, %28, %cst_22 {dimension_numbers = #tpu.dot_dimension_numbers<[1], [0], [0], [1], [0, 0, 1, 1], [], []>} : vector<16x8xbf16>, vector<8x512xbf16>, vector<16x512xf32> -> vector<16x512xf32>
    %30 = arith.addf %20, %29 : vector<16x512xf32>
    %c0_23 = arith.constant 0 : index
    %c0_24 = arith.constant 0 : index
    %c0_25 = arith.constant 0 : index
    %31 = vector.load %arg9[%c0_23, %c0_24, %c0_25] : memref<1x16x1xf32, #tpu.memory_space<vmem>>, vector<1x16x1xf32>
    %32 = vector.shape_cast %31 : vector<1x16x1xf32> to vector<16x1xf32>
    %33 = vector.broadcast %32 : vector<16x1xf32> to vector<16x512xf32>
    %34 = arith.addf %30, %33 : vector<16x512xf32>
    %c0_26 = arith.constant 0 : index
    %c0_27 = arith.constant 0 : index
    %c0_28 = arith.constant 0 : index
    %35 = vector.load %arg10[%c0_26, %c0_27, %c0_28] : memref<1x8x16xbf16, #tpu.memory_space<vmem>>, vector<1x8x16xbf16>
    %36 = vector.shape_cast %35 : vector<1x8x16xbf16> to vector<8x16xbf16>
    %cst_29 = arith.constant 0.000000e+00 : f32
    %37 = vector.broadcast %cst_29 : f32 to vector<16x512xf32>
    %38 = arith.cmpf oge, %34, %37 : vector<16x512xf32>
    %cst_30 = arith.constant 0.00999999977 : f32
    %39 = vector.broadcast %cst_30 : f32 to vector<16x512xf32>
    %40 = arith.mulf %39, %34 : vector<16x512xf32>
    %41 = arith.select %38, %34, %40 : vector<16x512xi1>, vector<16x512xf32>
    %42 = arith.truncf %41 : vector<16x512xf32> to vector<16x512xbf16>
    %cst_31 = arith.constant dense<0.000000e+00> : vector<8x512xf32>
    %43 = tpu.matmul %36, %42, %cst_31 {dimension_numbers = #tpu.dot_dimension_numbers<[1], [0], [0], [1], [0, 0, 1, 1], [], []>} : vector<8x16xbf16>, vector<16x512xbf16>, vector<8x512xf32> -> vector<8x512xf32>
    %c0_32 = arith.constant 0 : index
    %c0_33 = arith.constant 0 : index
    %c0_34 = arith.constant 0 : index
    %44 = vector.load %arg11[%c0_32, %c0_33, %c0_34] : memref<1x8x1xf32, #tpu.memory_space<vmem>>, vector<1x8x1xf32>
    %45 = vector.shape_cast %44 : vector<1x8x1xf32> to vector<8x1xf32>
    %46 = vector.broadcast %45 : vector<8x1xf32> to vector<8x512xf32>
    %47 = arith.addf %43, %46 : vector<8x512xf32>
    %c0_35 = arith.constant 0 : index
    %c0_36 = arith.constant 0 : index
    %c0_37 = arith.constant 0 : index
    %48 = vector.load %arg12[%c0_35, %c0_36, %c0_37] : memref<1x4x8xbf16, #tpu.memory_space<vmem>>, vector<1x4x8xbf16>
    %49 = vector.shape_cast %48 : vector<1x4x8xbf16> to vector<4x8xbf16>
    %cst_38 = arith.constant 0.000000e+00 : f32
    %50 = vector.broadcast %cst_38 : f32 to vector<8x512xf32>
    %51 = arith.cmpf oge, %47, %50 : vector<8x512xf32>
    %cst_39 = arith.constant 0.00999999977 : f32
    %52 = vector.broadcast %cst_39 : f32 to vector<8x512xf32>
    %53 = arith.mulf %52, %47 : vector<8x512xf32>
    %54 = arith.select %51, %47, %53 : vector<8x512xi1>, vector<8x512xf32>
    %55 = arith.truncf %54 : vector<8x512xf32> to vector<8x512xbf16>
    %cst_40 = arith.constant dense<0.000000e+00> : vector<4x512xf32>
    %56 = tpu.matmul %49, %55, %cst_40 {dimension_numbers = #tpu.dot_dimension_numbers<[1], [0], [0], [1], [0, 0, 1, 1], [], []>} : vector<4x8xbf16>, vector<8x512xbf16>, vector<4x512xf32> -> vector<4x512xf32>
    %c0_41 = arith.constant 0 : index
    %c0_42 = arith.constant 0 : index
    %c0_43 = arith.constant 0 : index
    %57 = vector.load %arg13[%c0_41, %c0_42, %c0_43] : memref<1x4x1xf32, #tpu.memory_space<vmem>>, vector<1x4x1xf32>
    %58 = vector.shape_cast %57 : vector<1x4x1xf32> to vector<4x1xf32>
    %59 = vector.broadcast %58 : vector<4x1xf32> to vector<4x512xf32>
    %60 = arith.addf %56, %59 : vector<4x512xf32>
    %c0_44 = arith.constant 0 : index
    %c0_45 = arith.constant 0 : index
    %c0_46 = arith.constant 0 : index
    %61 = vector.load %arg14[%c0_44, %c0_45, %c0_46] : memref<1x2x4xbf16, #tpu.memory_space<vmem>>, vector<1x2x4xbf16>
    %62 = vector.shape_cast %61 : vector<1x2x4xbf16> to vector<2x4xbf16>
    %cst_47 = arith.constant 0.000000e+00 : f32
    %63 = vector.broadcast %cst_47 : f32 to vector<4x512xf32>
    %64 = arith.cmpf oge, %60, %63 : vector<4x512xf32>
    %cst_48 = arith.constant 0.00999999977 : f32
    %65 = vector.broadcast %cst_48 : f32 to vector<4x512xf32>
    %66 = arith.mulf %65, %60 : vector<4x512xf32>
    %67 = arith.select %64, %60, %66 : vector<4x512xi1>, vector<4x512xf32>
    %68 = arith.truncf %67 : vector<4x512xf32> to vector<4x512xbf16>
    %cst_49 = arith.constant dense<0.000000e+00> : vector<2x512xf32>
    %69 = tpu.matmul %62, %68, %cst_49 {dimension_numbers = #tpu.dot_dimension_numbers<[1], [0], [0], [1], [0, 0, 1, 1], [], []>} : vector<2x4xbf16>, vector<4x512xbf16>, vector<2x512xf32> -> vector<2x512xf32>
    %c0_50 = arith.constant 0 : index
    %c0_51 = arith.constant 0 : index
    %c0_52 = arith.constant 0 : index
    %70 = vector.load %arg15[%c0_50, %c0_51, %c0_52] : memref<1x2x1xf32, #tpu.memory_space<vmem>>, vector<1x2x1xf32>
    %71 = vector.shape_cast %70 : vector<1x2x1xf32> to vector<2x1xf32>
    %72 = vector.broadcast %71 : vector<2x1xf32> to vector<2x512xf32>
    %73 = arith.addf %69, %72 : vector<2x512xf32>
    %74 = vector.extract_strided_slice %73 {offsets = [0, 0], sizes = [1, 512], strides = [1, 1]} : vector<2x512xf32> to vector<1x512xf32>
    %c0_53 = arith.constant 0 : index
    %c0_54 = arith.constant 0 : index
    %c0_55 = arith.constant 0 : index
    %75 = vector.load %arg4[%c0_53, %c0_54, %c0_55] : memref<1x1x512xf32, #tpu.memory_space<vmem>>, vector<1x1x512xf32>
    %76 = vector.shape_cast %75 : vector<1x1x512xf32> to vector<1x512xf32>
    %77 = math.absf %76 : vector<1x512xf32>
    %cst_56 = arith.constant 1.100000e-01 : f32
    %78 = vector.broadcast %cst_56 : f32 to vector<1x512xf32>
    %79 = arith.maximumf %74, %78 : vector<1x512xf32>
    %80 = tpu.reciprocal %79 {approx = true} : vector<1x512xf32> -> vector<1x512xf32>
    %cst_57 = arith.constant 5.000000e-01 : f32
    %81 = vector.broadcast %cst_57 : f32 to vector<1x512xf32>
    %82 = arith.subf %81, %77 : vector<1x512xf32>
    %83 = arith.mulf %82, %80 : vector<1x512xf32>
    %cst_58 = arith.constant 0.707106769 : f32
    %84 = vector.broadcast %cst_58 : f32 to vector<1x512xf32>
    %85 = arith.mulf %83, %84 : vector<1x512xf32>
    %cst_59 = arith.constant 0.000000e+00 : f32
    %86 = vector.broadcast %cst_59 : f32 to vector<1x512xf32>
    %87 = arith.cmpf oge, %85, %86 : vector<1x512xf32>
    %cst_60 = arith.constant 1.000000e+00 : f32
    %cst_61 = arith.constant -1.000000e+00 : f32
    %88 = vector.broadcast %cst_60 : f32 to vector<1x512xf32>
    %89 = vector.broadcast %cst_61 : f32 to vector<1x512xf32>
    %90 = arith.select %87, %88, %89 : vector<1x512xi1>, vector<1x512xf32>
    %91 = math.absf %85 : vector<1x512xf32>
    %cst_62 = arith.constant 0.327591091 : f32
    %92 = vector.broadcast %cst_62 : f32 to vector<1x512xf32>
    %93 = arith.mulf %92, %91 : vector<1x512xf32>
    %cst_63 = arith.constant 1.000000e+00 : f32
    %94 = vector.broadcast %cst_63 : f32 to vector<1x512xf32>
    %95 = arith.addf %94, %93 : vector<1x512xf32>
    %96 = tpu.reciprocal %95 {approx = true} : vector<1x512xf32> -> vector<1x512xf32>
    %cst_64 = arith.constant 1.06140542 : f32
    %97 = vector.broadcast %cst_64 : f32 to vector<1x512xf32>
    %98 = arith.mulf %97, %96 : vector<1x512xf32>
    %cst_65 = arith.constant -1.45315206 : f32
    %99 = vector.broadcast %cst_65 : f32 to vector<1x512xf32>
    %100 = arith.addf %98, %99 : vector<1x512xf32>
    %101 = arith.mulf %100, %96 : vector<1x512xf32>
    %cst_66 = arith.constant 1.42141378 : f32
    %102 = vector.broadcast %cst_66 : f32 to vector<1x512xf32>
    %103 = arith.addf %101, %102 : vector<1x512xf32>
    %104 = arith.mulf %103, %96 : vector<1x512xf32>
    %cst_67 = arith.constant -0.284496725 : f32
    %105 = vector.broadcast %cst_67 : f32 to vector<1x512xf32>
    %106 = arith.addf %104, %105 : vector<1x512xf32>
    %107 = arith.mulf %106, %96 : vector<1x512xf32>
    %cst_68 = arith.constant 0.254829586 : f32
    %108 = vector.broadcast %cst_68 : f32 to vector<1x512xf32>
    %109 = arith.addf %107, %108 : vector<1x512xf32>
    %110 = arith.mulf %109, %96 : vector<1x512xf32>
    %cst_69 = arith.constant 0.000000e+00 : f32
    %111 = vector.broadcast %cst_69 : f32 to vector<1x512xf32>
    %112 = arith.subf %111, %91 : vector<1x512xf32>
    %113 = arith.mulf %112, %91 : vector<1x512xf32>
    %114 = math.exp %113 : vector<1x512xf32>
    %115 = arith.mulf %110, %114 : vector<1x512xf32>
    %cst_70 = arith.constant 1.000000e+00 : f32
    %116 = vector.broadcast %cst_70 : f32 to vector<1x512xf32>
    %117 = arith.subf %116, %115 : vector<1x512xf32>
    %118 = arith.mulf %90, %117 : vector<1x512xf32>
    %cst_71 = arith.constant 1.000000e+00 : f32
    %119 = vector.broadcast %cst_71 : f32 to vector<1x512xf32>
    %120 = arith.addf %119, %118 : vector<1x512xf32>
    %cst_72 = arith.constant 5.000000e-01 : f32
    %121 = vector.broadcast %cst_72 : f32 to vector<1x512xf32>
    %122 = arith.mulf %121, %120 : vector<1x512xf32>
    %cst_73 = arith.constant -5.000000e-01 : f32
    %123 = vector.broadcast %cst_73 : f32 to vector<1x512xf32>
    %124 = arith.subf %123, %77 : vector<1x512xf32>
    %125 = arith.mulf %124, %80 : vector<1x512xf32>
    %cst_74 = arith.constant 0.707106769 : f32
    %126 = vector.broadcast %cst_74 : f32 to vector<1x512xf32>
    %127 = arith.mulf %125, %126 : vector<1x512xf32>
    %cst_75 = arith.constant 0.000000e+00 : f32
    %128 = vector.broadcast %cst_75 : f32 to vector<1x512xf32>
    %129 = arith.cmpf oge, %127, %128 : vector<1x512xf32>
    %cst_76 = arith.constant 1.000000e+00 : f32
    %cst_77 = arith.constant -1.000000e+00 : f32
    %130 = vector.broadcast %cst_76 : f32 to vector<1x512xf32>
    %131 = vector.broadcast %cst_77 : f32 to vector<1x512xf32>
    %132 = arith.select %129, %130, %131 : vector<1x512xi1>, vector<1x512xf32>
    %133 = math.absf %127 : vector<1x512xf32>
    %cst_78 = arith.constant 0.327591091 : f32
    %134 = vector.broadcast %cst_78 : f32 to vector<1x512xf32>
    %135 = arith.mulf %134, %133 : vector<1x512xf32>
    %cst_79 = arith.constant 1.000000e+00 : f32
    %136 = vector.broadcast %cst_79 : f32 to vector<1x512xf32>
    %137 = arith.addf %136, %135 : vector<1x512xf32>
    %138 = tpu.reciprocal %137 {approx = true} : vector<1x512xf32> -> vector<1x512xf32>
    %cst_80 = arith.constant 1.06140542 : f32
    %139 = vector.broadcast %cst_80 : f32 to vector<1x512xf32>
    %140 = arith.mulf %139, %138 : vector<1x512xf32>
    %cst_81 = arith.constant -1.45315206 : f32
    %141 = vector.broadcast %cst_81 : f32 to vector<1x512xf32>
    %142 = arith.addf %140, %141 : vector<1x512xf32>
    %143 = arith.mulf %142, %138 : vector<1x512xf32>
    %cst_82 = arith.constant 1.42141378 : f32
    %144 = vector.broadcast %cst_82 : f32 to vector<1x512xf32>
    %145 = arith.addf %143, %144 : vector<1x512xf32>
    %146 = arith.mulf %145, %138 : vector<1x512xf32>
    %cst_83 = arith.constant -0.284496725 : f32
    %147 = vector.broadcast %cst_83 : f32 to vector<1x512xf32>
    %148 = arith.addf %146, %147 : vector<1x512xf32>
    %149 = arith.mulf %148, %138 : vector<1x512xf32>
    %cst_84 = arith.constant 0.254829586 : f32
    %150 = vector.broadcast %cst_84 : f32 to vector<1x512xf32>
    %151 = arith.addf %149, %150 : vector<1x512xf32>
    %152 = arith.mulf %151, %138 : vector<1x512xf32>
    %cst_85 = arith.constant 0.000000e+00 : f32
    %153 = vector.broadcast %cst_85 : f32 to vector<1x512xf32>
    %154 = arith.subf %153, %133 : vector<1x512xf32>
    %155 = arith.mulf %154, %133 : vector<1x512xf32>
    %156 = math.exp %155 : vector<1x512xf32>
    %157 = arith.mulf %152, %156 : vector<1x512xf32>
    %cst_86 = arith.constant 1.000000e+00 : f32
    %158 = vector.broadcast %cst_86 : f32 to vector<1x512xf32>
    %159 = arith.subf %158, %157 : vector<1x512xf32>
    %160 = arith.mulf %132, %159 : vector<1x512xf32>
    %cst_87 = arith.constant 1.000000e+00 : f32
    %161 = vector.broadcast %cst_87 : f32 to vector<1x512xf32>
    %162 = arith.addf %161, %160 : vector<1x512xf32>
    %cst_88 = arith.constant 5.000000e-01 : f32
    %163 = vector.broadcast %cst_88 : f32 to vector<1x512xf32>
    %164 = arith.mulf %163, %162 : vector<1x512xf32>
    %165 = arith.subf %122, %164 : vector<1x512xf32>
    %cst_89 = arith.constant 9.99999971E-10 : f32
    %166 = vector.broadcast %cst_89 : f32 to vector<1x512xf32>
    %167 = arith.maximumf %165, %166 : vector<1x512xf32>
    %168 = math.log %167 : vector<1x512xf32>
    %cst_90 = arith.constant 0.000000e+00 : f32
    %169 = vector.broadcast %cst_90 : f32 to vector<1x512xf32>
    %170 = arith.subf %169, %168 : vector<1x512xf32>
    %cst_91 = arith.constant 1.44269502 : f32
    %171 = vector.broadcast %cst_91 : f32 to vector<1x512xf32>
    %172 = arith.mulf %170, %171 : vector<1x512xf32>
    %c0_92 = arith.constant 0 : index
    %c0_93 = arith.constant 0 : index
    %c0_94 = arith.constant 0 : index
    %173 = vector.load %arg16[%c0_92, %c0_93, %c0_94] : memref<1x1x512xf32, #tpu.memory_space<vmem>>, vector<1x1x512xf32>
    %174 = vector.shape_cast %173 : vector<1x1x512xf32> to vector<1x512xf32>
    %175 = vector.shape_cast %172 : vector<1x512xf32> to vector<1x1x512xf32>
    tpu.vector_store %arg16[%c0_92, %c0_93, %c0_94], %175 {strides = array<i32>} : memref<1x1x512xf32, #tpu.memory_space<vmem>>, vector<1x1x512xf32>,
    return
  }
  func.func @transform_0(%arg0: i32, %arg1: i32) -> (i32, i32, i32) {
    %c0_i32 = arith.constant 0 : i32
    %c0_i32_0 = arith.constant 0 : i32
    return %arg0, %c0_i32, %arg1 : i32, i32, i32
  }
  func.func @transform_1(%arg0: i32, %arg1: i32) -> (i32, i32, i32) {
    %c0_i32 = arith.constant 0 : i32
    %c0_i32_0 = arith.constant 0 : i32
    return %arg0, %c0_i32, %arg1 : i32, i32, i32
  }
  func.func @transform_2(%arg0: i32, %arg1: i32) -> (i32, i32, i32) {
    %c0_i32 = arith.constant 0 : i32
    %c0_i32_0 = arith.constant 0 : i32
    return %arg0, %c0_i32, %arg1 : i32, i32, i32
  }
  func.func @transform_3(%arg0: i32, %arg1: i32) -> (i32, i32, i32) {
    %c0_i32 = arith.constant 0 : i32
    %c0_i32_0 = arith.constant 0 : i32
    %c0_i32_1 = arith.constant 0 : i32
    return %arg0, %c0_i32, %c0_i32_0 : i32, i32, i32
  }
  func.func @transform_4(%arg0: i32, %arg1: i32) -> (i32, i32, i32) {
    %c0_i32 = arith.constant 0 : i32
    %c0_i32_0 = arith.constant 0 : i32
    %c0_i32_1 = arith.constant 0 : i32
    return %arg0, %c0_i32, %c0_i32_0 : i32, i32, i32
  }
  func.func @transform_5(%arg0: i32, %arg1: i32) -> (i32, i32, i32) {
    %c0_i32 = arith.constant 0 : i32
    %c0_i32_0 = arith.constant 0 : i32
    %c0_i32_1 = arith.constant 0 : i32
    return %arg0, %c0_i32, %c0_i32_0 : i32, i32, i32
  }
  func.func @transform_6(%arg0: i32, %arg1: i32) -> (i32, i32, i32) {
    %c0_i32 = arith.constant 0 : i32
    %c0_i32_0 = arith.constant 0 : i32
    %c0_i32_1 = arith.constant 0 : i32
    return %arg0, %c0_i32, %c0_i32_0 : i32, i32, i32
  }
  func.func @transform_7(%arg0: i32, %arg1: i32) -> (i32, i32, i32) {
    %c0_i32 = arith.constant 0 : i32
    %c0_i32_0 = arith.constant 0 : i32
    %c0_i32_1 = arith.constant 0 : i32
    return %arg0, %c0_i32, %c0_i32_0 : i32, i32, i32
  }
  func.func @transform_8(%arg0: i32, %arg1: i32) -> (i32, i32, i32) {
    %c0_i32 = arith.constant 0 : i32
    %c0_i32_0 = arith.constant 0 : i32
    %c0_i32_1 = arith.constant 0 : i32
    return %arg0, %c0_i32, %c0_i32_0 : i32, i32, i32
  }
  func.func @transform_9(%arg0: i32, %arg1: i32) -> (i32, i32, i32) {
    %c0_i32 = arith.constant 0 : i32
    %c0_i32_0 = arith.constant 0 : i32
    %c0_i32_1 = arith.constant 0 : i32
    return %arg0, %c0_i32, %c0_i32_0 : i32, i32, i32
  }
  func.func @transform_10(%arg0: i32, %arg1: i32) -> (i32, i32, i32) {
    %c0_i32 = arith.constant 0 : i32
    %c0_i32_0 = arith.constant 0 : i32
    %c0_i32_1 = arith.constant 0 : i32
    return %arg0, %c0_i32, %c0_i32_0 : i32, i32, i32
  }
  func.func @transform_11(%arg0: i32, %arg1: i32) -> (i32, i32, i32) {
    %c0_i32 = arith.constant 0 : i32
    %c0_i32_0 = arith.constant 0 : i32
    %c0_i32_1 = arith.constant 0 : i32
    return %arg0, %c0_i32, %c0_i32_0 : i32, i32, i32
  }
  func.func @transform_12(%arg0: i32, %arg1: i32) -> (i32, i32, i32) {
    %c0_i32 = arith.constant 0 : i32
    %c0_i32_0 = arith.constant 0 : i32
    %c0_i32_1 = arith.constant 0 : i32
    return %arg0, %c0_i32, %c0_i32_0 : i32, i32, i32
  }
  func.func @transform_13(%arg0: i32, %arg1: i32) -> (i32, i32, i32) {
    %c0_i32 = arith.constant 0 : i32
    %c0_i32_0 = arith.constant 0 : i32
    %c0_i32_1 = arith.constant 0 : i32
    return %arg0, %c0_i32, %c0_i32_0 : i32, i32, i32
  }
  func.func @transform_14(%arg0: i32, %arg1: i32) -> (i32, i32, i32) {
    %c0_i32 = arith.constant 0 : i32
    %c0_i32_0 = arith.constant 0 : i32
    return %arg0, %c0_i32, %arg1 : i32, i32, i32
  }
}

module attributes {stable_mosaic.version = 11 : i64} {
  func.func @_gemm_kernel(%arg0: i32, %arg1: i32, %arg2: memref<1x8x9xbf16, #tpu.memory_space<vmem>>, %arg3: memref<1x8x1xf32, #tpu.memory_space<vmem>>, %arg4: memref<1x9x128xbf16, #tpu.memory_space<vmem>>, %arg5: memref<1x8x128xbf16, #tpu.memory_space<vmem>>) attributes {dimension_semantics = [#tpu.dimension_semantics<parallel>, #tpu.dimension_semantics<parallel>], iteration_bounds = array<i64: 1, 1>, scalar_prefetch = 0 : i64, scratch_operands = 0 : i64, tpu.core_type = #tpu.core_type<tc>, window_params = [{transform_indices = @transform_0, window_bounds = array<i64: 1, 8, 9>}, {transform_indices = @transform_1, window_bounds = array<i64: 1, 8, 1>}, {transform_indices = @transform_2, window_bounds = array<i64: 1, 9, 128>}, {transform_indices = @transform_3, window_bounds = array<i64: 1, 8, 128>}]} {
    %c0 = arith.constant 0 : index
    %c0_0 = arith.constant 0 : index
    %c0_1 = arith.constant 0 : index
    %0 = vector.load %arg2[%c0, %c0_0, %c0_1] : memref<1x8x9xbf16, #tpu.memory_space<vmem>>, vector<1x8x9xbf16>
    %1 = vector.shape_cast %0 : vector<1x8x9xbf16> to vector<8x9xbf16>
    %c0_2 = arith.constant 0 : index
    %c0_3 = arith.constant 0 : index
    %c0_4 = arith.constant 0 : index
    %2 = vector.load %arg4[%c0_2, %c0_3, %c0_4] : memref<1x9x128xbf16, #tpu.memory_space<vmem>>, vector<1x9x128xbf16>
    %3 = vector.shape_cast %2 : vector<1x9x128xbf16> to vector<9x128xbf16>
    %cst = arith.constant dense<0.000000e+00> : vector<8x128xf32>
    %4 = tpu.matmul %1, %3, %cst {dimension_numbers = #tpu.dot_dimension_numbers<[1], [0], [0], [1], [0, 0, 1, 1], [], []>} : vector<8x9xbf16>, vector<9x128xbf16>, vector<8x128xf32> -> vector<8x128xf32>
    %c0_5 = arith.constant 0 : index
    %c0_6 = arith.constant 0 : index
    %c0_7 = arith.constant 0 : index
    %5 = vector.load %arg3[%c0_5, %c0_6, %c0_7] : memref<1x8x1xf32, #tpu.memory_space<vmem>>, vector<1x8x1xf32>
    %6 = vector.shape_cast %5 : vector<1x8x1xf32> to vector<8x1xf32>
    %7 = vector.broadcast %6 : vector<8x1xf32> to vector<8x128xf32>
    %8 = arith.addf %4, %7 : vector<8x128xf32>
    %cst_8 = arith.constant 0.000000e+00 : f32
    %9 = vector.broadcast %cst_8 : f32 to vector<8x128xf32>
    %10 = arith.cmpf oge, %8, %9 : vector<8x128xf32>
    %cst_9 = arith.constant 0.00999999977 : f32
    %11 = vector.broadcast %cst_9 : f32 to vector<8x128xf32>
    %12 = arith.mulf %11, %8 : vector<8x128xf32>
    %13 = arith.select %10, %8, %12 : vector<8x128xi1>, vector<8x128xf32>
    %14 = arith.truncf %13 : vector<8x128xf32> to vector<8x128xbf16>
    %c0_10 = arith.constant 0 : index
    %c0_11 = arith.constant 0 : index
    %c0_12 = arith.constant 0 : index
    %15 = vector.load %arg5[%c0_10, %c0_11, %c0_12] : memref<1x8x128xbf16, #tpu.memory_space<vmem>>, vector<1x8x128xbf16>
    %16 = vector.shape_cast %15 : vector<1x8x128xbf16> to vector<8x128xbf16>
    %17 = vector.shape_cast %14 : vector<8x128xbf16> to vector<1x8x128xbf16>
    tpu.vector_store %arg5[%c0_10, %c0_11, %c0_12], %17 {strides = array<i32>} : memref<1x8x128xbf16, #tpu.memory_space<vmem>>, vector<1x8x128xbf16>,
    return
  }
  func.func @transform_0(%arg0: i32, %arg1: i32) -> (i32, i32, i32) {
    %c0_i32 = arith.constant 0 : i32
    %c0_i32_0 = arith.constant 0 : i32
    %c0_i32_1 = arith.constant 0 : i32
    return %arg0, %c0_i32, %c0_i32_0 : i32, i32, i32
  }
  func.func @transform_1(%arg0: i32, %arg1: i32) -> (i32, i32, i32) {
    %c0_i32 = arith.constant 0 : i32
    %c0_i32_0 = arith.constant 0 : i32
    %c0_i32_1 = arith.constant 0 : i32
    return %arg0, %c0_i32, %c0_i32_0 : i32, i32, i32
  }
  func.func @transform_2(%arg0: i32, %arg1: i32) -> (i32, i32, i32) {
    %c0_i32 = arith.constant 0 : i32
    %c0_i32_0 = arith.constant 0 : i32
    return %arg0, %c0_i32, %arg1 : i32, i32, i32
  }
  func.func @transform_3(%arg0: i32, %arg1: i32) -> (i32, i32, i32) {
    %c0_i32 = arith.constant 0 : i32
    %c0_i32_0 = arith.constant 0 : i32
    return %arg0, %c0_i32, %arg1 : i32, i32, i32
  }
}

module attributes {stable_mosaic.version = 11 : i64} {
  func.func @_gemm_kernel(%arg0: i32, %arg1: i32, %arg2: memref<1x4x72xbf16, #tpu.memory_space<vmem>>, %arg3: memref<1x4x1xf32, #tpu.memory_space<vmem>>, %arg4: memref<1x72x128xbf16, #tpu.memory_space<vmem>>, %arg5: memref<1x4x128xbf16, #tpu.memory_space<vmem>>) attributes {dimension_semantics = [#tpu.dimension_semantics<parallel>, #tpu.dimension_semantics<parallel>], iteration_bounds = array<i64: 1, 1>, scalar_prefetch = 0 : i64, scratch_operands = 0 : i64, tpu.core_type = #tpu.core_type<tc>, window_params = [{transform_indices = @transform_0, window_bounds = array<i64: 1, 4, 72>}, {transform_indices = @transform_1, window_bounds = array<i64: 1, 4, 1>}, {transform_indices = @transform_2, window_bounds = array<i64: 1, 72, 128>}, {transform_indices = @transform_3, window_bounds = array<i64: 1, 4, 128>}]} {
    %c0 = arith.constant 0 : index
    %c0_0 = arith.constant 0 : index
    %c0_1 = arith.constant 0 : index
    %0 = vector.load %arg2[%c0, %c0_0, %c0_1] : memref<1x4x72xbf16, #tpu.memory_space<vmem>>, vector<1x4x72xbf16>
    %1 = vector.shape_cast %0 : vector<1x4x72xbf16> to vector<4x72xbf16>
    %c0_2 = arith.constant 0 : index
    %c0_3 = arith.constant 0 : index
    %c0_4 = arith.constant 0 : index
    %2 = vector.load %arg4[%c0_2, %c0_3, %c0_4] : memref<1x72x128xbf16, #tpu.memory_space<vmem>>, vector<1x72x128xbf16>
    %3 = vector.shape_cast %2 : vector<1x72x128xbf16> to vector<72x128xbf16>
    %cst = arith.constant dense<0.000000e+00> : vector<4x128xf32>
    %4 = tpu.matmul %1, %3, %cst {dimension_numbers = #tpu.dot_dimension_numbers<[1], [0], [0], [1], [0, 0, 1, 1], [], []>} : vector<4x72xbf16>, vector<72x128xbf16>, vector<4x128xf32> -> vector<4x128xf32>
    %c0_5 = arith.constant 0 : index
    %c0_6 = arith.constant 0 : index
    %c0_7 = arith.constant 0 : index
    %5 = vector.load %arg3[%c0_5, %c0_6, %c0_7] : memref<1x4x1xf32, #tpu.memory_space<vmem>>, vector<1x4x1xf32>
    %6 = vector.shape_cast %5 : vector<1x4x1xf32> to vector<4x1xf32>
    %7 = vector.broadcast %6 : vector<4x1xf32> to vector<4x128xf32>
    %8 = arith.addf %4, %7 : vector<4x128xf32>
    %cst_8 = arith.constant 0.000000e+00 : f32
    %9 = vector.broadcast %cst_8 : f32 to vector<4x128xf32>
    %10 = arith.cmpf oge, %8, %9 : vector<4x128xf32>
    %cst_9 = arith.constant 0.00999999977 : f32
    %11 = vector.broadcast %cst_9 : f32 to vector<4x128xf32>
    %12 = arith.mulf %11, %8 : vector<4x128xf32>
    %13 = arith.select %10, %8, %12 : vector<4x128xi1>, vector<4x128xf32>
    %14 = arith.truncf %13 : vector<4x128xf32> to vector<4x128xbf16>
    %c0_10 = arith.constant 0 : index
    %c0_11 = arith.constant 0 : index
    %c0_12 = arith.constant 0 : index
    %15 = vector.load %arg5[%c0_10, %c0_11, %c0_12] : memref<1x4x128xbf16, #tpu.memory_space<vmem>>, vector<1x4x128xbf16>
    %16 = vector.shape_cast %15 : vector<1x4x128xbf16> to vector<4x128xbf16>
    %17 = vector.shape_cast %14 : vector<4x128xbf16> to vector<1x4x128xbf16>
    tpu.vector_store %arg5[%c0_10, %c0_11, %c0_12], %17 {strides = array<i32>} : memref<1x4x128xbf16, #tpu.memory_space<vmem>>, vector<1x4x128xbf16>,
    return
  }
  func.func @transform_0(%arg0: i32, %arg1: i32) -> (i32, i32, i32) {
    %c0_i32 = arith.constant 0 : i32
    %c0_i32_0 = arith.constant 0 : i32
    %c0_i32_1 = arith.constant 0 : i32
    return %arg0, %c0_i32, %c0_i32_0 : i32, i32, i32
  }
  func.func @transform_1(%arg0: i32, %arg1: i32) -> (i32, i32, i32) {
    %c0_i32 = arith.constant 0 : i32
    %c0_i32_0 = arith.constant 0 : i32
    %c0_i32_1 = arith.constant 0 : i32
    return %arg0, %c0_i32, %c0_i32_0 : i32, i32, i32
  }
  func.func @transform_2(%arg0: i32, %arg1: i32) -> (i32, i32, i32) {
    %c0_i32 = arith.constant 0 : i32
    %c0_i32_0 = arith.constant 0 : i32
    return %arg0, %c0_i32, %arg1 : i32, i32, i32
  }
  func.func @transform_3(%arg0: i32, %arg1: i32) -> (i32, i32, i32) {
    %c0_i32 = arith.constant 0 : i32
    %c0_i32_0 = arith.constant 0 : i32
    return %arg0, %c0_i32, %arg1 : i32, i32, i32
  }
}

module attributes {stable_mosaic.version = 11 : i64} {
  func.func @_gemm_kernel(%arg0: i32, %arg1: i32, %arg2: memref<1x2x36xbf16, #tpu.memory_space<vmem>>, %arg3: memref<1x2x1xf32, #tpu.memory_space<vmem>>, %arg4: memref<1x36x128xbf16, #tpu.memory_space<vmem>>, %arg5: memref<1x2x128xbf16, #tpu.memory_space<vmem>>) attributes {dimension_semantics = [#tpu.dimension_semantics<parallel>, #tpu.dimension_semantics<parallel>], iteration_bounds = array<i64: 1, 1>, scalar_prefetch = 0 : i64, scratch_operands = 0 : i64, tpu.core_type = #tpu.core_type<tc>, window_params = [{transform_indices = @transform_0, window_bounds = array<i64: 1, 2, 36>}, {transform_indices = @transform_1, window_bounds = array<i64: 1, 2, 1>}, {transform_indices = @transform_2, window_bounds = array<i64: 1, 36, 128>}, {transform_indices = @transform_3, window_bounds = array<i64: 1, 2, 128>}]} {
    %c0 = arith.constant 0 : index
    %c0_0 = arith.constant 0 : index
    %c0_1 = arith.constant 0 : index
    %0 = vector.load %arg2[%c0, %c0_0, %c0_1] : memref<1x2x36xbf16, #tpu.memory_space<vmem>>, vector<1x2x36xbf16>
    %1 = vector.shape_cast %0 : vector<1x2x36xbf16> to vector<2x36xbf16>
    %c0_2 = arith.constant 0 : index
    %c0_3 = arith.constant 0 : index
    %c0_4 = arith.constant 0 : index
    %2 = vector.load %arg4[%c0_2, %c0_3, %c0_4] : memref<1x36x128xbf16, #tpu.memory_space<vmem>>, vector<1x36x128xbf16>
    %3 = vector.shape_cast %2 : vector<1x36x128xbf16> to vector<36x128xbf16>
    %cst = arith.constant dense<0.000000e+00> : vector<2x128xf32>
    %4 = tpu.matmul %1, %3, %cst {dimension_numbers = #tpu.dot_dimension_numbers<[1], [0], [0], [1], [0, 0, 1, 1], [], []>} : vector<2x36xbf16>, vector<36x128xbf16>, vector<2x128xf32> -> vector<2x128xf32>
    %c0_5 = arith.constant 0 : index
    %c0_6 = arith.constant 0 : index
    %c0_7 = arith.constant 0 : index
    %5 = vector.load %arg3[%c0_5, %c0_6, %c0_7] : memref<1x2x1xf32, #tpu.memory_space<vmem>>, vector<1x2x1xf32>
    %6 = vector.shape_cast %5 : vector<1x2x1xf32> to vector<2x1xf32>
    %7 = vector.broadcast %6 : vector<2x1xf32> to vector<2x128xf32>
    %8 = arith.addf %4, %7 : vector<2x128xf32>
    %cst_8 = arith.constant 0.000000e+00 : f32
    %9 = vector.broadcast %cst_8 : f32 to vector<2x128xf32>
    %10 = arith.cmpf oge, %8, %9 : vector<2x128xf32>
    %cst_9 = arith.constant 0.00999999977 : f32
    %11 = vector.broadcast %cst_9 : f32 to vector<2x128xf32>
    %12 = arith.mulf %11, %8 : vector<2x128xf32>
    %13 = arith.select %10, %8, %12 : vector<2x128xi1>, vector<2x128xf32>
    %14 = arith.truncf %13 : vector<2x128xf32> to vector<2x128xbf16>
    %c0_10 = arith.constant 0 : index
    %c0_11 = arith.constant 0 : index
    %c0_12 = arith.constant 0 : index
    %15 = vector.load %arg5[%c0_10, %c0_11, %c0_12] : memref<1x2x128xbf16, #tpu.memory_space<vmem>>, vector<1x2x128xbf16>
    %16 = vector.shape_cast %15 : vector<1x2x128xbf16> to vector<2x128xbf16>
    %17 = vector.shape_cast %14 : vector<2x128xbf16> to vector<1x2x128xbf16>
    tpu.vector_store %arg5[%c0_10, %c0_11, %c0_12], %17 {strides = array<i32>} : memref<1x2x128xbf16, #tpu.memory_space<vmem>>, vector<1x2x128xbf16>,
    return
  }
  func.func @transform_0(%arg0: i32, %arg1: i32) -> (i32, i32, i32) {
    %c0_i32 = arith.constant 0 : i32
    %c0_i32_0 = arith.constant 0 : i32
    %c0_i32_1 = arith.constant 0 : i32
    return %arg0, %c0_i32, %c0_i32_0 : i32, i32, i32
  }
  func.func @transform_1(%arg0: i32, %arg1: i32) -> (i32, i32, i32) {
    %c0_i32 = arith.constant 0 : i32
    %c0_i32_0 = arith.constant 0 : i32
    %c0_i32_1 = arith.constant 0 : i32
    return %arg0, %c0_i32, %c0_i32_0 : i32, i32, i32
  }
  func.func @transform_2(%arg0: i32, %arg1: i32) -> (i32, i32, i32) {
    %c0_i32 = arith.constant 0 : i32
    %c0_i32_0 = arith.constant 0 : i32
    return %arg0, %c0_i32, %arg1 : i32, i32, i32
  }
  func.func @transform_3(%arg0: i32, %arg1: i32) -> (i32, i32, i32) {
    %c0_i32 = arith.constant 0 : i32
    %c0_i32_0 = arith.constant 0 : i32
    return %arg0, %c0_i32, %arg1 : i32, i32, i32
  }
}

module attributes {stable_mosaic.version = 11 : i64} {
  func.func @_gemm_si_kernel(%arg0: i32, %arg1: i32, %arg2: memref<1x2x18xbf16, #tpu.memory_space<vmem>>, %arg3: memref<1x2x1xf32, #tpu.memory_space<vmem>>, %arg4: memref<1x18x128xbf16, #tpu.memory_space<vmem>>, %arg5: memref<1x1x128xf32, #tpu.memory_space<vmem>>, %arg6: memref<1x1x128xf32, #tpu.memory_space<vmem>>) attributes {dimension_semantics = [#tpu.dimension_semantics<parallel>, #tpu.dimension_semantics<parallel>], iteration_bounds = array<i64: 1, 1>, scalar_prefetch = 0 : i64, scratch_operands = 0 : i64, tpu.core_type = #tpu.core_type<tc>, window_params = [{transform_indices = @transform_0, window_bounds = array<i64: 1, 2, 18>}, {transform_indices = @transform_1, window_bounds = array<i64: 1, 2, 1>}, {transform_indices = @transform_2, window_bounds = array<i64: 1, 18, 128>}, {transform_indices = @transform_3, window_bounds = array<i64: 1, 1, 128>}, {transform_indices = @transform_4, window_bounds = array<i64: 1, 1, 128>}]} {
    %c0 = arith.constant 0 : index
    %c0_0 = arith.constant 0 : index
    %c0_1 = arith.constant 0 : index
    %0 = vector.load %arg2[%c0, %c0_0, %c0_1] : memref<1x2x18xbf16, #tpu.memory_space<vmem>>, vector<1x2x18xbf16>
    %1 = vector.shape_cast %0 : vector<1x2x18xbf16> to vector<2x18xbf16>
    %c0_2 = arith.constant 0 : index
    %c0_3 = arith.constant 0 : index
    %c0_4 = arith.constant 0 : index
    %2 = vector.load %arg4[%c0_2, %c0_3, %c0_4] : memref<1x18x128xbf16, #tpu.memory_space<vmem>>, vector<1x18x128xbf16>
    %3 = vector.shape_cast %2 : vector<1x18x128xbf16> to vector<18x128xbf16>
    %cst = arith.constant dense<0.000000e+00> : vector<2x128xf32>
    %4 = tpu.matmul %1, %3, %cst {dimension_numbers = #tpu.dot_dimension_numbers<[1], [0], [0], [1], [0, 0, 1, 1], [], []>} : vector<2x18xbf16>, vector<18x128xbf16>, vector<2x128xf32> -> vector<2x128xf32>
    %c0_5 = arith.constant 0 : index
    %c0_6 = arith.constant 0 : index
    %c0_7 = arith.constant 0 : index
    %5 = vector.load %arg3[%c0_5, %c0_6, %c0_7] : memref<1x2x1xf32, #tpu.memory_space<vmem>>, vector<1x2x1xf32>
    %6 = vector.shape_cast %5 : vector<1x2x1xf32> to vector<2x1xf32>
    %7 = vector.broadcast %6 : vector<2x1xf32> to vector<2x128xf32>
    %8 = arith.addf %4, %7 : vector<2x128xf32>
    %cst_8 = arith.constant 0.000000e+00 : f32
    %9 = vector.broadcast %cst_8 : f32 to vector<2x128xf32>
    %10 = arith.cmpf oge, %8, %9 : vector<2x128xf32>
    %cst_9 = arith.constant 0.00999999977 : f32
    %11 = vector.broadcast %cst_9 : f32 to vector<2x128xf32>
    %12 = arith.mulf %11, %8 : vector<2x128xf32>
    %13 = arith.select %10, %8, %12 : vector<2x128xi1>, vector<2x128xf32>
    %14 = vector.extract_strided_slice %13 {offsets = [0, 0], sizes = [1, 128], strides = [1, 1]} : vector<2x128xf32> to vector<1x128xf32>
    %c0_10 = arith.constant 0 : index
    %c0_11 = arith.constant 0 : index
    %c0_12 = arith.constant 0 : index
    %15 = vector.load %arg5[%c0_10, %c0_11, %c0_12] : memref<1x1x128xf32, #tpu.memory_space<vmem>>, vector<1x1x128xf32>
    %16 = vector.shape_cast %15 : vector<1x1x128xf32> to vector<1x128xf32>
    %17 = math.absf %16 : vector<1x128xf32>
    %cst_13 = arith.constant 1.100000e-01 : f32
    %18 = vector.broadcast %cst_13 : f32 to vector<1x128xf32>
    %19 = arith.maximumf %14, %18 : vector<1x128xf32>
    %20 = tpu.reciprocal %19 {approx = true} : vector<1x128xf32> -> vector<1x128xf32>
    %cst_14 = arith.constant 5.000000e-01 : f32
    %21 = vector.broadcast %cst_14 : f32 to vector<1x128xf32>
    %22 = arith.subf %21, %17 : vector<1x128xf32>
    %23 = arith.mulf %22, %20 : vector<1x128xf32>
    %cst_15 = arith.constant 0.707106769 : f32
    %24 = vector.broadcast %cst_15 : f32 to vector<1x128xf32>
    %25 = arith.mulf %23, %24 : vector<1x128xf32>
    %cst_16 = arith.constant 0.000000e+00 : f32
    %26 = vector.broadcast %cst_16 : f32 to vector<1x128xf32>
    %27 = arith.cmpf oge, %25, %26 : vector<1x128xf32>
    %cst_17 = arith.constant 1.000000e+00 : f32
    %cst_18 = arith.constant -1.000000e+00 : f32
    %28 = vector.broadcast %cst_17 : f32 to vector<1x128xf32>
    %29 = vector.broadcast %cst_18 : f32 to vector<1x128xf32>
    %30 = arith.select %27, %28, %29 : vector<1x128xi1>, vector<1x128xf32>
    %31 = math.absf %25 : vector<1x128xf32>
    %cst_19 = arith.constant 0.327591091 : f32
    %32 = vector.broadcast %cst_19 : f32 to vector<1x128xf32>
    %33 = arith.mulf %32, %31 : vector<1x128xf32>
    %cst_20 = arith.constant 1.000000e+00 : f32
    %34 = vector.broadcast %cst_20 : f32 to vector<1x128xf32>
    %35 = arith.addf %34, %33 : vector<1x128xf32>
    %36 = tpu.reciprocal %35 {approx = true} : vector<1x128xf32> -> vector<1x128xf32>
    %cst_21 = arith.constant 1.06140542 : f32
    %37 = vector.broadcast %cst_21 : f32 to vector<1x128xf32>
    %38 = arith.mulf %37, %36 : vector<1x128xf32>
    %cst_22 = arith.constant -1.45315206 : f32
    %39 = vector.broadcast %cst_22 : f32 to vector<1x128xf32>
    %40 = arith.addf %38, %39 : vector<1x128xf32>
    %41 = arith.mulf %40, %36 : vector<1x128xf32>
    %cst_23 = arith.constant 1.42141378 : f32
    %42 = vector.broadcast %cst_23 : f32 to vector<1x128xf32>
    %43 = arith.addf %41, %42 : vector<1x128xf32>
    %44 = arith.mulf %43, %36 : vector<1x128xf32>
    %cst_24 = arith.constant -0.284496725 : f32
    %45 = vector.broadcast %cst_24 : f32 to vector<1x128xf32>
    %46 = arith.addf %44, %45 : vector<1x128xf32>
    %47 = arith.mulf %46, %36 : vector<1x128xf32>
    %cst_25 = arith.constant 0.254829586 : f32
    %48 = vector.broadcast %cst_25 : f32 to vector<1x128xf32>
    %49 = arith.addf %47, %48 : vector<1x128xf32>
    %50 = arith.mulf %49, %36 : vector<1x128xf32>
    %cst_26 = arith.constant 0.000000e+00 : f32
    %51 = vector.broadcast %cst_26 : f32 to vector<1x128xf32>
    %52 = arith.subf %51, %31 : vector<1x128xf32>
    %53 = arith.mulf %52, %31 : vector<1x128xf32>
    %54 = math.exp %53 : vector<1x128xf32>
    %55 = arith.mulf %50, %54 : vector<1x128xf32>
    %cst_27 = arith.constant 1.000000e+00 : f32
    %56 = vector.broadcast %cst_27 : f32 to vector<1x128xf32>
    %57 = arith.subf %56, %55 : vector<1x128xf32>
    %58 = arith.mulf %30, %57 : vector<1x128xf32>
    %cst_28 = arith.constant 1.000000e+00 : f32
    %59 = vector.broadcast %cst_28 : f32 to vector<1x128xf32>
    %60 = arith.addf %59, %58 : vector<1x128xf32>
    %cst_29 = arith.constant 5.000000e-01 : f32
    %61 = vector.broadcast %cst_29 : f32 to vector<1x128xf32>
    %62 = arith.mulf %61, %60 : vector<1x128xf32>
    %cst_30 = arith.constant -5.000000e-01 : f32
    %63 = vector.broadcast %cst_30 : f32 to vector<1x128xf32>
    %64 = arith.subf %63, %17 : vector<1x128xf32>
    %65 = arith.mulf %64, %20 : vector<1x128xf32>
    %cst_31 = arith.constant 0.707106769 : f32
    %66 = vector.broadcast %cst_31 : f32 to vector<1x128xf32>
    %67 = arith.mulf %65, %66 : vector<1x128xf32>
    %cst_32 = arith.constant 0.000000e+00 : f32
    %68 = vector.broadcast %cst_32 : f32 to vector<1x128xf32>
    %69 = arith.cmpf oge, %67, %68 : vector<1x128xf32>
    %cst_33 = arith.constant 1.000000e+00 : f32
    %cst_34 = arith.constant -1.000000e+00 : f32
    %70 = vector.broadcast %cst_33 : f32 to vector<1x128xf32>
    %71 = vector.broadcast %cst_34 : f32 to vector<1x128xf32>
    %72 = arith.select %69, %70, %71 : vector<1x128xi1>, vector<1x128xf32>
    %73 = math.absf %67 : vector<1x128xf32>
    %cst_35 = arith.constant 0.327591091 : f32
    %74 = vector.broadcast %cst_35 : f32 to vector<1x128xf32>
    %75 = arith.mulf %74, %73 : vector<1x128xf32>
    %cst_36 = arith.constant 1.000000e+00 : f32
    %76 = vector.broadcast %cst_36 : f32 to vector<1x128xf32>
    %77 = arith.addf %76, %75 : vector<1x128xf32>
    %78 = tpu.reciprocal %77 {approx = true} : vector<1x128xf32> -> vector<1x128xf32>
    %cst_37 = arith.constant 1.06140542 : f32
    %79 = vector.broadcast %cst_37 : f32 to vector<1x128xf32>
    %80 = arith.mulf %79, %78 : vector<1x128xf32>
    %cst_38 = arith.constant -1.45315206 : f32
    %81 = vector.broadcast %cst_38 : f32 to vector<1x128xf32>
    %82 = arith.addf %80, %81 : vector<1x128xf32>
    %83 = arith.mulf %82, %78 : vector<1x128xf32>
    %cst_39 = arith.constant 1.42141378 : f32
    %84 = vector.broadcast %cst_39 : f32 to vector<1x128xf32>
    %85 = arith.addf %83, %84 : vector<1x128xf32>
    %86 = arith.mulf %85, %78 : vector<1x128xf32>
    %cst_40 = arith.constant -0.284496725 : f32
    %87 = vector.broadcast %cst_40 : f32 to vector<1x128xf32>
    %88 = arith.addf %86, %87 : vector<1x128xf32>
    %89 = arith.mulf %88, %78 : vector<1x128xf32>
    %cst_41 = arith.constant 0.254829586 : f32
    %90 = vector.broadcast %cst_41 : f32 to vector<1x128xf32>
    %91 = arith.addf %89, %90 : vector<1x128xf32>
    %92 = arith.mulf %91, %78 : vector<1x128xf32>
    %cst_42 = arith.constant 0.000000e+00 : f32
    %93 = vector.broadcast %cst_42 : f32 to vector<1x128xf32>
    %94 = arith.subf %93, %73 : vector<1x128xf32>
    %95 = arith.mulf %94, %73 : vector<1x128xf32>
    %96 = math.exp %95 : vector<1x128xf32>
    %97 = arith.mulf %92, %96 : vector<1x128xf32>
    %cst_43 = arith.constant 1.000000e+00 : f32
    %98 = vector.broadcast %cst_43 : f32 to vector<1x128xf32>
    %99 = arith.subf %98, %97 : vector<1x128xf32>
    %100 = arith.mulf %72, %99 : vector<1x128xf32>
    %cst_44 = arith.constant 1.000000e+00 : f32
    %101 = vector.broadcast %cst_44 : f32 to vector<1x128xf32>
    %102 = arith.addf %101, %100 : vector<1x128xf32>
    %cst_45 = arith.constant 5.000000e-01 : f32
    %103 = vector.broadcast %cst_45 : f32 to vector<1x128xf32>
    %104 = arith.mulf %103, %102 : vector<1x128xf32>
    %105 = arith.subf %62, %104 : vector<1x128xf32>
    %cst_46 = arith.constant 9.99999971E-10 : f32
    %106 = vector.broadcast %cst_46 : f32 to vector<1x128xf32>
    %107 = arith.maximumf %105, %106 : vector<1x128xf32>
    %108 = math.log %107 : vector<1x128xf32>
    %cst_47 = arith.constant 0.000000e+00 : f32
    %109 = vector.broadcast %cst_47 : f32 to vector<1x128xf32>
    %110 = arith.subf %109, %108 : vector<1x128xf32>
    %cst_48 = arith.constant 1.44269502 : f32
    %111 = vector.broadcast %cst_48 : f32 to vector<1x128xf32>
    %112 = arith.mulf %110, %111 : vector<1x128xf32>
    %c0_49 = arith.constant 0 : index
    %c0_50 = arith.constant 0 : index
    %c0_51 = arith.constant 0 : index
    %113 = vector.load %arg6[%c0_49, %c0_50, %c0_51] : memref<1x1x128xf32, #tpu.memory_space<vmem>>, vector<1x1x128xf32>
    %114 = vector.shape_cast %113 : vector<1x1x128xf32> to vector<1x128xf32>
    %115 = vector.shape_cast %112 : vector<1x128xf32> to vector<1x1x128xf32>
    tpu.vector_store %arg6[%c0_49, %c0_50, %c0_51], %115 {strides = array<i32>} : memref<1x1x128xf32, #tpu.memory_space<vmem>>, vector<1x1x128xf32>,
    return
  }
  func.func @transform_0(%arg0: i32, %arg1: i32) -> (i32, i32, i32) {
    %c0_i32 = arith.constant 0 : i32
    %c0_i32_0 = arith.constant 0 : i32
    %c0_i32_1 = arith.constant 0 : i32
    return %arg0, %c0_i32, %c0_i32_0 : i32, i32, i32
  }
  func.func @transform_1(%arg0: i32, %arg1: i32) -> (i32, i32, i32) {
    %c0_i32 = arith.constant 0 : i32
    %c0_i32_0 = arith.constant 0 : i32
    %c0_i32_1 = arith.constant 0 : i32
    return %arg0, %c0_i32, %c0_i32_0 : i32, i32, i32
  }
  func.func @transform_2(%arg0: i32, %arg1: i32) -> (i32, i32, i32) {
    %c0_i32 = arith.constant 0 : i32
    %c0_i32_0 = arith.constant 0 : i32
    return %arg0, %c0_i32, %arg1 : i32, i32, i32
  }
  func.func @transform_3(%arg0: i32, %arg1: i32) -> (i32, i32, i32) {
    %c0_i32 = arith.constant 0 : i32
    %c0_i32_0 = arith.constant 0 : i32
    return %arg0, %c0_i32, %arg1 : i32, i32, i32
  }
  func.func @transform_4(%arg0: i32, %arg1: i32) -> (i32, i32, i32) {
    %c0_i32 = arith.constant 0 : i32
    %c0_i32_0 = arith.constant 0 : i32
    return %arg0, %c0_i32, %arg1 : i32, i32, i32
  }
}

module attributes {stable_mosaic.version = 11 : i64} {
  func.func @_gemm_kernel(%arg0: i32, %arg1: i32, %arg2: memref<1x2x18xbf16, #tpu.memory_space<vmem>>, %arg3: memref<1x2x1xf32, #tpu.memory_space<vmem>>, %arg4: memref<1x18x128xbf16, #tpu.memory_space<vmem>>, %arg5: memref<1x2x128xbf16, #tpu.memory_space<vmem>>) attributes {dimension_semantics = [#tpu.dimension_semantics<parallel>, #tpu.dimension_semantics<parallel>], iteration_bounds = array<i64: 1, 1>, scalar_prefetch = 0 : i64, scratch_operands = 0 : i64, tpu.core_type = #tpu.core_type<tc>, window_params = [{transform_indices = @transform_0, window_bounds = array<i64: 1, 2, 18>}, {transform_indices = @transform_1, window_bounds = array<i64: 1, 2, 1>}, {transform_indices = @transform_2, window_bounds = array<i64: 1, 18, 128>}, {transform_indices = @transform_3, window_bounds = array<i64: 1, 2, 128>}]} {
    %c0 = arith.constant 0 : index
    %c0_0 = arith.constant 0 : index
    %c0_1 = arith.constant 0 : index
    %0 = vector.load %arg2[%c0, %c0_0, %c0_1] : memref<1x2x18xbf16, #tpu.memory_space<vmem>>, vector<1x2x18xbf16>
    %1 = vector.shape_cast %0 : vector<1x2x18xbf16> to vector<2x18xbf16>
    %c0_2 = arith.constant 0 : index
    %c0_3 = arith.constant 0 : index
    %c0_4 = arith.constant 0 : index
    %2 = vector.load %arg4[%c0_2, %c0_3, %c0_4] : memref<1x18x128xbf16, #tpu.memory_space<vmem>>, vector<1x18x128xbf16>
    %3 = vector.shape_cast %2 : vector<1x18x128xbf16> to vector<18x128xbf16>
    %cst = arith.constant dense<0.000000e+00> : vector<2x128xf32>
    %4 = tpu.matmul %1, %3, %cst {dimension_numbers = #tpu.dot_dimension_numbers<[1], [0], [0], [1], [0, 0, 1, 1], [], []>} : vector<2x18xbf16>, vector<18x128xbf16>, vector<2x128xf32> -> vector<2x128xf32>
    %c0_5 = arith.constant 0 : index
    %c0_6 = arith.constant 0 : index
    %c0_7 = arith.constant 0 : index
    %5 = vector.load %arg3[%c0_5, %c0_6, %c0_7] : memref<1x2x1xf32, #tpu.memory_space<vmem>>, vector<1x2x1xf32>
    %6 = vector.shape_cast %5 : vector<1x2x1xf32> to vector<2x1xf32>
    %7 = vector.broadcast %6 : vector<2x1xf32> to vector<2x128xf32>
    %8 = arith.addf %4, %7 : vector<2x128xf32>
    %cst_8 = arith.constant 0.000000e+00 : f32
    %9 = vector.broadcast %cst_8 : f32 to vector<2x128xf32>
    %10 = arith.cmpf oge, %8, %9 : vector<2x128xf32>
    %cst_9 = arith.constant 0.00999999977 : f32
    %11 = vector.broadcast %cst_9 : f32 to vector<2x128xf32>
    %12 = arith.mulf %11, %8 : vector<2x128xf32>
    %13 = arith.select %10, %8, %12 : vector<2x128xi1>, vector<2x128xf32>
    %14 = arith.truncf %13 : vector<2x128xf32> to vector<2x128xbf16>
    %c0_10 = arith.constant 0 : index
    %c0_11 = arith.constant 0 : index
    %c0_12 = arith.constant 0 : index
    %15 = vector.load %arg5[%c0_10, %c0_11, %c0_12] : memref<1x2x128xbf16, #tpu.memory_space<vmem>>, vector<1x2x128xbf16>
    %16 = vector.shape_cast %15 : vector<1x2x128xbf16> to vector<2x128xbf16>
    %17 = vector.shape_cast %14 : vector<2x128xbf16> to vector<1x2x128xbf16>
    tpu.vector_store %arg5[%c0_10, %c0_11, %c0_12], %17 {strides = array<i32>} : memref<1x2x128xbf16, #tpu.memory_space<vmem>>, vector<1x2x128xbf16>,
    return
  }
  func.func @transform_0(%arg0: i32, %arg1: i32) -> (i32, i32, i32) {
    %c0_i32 = arith.constant 0 : i32
    %c0_i32_0 = arith.constant 0 : i32
    %c0_i32_1 = arith.constant 0 : i32
    return %arg0, %c0_i32, %c0_i32_0 : i32, i32, i32
  }
  func.func @transform_1(%arg0: i32, %arg1: i32) -> (i32, i32, i32) {
    %c0_i32 = arith.constant 0 : i32
    %c0_i32_0 = arith.constant 0 : i32
    %c0_i32_1 = arith.constant 0 : i32
    return %arg0, %c0_i32, %c0_i32_0 : i32, i32, i32
  }
  func.func @transform_2(%arg0: i32, %arg1: i32) -> (i32, i32, i32) {
    %c0_i32 = arith.constant 0 : i32
    %c0_i32_0 = arith.constant 0 : i32
    return %arg0, %c0_i32, %arg1 : i32, i32, i32
  }
  func.func @transform_3(%arg0: i32, %arg1: i32) -> (i32, i32, i32) {
    %c0_i32 = arith.constant 0 : i32
    %c0_i32_0 = arith.constant 0 : i32
    return %arg0, %c0_i32, %arg1 : i32, i32, i32
  }
}

</mosaic_0001>

<bundles_post_ra>
// kernel: forward.17
= control target key start
LH: loop header
LB: loop body
LE: loop exit
PB: predicated region body
PF: predicated region fallthrough
CT: control target
= control target key end

     0   :  { %vm66_vm0 = vcmask 1044480   ;;  %vm67_vm1 = vcmask 1045504   ;;  %v187_v1 = vmov 65535   ;;  %vm59_vm2 = vcmask 220160   ;;  %s238_s2 = inlined_call_operand.vmem [shape: bf16[1,27,128], index: 2, kind: input, shape index: {}]   ;;  %s239_s0 = inlined_call_operand.vmem [shape: bf16[1,24,27], index: 0, kind: input, shape index: {}]   ;;  %s240_s1 = inlined_call_operand.vmem [shape: f32[1,24,1], index: 1, kind: input, shape index: {}]   ;;  %s241_s3 = inlined_call_operand.vmem [shape: bf16[1,24,128], index: 3, kind: output, shape index: {}]  }
   0x1   :  { %v183_v0 = vld [vmem:[%s238_s2 + $0x8] sm:$0x3f]   ;;  %v68_v2 = vsel %vm66_vm0, 4294967295, %v187_v1  ;;  %v185_v4 = vld [vmem:[%s239_s0] sm:$0xff]   ;;  %v188_v8 = vmov 0   ;;  %v24_v9 = vld [vmem:[%s240_s1 + $0x10] sm:$0xff] }
   0x2   :  { %v69_v3 = vsel %vm67_vm1, %v68_v2, 0  ;;  %v184_v6 = vld [vmem:[%s238_s2] sm:$0xff]   ;;  %175 = vmatprep.mubr.msk.bf16.mxu0 %vm59_vm2, %v185_v4  ;;  %181 = vset.pattern.permute.xlu0 %v188_v8  ;;  %v23_v10 = vld [vmem:[%s240_s1 + $0x8] sm:$0xff] }
   0x3   :  { %v71_v5 = vand.u32 %v183_v0, %v69_v3  ;;  %v22_v7 = vld [vmem:[%s240_s1] sm:$0xff]  ;;  %182 = vset.pattern.permute.xlu1 %v188_v8  ;;  %v186_v11 = vld [vmem:[%s239_s0 + $0x8] ss:$0 sps:$4 sm:$0xff]  }
   0x4   :  { %27 = vperm.xlu0 %181, %v22_v7   ;;  %37 = vperm.xlu1 %182, %v24_v9  }
   0x5   :  { %171 = vmatprep.subr.bf16.mxu0 %v71_v5 }
   0x6   :  { %172 = vmatpush3.bf16.msra.mxu0 %v71_v5 }
   0x7   :  { %173 = vmatprep.subr.bf16.mxu0 %v184_v6 }
   0x8   :  { %32 = vperm.xlu0 %181, %v23_v10  }
   0xa   :  { %174 = vmatpush3.bf16.msra.mxu0 %v184_v6 }
   0xd   :  { %176 = vmatmul.mubr.msk.bf16.vlgmr.msra.gmra.mxu0 %vm59_vm2, %v186_v11 }
  0x7f   :  { %v38_v12 = vpop.permute.xlu1 %37  ;;  %v28_v13 = vpop.permute.xlu0 %27 }
  0x83   :  { %v33_v22 = vpop.permute.xlu0 %32 }
  0xcd   :  { %v177_v14 = vpop.f32.mrf.mxu0 }
  0xce   :  { %v116_v15 = vadd.f32 %v177_v14, %v38_v12 }
  0xcf   :  { %v107_v16 = vpop.f32.mrf.mxu0 }
  0xd0   :  { %vm123_vm3 = vcmp.ge.f32.partialorder %v116_v15, 0.0  ;;  %v126_v17 = vmul.f32 0.01, %v116_v15  ;;  %v108_v18 = vadd.f32 %v107_v16, %v28_v13 }
  0xd1   :  { %v178_v19 = vpop.f32.mrf.mxu0 }
  0xd2   :  { %v129_v20 = vsel %vm123_vm3, %v116_v15, %v126_v17  ;;  %v124_v24 = vmul.f32 0.01, %v108_v18  ;;  %vm121_vm4 = vcmp.ge.f32.partialorder %v108_v18, 0.0 }
  0xd3   :  { %v161_v21 = vpack.c.bf16 %v129_v20, %v129_v20  ;;  %v110_v23 = vpop.f32.mrf.mxu0 }
  0xd4   :  { %v111_v25 = vadd.f32 %v110_v23, %v33_v22  ;;  %v127_v27 = vsel %vm121_vm4, %v108_v18, %v124_v24 }
  0xd5   :  { %145 = vst [vmem:[%s241_s3 + $0x8] sm:$0xf] %v161_v21 }
  0xd6   :  { %vm122_vm5 = vcmp.ge.f32.partialorder %v111_v25, 0.0  ;;  %v125_v26 = vmul.f32 0.01, %v111_v25 }
  0xd8   :  { %v128_v28 = vsel %vm122_vm5, %v111_v25, %v125_v26 }
  0xd9   :  { %v165_v29 = vpack.c.bf16 %v128_v28, %v127_v27 }
  0xdb   :  { %166 = vst [vmem:[%s241_s3] sm:$0xff] %v165_v29  }

// kernel: squeeze.19
= control target key start
LH: loop header
LB: loop body
LE: loop exit
PB: predicated region body
PF: predicated region fallthrough
CT: control target
= control target key end

     0   :  { %vm35_vm0 = vcmask 64512   ;;  %s767_s8 = smov 104   ;;  %s768_s9 = smov 112   ;;  %s947_s0 = inlined_call_operand.vmem [shape: bf16[1,12,128], index: 0, kind: input, shape index: {}]   ;;  %s948_s1 = inlined_call_operand.vmem [shape: bf16[12,2,8,8], index: 1, kind: output, shape index: {}]  }
   0x1   :  { %v602_v0 = vld [vmem:[%s947_s0] sm:$0xff]   ;;  %s766_s0 = smov 120   ;;  %s769_s10 = smov 96  }
   0x2   :  { %v794_v1 = vunpack.c.l.bf16 %v602_v0  ;;  %v604_v2 = vunpack.c.h.bf16 %v602_v0  ;;  %s770_s11 = smov 88   ;;  %s771_s12 = smov 80  }
   0x3   :  { %s772_s13 = smov 72   ;;  %s773_s14 = smov 64  }
   0x4   :  { %20 = vst [vmem:[#allocation1 + $0x8] sm:$0xff] %v604_v2  ;;  %39 = vst.msk [vmem:[#allocation0] ss:$16 sm:$0xc0] %vm35_vm0, %v794_v1   ;;  %s774_s15 = smov 56   ;;  %s775_s16 = smov 48  }
   0x5   :  { %36 = vst.msk [vmem:[#allocation0] ss:$16 sm:$0x3] %vm35_vm0, %v794_v1   ;;  %37 = vst.msk [vmem:[#allocation0] ss:$16 sm:$0xc] %vm35_vm0, %v794_v1  }
   0x6   :  { %38 = vst.msk [vmem:[#allocation0] ss:$16 sm:$0x30] %vm35_vm0, %v794_v1   ;;  %s776_s17 = smov 40   ;;  %s777_s18 = smov 32  }
   0x7   :  { %s778_s19 = smov 24   ;;  %s779_s20 = smov 16  }
   0x8   :  { %s780_s21 = smov 8  }
   0xb   :  { %v60_v3 = vld [vmem:[#allocation1 + $0x8] sm:$0xf]  }
   0xc   :  { %v102_v4 = vld [vmem:[#allocation1 + $0x8] sm:$0xf]   ;;  %v691_v6 = vpack.i.bf16 %v60_v3, %v794_v1 }
   0xd   :  { %v81_v5 = vld [vmem:[#allocation1 + $0x8] sm:$0xf]   ;;  %v701_v7 = vpack.i.bf16 %v102_v4, %v794_v1 }
   0xe   :  { %v123_v8 = vld [vmem:[#allocation1 + $0x8] sm:$0xf]   ;;  %692 = vrot.lane.b32.xlu0 %v691_v6, %s766_s0  ;;  %v696_v9 = vpack.i.bf16 %v81_v5, %v794_v1 }
   0xf   :  { %702 = vrot.lane.b32.xlu1 %v701_v7, %s767_s8  ;;  %v706_v10 = vpack.i.bf16 %v123_v8, %v794_v1  ;;  %v144_v11 = vld [vmem:[#allocation1 + $0x8] sm:$0xf]  }
  0x10   :  { %v165_v12 = vld [vmem:[#allocation1 + $0x8] sm:$0xf]   ;;  %v711_v14 = vpack.i.bf16 %v144_v11, %v794_v1 }
  0x11   :  { %v41_v13 = vld [vmem:[#allocation1 + $0x8] sm:$0xf]   ;;  %v716_v15 = vpack.i.bf16 %v165_v12, %v794_v1 }
  0x12   :  { %46 = vst.msk [vmem:[#allocation0 + $0x80] ss:$16 sm:$0xc] %vm35_vm0, %v41_v13   ;;  %44 = vst.msk [vmem:[#allocation0 + $0x80] ss:$16 sm:$0x3] %vm35_vm0, %v41_v13   ;;  %697 = vrot.lane.b32.xlu0 %v696_v9, %s768_s9 }
  0x13   :  { %707 = vrot.lane.b32.xlu1 %v706_v10, %s769_s10  ;;  %v186_v16 = vld [vmem:[#allocation1 + $0x8] sm:$0xf]  }
  0x14   :  { %v207_v17 = vld [vmem:[#allocation1 + $0x8] sm:$0xf]   ;;  %v721_v18 = vpack.i.bf16 %v186_v16, %v794_v1 }
  0x15   :  { %v726_v19 = vpack.i.bf16 %v207_v17, %v794_v1  ;;  %v228_v20 = vld [vmem:[#allocation1 + $0x8] sm:$0xf]  }
  0x16   :  { %712 = vrot.lane.b32.xlu0 %v711_v14, %s770_s11  ;;  %v249_v21 = vld [vmem:[#allocation1 + $0x8] sm:$0xf]   ;;  %v731_v22 = vpack.i.bf16 %v228_v20, %v794_v1 }
  0x17   :  { %717 = vrot.lane.b32.xlu1 %v716_v15, %s771_s12  ;;  %v736_v23 = vpack.i.bf16 %v249_v21, %v794_v1  ;;  %v270_v24 = vld [vmem:[#allocation1 + $0x8] sm:$0xf]  }
  0x18   :  { %v291_v25 = vld [vmem:[#allocation1 + $0x8] sm:$0xf]   ;;  %v741_v26 = vpack.i.bf16 %v270_v24, %v794_v1 }
  0x19   :  { %v746_v27 = vpack.i.bf16 %v291_v25, %v794_v1  ;;  %v312_v28 = vld [vmem:[#allocation1 + $0x8] sm:$0xf]  }
  0x1a   :  { %722 = vrot.lane.b32.xlu0 %v721_v18, %s772_s13  ;;  %v333_v29 = vld [vmem:[#allocation1 + $0x8] sm:$0xf]   ;;  %v751_v30 = vpack.i.bf16 %v312_v28, %v794_v1 }
  0x1b   :  { %727 = vrot.lane.b32.xlu1 %v726_v19, %s773_s14  ;;  %v756_v31 = vpack.i.bf16 %v333_v29, %v794_v1  ;;  %v354_v32 = vld [vmem:[#allocation1 + $0x8] sm:$0xf]  }
  0x1c   :  { %v761_v33 = vpack.i.bf16 %v354_v32, %v794_v1 }
  0x1e   :  { %732 = vrot.lane.b32.xlu0 %v731_v22, %s774_s15 }
  0x1f   :  { %737 = vrot.lane.b32.xlu1 %v736_v23, %s775_s16 }
  0x22   :  { %742 = vrot.lane.b32.xlu0 %v741_v26, %s776_s17 }
  0x23   :  { %747 = vrot.lane.b32.xlu1 %v746_v27, %s777_s18 }
  0x26   :  { %752 = vrot.lane.b32.xlu0 %v751_v30, %s778_s19 }
  0x27   :  { %757 = vrot.lane.b32.xlu1 %v756_v31, %s779_s20 }
  0x2a   :  { %762 = vrot.lane.b32.xlu0 %v761_v33, %s780_s21 }
  0x80   :  { %v693_v34 = vpop.permute.xlu0 %692 }
  0x81   :  { %v703_v35 = vpop.permute.xlu1 %702  ;;  %v695_v36 = vunpack.i.h.bf16 %v693_v34  ;;  %v694_v37 = vunpack.i.l.bf16 %v693_v34 }
  0x82   :  { %v705_v38 = vunpack.i.h.bf16 %v703_v35  ;;  %v704_v39 = vunpack.i.l.bf16 %v703_v35 }
  0x83   :  { %65 = vst.msk [vmem:[#allocation0 + $0x81] ss:$16 sm:$0x3] %vm35_vm0, %v695_v36   ;;  %67 = vst.msk [vmem:[#allocation0 + $0x81] ss:$16 sm:$0xc] %vm35_vm0, %v695_v36  }
  0x84   :  { %52 = vst.msk [vmem:[#allocation0 + $0x1] ss:$16 sm:$0x3] %vm35_vm0, %v694_v37   ;;  %54 = vst.msk [vmem:[#allocation0 + $0x1] ss:$16 sm:$0xc] %vm35_vm0, %v694_v37   ;;  %v698_v40 = vpop.permute.xlu0 %697 }
  0x85   :  { %56 = vst.msk [vmem:[#allocation0 + $0x1] ss:$16 sm:$0x30] %vm35_vm0, %v694_v37   ;;  %58 = vst.msk [vmem:[#allocation0 + $0x1] ss:$16 sm:$0xc0] %vm35_vm0, %v694_v37   ;;  %v708_v41 = vpop.permute.xlu1 %707  ;;  %v700_v42 = vunpack.i.h.bf16 %v698_v40  ;;  %v699_v43 = vunpack.i.l.bf16 %v698_v40 }
  0x86   :  { %107 = vst.msk [vmem:[#allocation0 + $0x83] ss:$16 sm:$0x3] %vm35_vm0, %v705_v38   ;;  %109 = vst.msk [vmem:[#allocation0 + $0x83] ss:$16 sm:$0xc] %vm35_vm0, %v705_v38   ;;  %v710_v44 = vunpack.i.h.bf16 %v708_v41  ;;  %v709_v45 = vunpack.i.l.bf16 %v708_v41 }
  0x87   :  { %94 = vst.msk [vmem:[#allocation0 + $0x3] ss:$16 sm:$0x3] %vm35_vm0, %v704_v39   ;;  %96 = vst.msk [vmem:[#allocation0 + $0x3] ss:$16 sm:$0xc] %vm35_vm0, %v704_v39  }
  0x88   :  { %98 = vst.msk [vmem:[#allocation0 + $0x3] ss:$16 sm:$0x30] %vm35_vm0, %v704_v39   ;;  %100 = vst.msk [vmem:[#allocation0 + $0x3] ss:$16 sm:$0xc0] %vm35_vm0, %v704_v39   ;;  %v713_v46 = vpop.permute.xlu0 %712 }
  0x89   :  { %86 = vst.msk [vmem:[#allocation0 + $0x82] ss:$16 sm:$0x3] %vm35_vm0, %v700_v42   ;;  %88 = vst.msk [vmem:[#allocation0 + $0x82] ss:$16 sm:$0xc] %vm35_vm0, %v700_v42   ;;  %v718_v47 = vpop.permute.xlu1 %717  ;;  %v715_v48 = vunpack.i.h.bf16 %v713_v46  ;;  %v714_v49 = vunpack.i.l.bf16 %v713_v46 }
  0x8a   :  { %73 = vst.msk [vmem:[#allocation0 + $0x2] ss:$16 sm:$0x3] %vm35_vm0, %v699_v43   ;;  %75 = vst.msk [vmem:[#allocation0 + $0x2] ss:$16 sm:$0xc] %vm35_vm0, %v699_v43   ;;  %v720_v50 = vunpack.i.h.bf16 %v718_v47  ;;  %v719_v51 = vunpack.i.l.bf16 %v718_v47 }
  0x8b   :  { %77 = vst.msk [vmem:[#allocation0 + $0x2] ss:$16 sm:$0x30] %vm35_vm0, %v699_v43   ;;  %79 = vst.msk [vmem:[#allocation0 + $0x2] ss:$16 sm:$0xc0] %vm35_vm0, %v699_v43  }
  0x8c   :  { %128 = vst.msk [vmem:[#allocation0 + $0x84] ss:$16 sm:$0x3] %vm35_vm0, %v710_v44   ;;  %130 = vst.msk [vmem:[#allocation0 + $0x84] ss:$16 sm:$0xc] %vm35_vm0, %v710_v44   ;;  %v723_v52 = vpop.permute.xlu0 %722 }
  0x8d   :  { %115 = vst.msk [vmem:[#allocation0 + $0x4] ss:$16 sm:$0x3] %vm35_vm0, %v709_v45   ;;  %117 = vst.msk [vmem:[#allocation0 + $0x4] ss:$16 sm:$0xc] %vm35_vm0, %v709_v45   ;;  %v728_v53 = vpop.permute.xlu1 %727  ;;  %v725_v54 = vunpack.i.h.bf16 %v723_v52  ;;  %v724_v55 = vunpack.i.l.bf16 %v723_v52 }
  0x8e   :  { %119 = vst.msk [vmem:[#allocation0 + $0x4] ss:$16 sm:$0x30] %vm35_vm0, %v709_v45   ;;  %121 = vst.msk [vmem:[#allocation0 + $0x4] ss:$16 sm:$0xc0] %vm35_vm0, %v709_v45   ;;  %v730_v56 = vunpack.i.h.bf16 %v728_v53  ;;  %v729_v57 = vunpack.i.l.bf16 %v728_v53 }
  0x8f   :  { %149 = vst.msk [vmem:[#allocation0 + $0x85] ss:$16 sm:$0x3] %vm35_vm0, %v715_v48   ;;  %151 = vst.msk [vmem:[#allocation0 + $0x85] ss:$16 sm:$0xc] %vm35_vm0, %v715_v48  }
  0x90   :  { %136 = vst.msk [vmem:[#allocation0 + $0x5] ss:$16 sm:$0x3] %vm35_vm0, %v714_v49   ;;  %138 = vst.msk [vmem:[#allocation0 + $0x5] ss:$16 sm:$0xc] %vm35_vm0, %v714_v49   ;;  %v733_v58 = vpop.permute.xlu0 %732 }
  0x91   :  { %140 = vst.msk [vmem:[#allocation0 + $0x5] ss:$16 sm:$0x30] %vm35_vm0, %v714_v49   ;;  %142 = vst.msk [vmem:[#allocation0 + $0x5] ss:$16 sm:$0xc0] %vm35_vm0, %v714_v49   ;;  %v738_v59 = vpop.permute.xlu1 %737  ;;  %v735_v60 = vunpack.i.h.bf16 %v733_v58  ;;  %v734_v61 = vunpack.i.l.bf16 %v733_v58 }
  0x92   :  { %170 = vst.msk [vmem:[#allocation0 + $0x86] ss:$16 sm:$0x3] %vm35_vm0, %v720_v50   ;;  %172 = vst.msk [vmem:[#allocation0 + $0x86] ss:$16 sm:$0xc] %vm35_vm0, %v720_v50   ;;  %v740_v62 = vunpack.i.h.bf16 %v738_v59  ;;  %v739_v63 = vunpack.i.l.bf16 %v738_v59 }
  0x93   :  { %157 = vst.msk [vmem:[#allocation0 + $0x6] ss:$16 sm:$0x3] %vm35_vm0, %v719_v51   ;;  %159 = vst.msk [vmem:[#allocation0 + $0x6] ss:$16 sm:$0xc] %vm35_vm0, %v719_v51  }
  0x94   :  { %161 = vst.msk [vmem:[#allocation0 + $0x6] ss:$16 sm:$0x30] %vm35_vm0, %v719_v51   ;;  %163 = vst.msk [vmem:[#allocation0 + $0x6] ss:$16 sm:$0xc0] %vm35_vm0, %v719_v51   ;;  %v743_v0 = vpop.permute.xlu0 %742 }
  0x95   :  { %191 = vst.msk [vmem:[#allocation0 + $0x87] ss:$16 sm:$0x3] %vm35_vm0, %v725_v54   ;;  %193 = vst.msk [vmem:[#allocation0 + $0x87] ss:$16 sm:$0xc] %vm35_vm0, %v725_v54   ;;  %v748_v1 = vpop.permute.xlu1 %747  ;;  %v745_v2 = vunpack.i.h.bf16 %v743_v0  ;;  %v744_v3 = vunpack.i.l.bf16 %v743_v0 }
  0x96   :  { %178 = vst.msk [vmem:[#allocation0 + $0x7] ss:$16 sm:$0x3] %vm35_vm0, %v724_v55   ;;  %180 = vst.msk [vmem:[#allocation0 + $0x7] ss:$16 sm:$0xc] %vm35_vm0, %v724_v55   ;;  %v750_v4 = vunpack.i.h.bf16 %v748_v1  ;;  %v749_v5 = vunpack.i.l.bf16 %v748_v1 }
  0x97   :  { %182 = vst.msk [vmem:[#allocation0 + $0x7] ss:$16 sm:$0x30] %vm35_vm0, %v724_v55   ;;  %184 = vst.msk [vmem:[#allocation0 + $0x7] ss:$16 sm:$0xc0] %vm35_vm0, %v724_v55  }
  0x98   :  { %212 = vst.msk [vmem:[#allocation0 + $0x88] ss:$16 sm:$0x3] %vm35_vm0, %v730_v56   ;;  %214 = vst.msk [vmem:[#allocation0 + $0x88] ss:$16 sm:$0xc] %vm35_vm0, %v730_v56   ;;  %v753_v6 = vpop.permute.xlu0 %752 }
  0x99   :  { %199 = vst.msk [vmem:[#allocation0 + $0x8] ss:$16 sm:$0x3] %vm35_vm0, %v729_v57   ;;  %201 = vst.msk [vmem:[#allocation0 + $0x8] ss:$16 sm:$0xc] %vm35_vm0, %v729_v57   ;;  %v758_v7 = vpop.permute.xlu1 %757  ;;  %v755_v8 = vunpack.i.h.bf16 %v753_v6  ;;  %v754_v9 = vunpack.i.l.bf16 %v753_v6 }
  0x9a   :  { %203 = vst.msk [vmem:[#allocation0 + $0x8] ss:$16 sm:$0x30] %vm35_vm0, %v729_v57   ;;  %205 = vst.msk [vmem:[#allocation0 + $0x8] ss:$16 sm:$0xc0] %vm35_vm0, %v729_v57   ;;  %v760_v10 = vunpack.i.h.bf16 %v758_v7  ;;  %v759_v11 = vunpack.i.l.bf16 %v758_v7 }
  0x9b   :  { %233 = vst.msk [vmem:[#allocation0 + $0x89] ss:$16 sm:$0x3] %vm35_vm0, %v735_v60   ;;  %235 = vst.msk [vmem:[#allocation0 + $0x89] ss:$16 sm:$0xc] %vm35_vm0, %v735_v60  }
  0x9c   :  { %220 = vst.msk [vmem:[#allocation0 + $0x9] ss:$16 sm:$0x3] %vm35_vm0, %v734_v61   ;;  %222 = vst.msk [vmem:[#allocation0 + $0x9] ss:$16 sm:$0xc] %vm35_vm0, %v734_v61   ;;  %v763_v12 = vpop.permute.xlu0 %762 }
  0x9d   :  { %224 = vst.msk [vmem:[#allocation0 + $0x9] ss:$16 sm:$0x30] %vm35_vm0, %v734_v61   ;;  %226 = vst.msk [vmem:[#allocation0 + $0x9] ss:$16 sm:$0xc0] %vm35_vm0, %v734_v61   ;;  %v765_v13 = vunpack.i.h.bf16 %v763_v12  ;;  %v764_v14 = vunpack.i.l.bf16 %v763_v12 }
  0x9e   :  { %254 = vst.msk [vmem:[#allocation0 + $0x8a] ss:$16 sm:$0x3] %vm35_vm0, %v740_v62   ;;  %256 = vst.msk [vmem:[#allocation0 + $0x8a] ss:$16 sm:$0xc] %vm35_vm0, %v740_v62  }
  0x9f   :  { %241 = vst.msk [vmem:[#allocation0 + $0xa] ss:$16 sm:$0x3] %vm35_vm0, %v739_v63   ;;  %243 = vst.msk [vmem:[#allocation0 + $0xa] ss:$16 sm:$0xc] %vm35_vm0, %v739_v63  }
  0xa0   :  { %245 = vst.msk [vmem:[#allocation0 + $0xa] ss:$16 sm:$0x30] %vm35_vm0, %v739_v63   ;;  %247 = vst.msk [vmem:[#allocation0 + $0xa] ss:$16 sm:$0xc0] %vm35_vm0, %v739_v63  }
  0xa1   :  { %275 = vst.msk [vmem:[#allocation0 + $0x8b] ss:$16 sm:$0x3] %vm35_vm0, %v745_v2   ;;  %277 = vst.msk [vmem:[#allocation0 + $0x8b] ss:$16 sm:$0xc] %vm35_vm0, %v745_v2  }
  0xa2   :  { %262 = vst.msk [vmem:[#allocation0 + $0xb] ss:$16 sm:$0x3] %vm35_vm0, %v744_v3   ;;  %264 = vst.msk [vmem:[#allocation0 + $0xb] ss:$16 sm:$0xc] %vm35_vm0, %v744_v3  }
  0xa3   :  { %266 = vst.msk [vmem:[#allocation0 + $0xb] ss:$16 sm:$0x30] %vm35_vm0, %v744_v3   ;;  %268 = vst.msk [vmem:[#allocation0 + $0xb] ss:$16 sm:$0xc0] %vm35_vm0, %v744_v3  }
  0xa4   :  { %296 = vst.msk [vmem:[#allocation0 + $0x8c] ss:$16 sm:$0x3] %vm35_vm0, %v750_v4   ;;  %298 = vst.msk [vmem:[#allocation0 + $0x8c] ss:$16 sm:$0xc] %vm35_vm0, %v750_v4  }
  0xa5   :  { %283 = vst.msk [vmem:[#allocation0 + $0xc] ss:$16 sm:$0x3] %vm35_vm0, %v749_v5   ;;  %285 = vst.msk [vmem:[#allocation0 + $0xc] ss:$16 sm:$0xc] %vm35_vm0, %v749_v5  }
  0xa6   :  { %287 = vst.msk [vmem:[#allocation0 + $0xc] ss:$16 sm:$0x30] %vm35_vm0, %v749_v5   ;;  %289 = vst.msk [vmem:[#allocation0 + $0xc] ss:$16 sm:$0xc0] %vm35_vm0, %v749_v5  }
  0xa7   :  { %317 = vst.msk [vmem:[#allocation0 + $0x8d] ss:$16 sm:$0x3] %vm35_vm0, %v755_v8   ;;  %319 = vst.msk [vmem:[#allocation0 + $0x8d] ss:$16 sm:$0xc] %vm35_vm0, %v755_v8  }
  0xa8   :  { %304 = vst.msk [vmem:[#allocation0 + $0xd] ss:$16 sm:$0x3] %vm35_vm0, %v754_v9   ;;  %306 = vst.msk [vmem:[#allocation0 + $0xd] ss:$16 sm:$0xc] %vm35_vm0, %v754_v9  }
  0xa9   :  { %308 = vst.msk [vmem:[#allocation0 + $0xd] ss:$16 sm:$0x30] %vm35_vm0, %v754_v9   ;;  %310 = vst.msk [vmem:[#allocation0 + $0xd] ss:$16 sm:$0xc0] %vm35_vm0, %v754_v9  }
  0xaa   :  { %338 = vst.msk [vmem:[#allocation0 + $0x8e] ss:$16 sm:$0x3] %vm35_vm0, %v760_v10   ;;  %340 = vst.msk [vmem:[#allocation0 + $0x8e] ss:$16 sm:$0xc] %vm35_vm0, %v760_v10  }
  0xab   :  { %325 = vst.msk [vmem:[#allocation0 + $0xe] ss:$16 sm:$0x3] %vm35_vm0, %v759_v11   ;;  %327 = vst.msk [vmem:[#allocation0 + $0xe] ss:$16 sm:$0xc] %vm35_vm0, %v759_v11  }
  0xac   :  { %329 = vst.msk [vmem:[#allocation0 + $0xe] ss:$16 sm:$0x30] %vm35_vm0, %v759_v11   ;;  %331 = vst.msk [vmem:[#allocation0 + $0xe] ss:$16 sm:$0xc0] %vm35_vm0, %v759_v11  }
  0xad   :  { %359 = vst.msk [vmem:[#allocation0 + $0x8f] ss:$16 sm:$0x3] %vm35_vm0, %v765_v13   ;;  %361 = vst.msk [vmem:[#allocation0 + $0x8f] ss:$16 sm:$0xc] %vm35_vm0, %v765_v13  }
  0xae   :  { %346 = vst.msk [vmem:[#allocation0 + $0xf] ss:$16 sm:$0x3] %vm35_vm0, %v764_v14   ;;  %348 = vst.msk [vmem:[#allocation0 + $0xf] ss:$16 sm:$0xc] %vm35_vm0, %v764_v14  }
  0xaf   :  { %350 = vst.msk [vmem:[#allocation0 + $0xf] ss:$16 sm:$0x30] %vm35_vm0, %v764_v14   ;;  %352 = vst.msk [vmem:[#allocation0 + $0xf] ss:$16 sm:$0xc0] %vm35_vm0, %v764_v14  }
  0xb0   :  { %v428_v15 = vld [vmem:[#allocation0 + $0x40] sm:$0xff]  ;;  %v444_v16 = vld [vmem:[#allocation0 + $0x50] sm:$0xff] }
  0xb1   :  { %v460_v17 = vld [vmem:[#allocation0 + $0x60] sm:$0xff]  ;;  %v476_v18 = vld [vmem:[#allocation0 + $0x70] sm:$0xff] }
  0xb2   :  { %v492_v19 = vld [vmem:[#allocation0 + $0x80] sm:$0xff]  ;;  %v508_v20 = vld [vmem:[#allocation0 + $0x90] sm:$0xff] }
  0xb3   :  { %v367_v21 = vld [vmem:[#allocation0] sm:$0xff]  ;;  %v540_v23 = vld [vmem:[#allocation0 + $0xb0] sm:$0xff] }
  0xb4   :  { %v524_v22 = vld [vmem:[#allocation0 + $0xa0] sm:$0xff]  ;;  %v380_v27 = vld [vmem:[#allocation0 + $0x10] sm:$0xff]  ;;  %v500_v34 = vld [vmem:[#allocation0 + $0x88] sm:$0xff] }
  0xb5   :  { %v396_v28 = vld [vmem:[#allocation0 + $0x20] sm:$0xff]  ;;  %v412_v29 = vld [vmem:[#allocation0 + $0x30] sm:$0xff]  ;;  %v516_v35 = vld [vmem:[#allocation0 + $0x98] sm:$0xff]  ;;  %v648_v37 = vpack.c.bf16 %v500_v34, %v492_v19 }
  0xb6   :  { %v436_v24 = vld [vmem:[#allocation0 + $0x48] sm:$0xff]  ;;  %v452_v25 = vld [vmem:[#allocation0 + $0x58] sm:$0xff]  ;;  %v653_v38 = vpack.c.bf16 %v516_v35, %v508_v20 }
  0xb7   :  { %v468_v26 = vld [vmem:[#allocation0 + $0x68] sm:$0xff]  ;;  %v628_v30 = vpack.c.bf16 %v436_v24, %v428_v15  ;;  %v633_v31 = vpack.c.bf16 %v452_v25, %v444_v16  ;;  %v484_v33 = vld [vmem:[#allocation0 + $0x78] sm:$0xff]  ;;  %672 = vst [vmem:[%s948_s1 + $0x40] sm:$0xff] %v648_v37  }
  0xb8   :  { %v638_v32 = vpack.c.bf16 %v468_v26, %v460_v17  ;;  %v643_v36 = vpack.c.bf16 %v484_v33, %v476_v18  ;;  %v532_v39 = vld [vmem:[#allocation0 + $0xa8] sm:$0xff]  ;;  %v548_v40 = vld [vmem:[#allocation0 + $0xb8] sm:$0xff]  ;;  %673 = vst [vmem:[%s948_s1 + $0x48] sm:$0xff] %v653_v38  }
  0xb9   :  { %v373_v41 = vld [vmem:[#allocation0 + $0x8] sm:$0xff]  ;;  %668 = vst [vmem:[%s948_s1 + $0x20] sm:$0xff] %v628_v30   ;;  %669 = vst [vmem:[%s948_s1 + $0x28] sm:$0xff] %v633_v31   ;;  %v658_v42 = vpack.c.bf16 %v532_v39, %v524_v22  ;;  %v663_v43 = vpack.c.bf16 %v548_v40, %v540_v23  ;;  %v388_v45 = vld [vmem:[#allocation0 + $0x18] sm:$0xff] }
  0xba   :  { %670 = vst [vmem:[%s948_s1 + $0x30] sm:$0xff] %v638_v32   ;;  %v608_v44 = vpack.c.bf16 %v373_v41, %v367_v21  ;;  %v404_v46 = vld [vmem:[#allocation0 + $0x28] sm:$0xff]  ;;  %v420_v47 = vld [vmem:[#allocation0 + $0x38] sm:$0xff]  ;;  %671 = vst [vmem:[%s948_s1 + $0x38] sm:$0xff] %v643_v36   ;;  %v613_v48 = vpack.c.bf16 %v388_v45, %v380_v27 }
  0xbb   :  { %v618_v49 = vpack.c.bf16 %v404_v46, %v396_v28  ;;  %v623_v50 = vpack.c.bf16 %v420_v47, %v412_v29  ;;  %674 = vst [vmem:[%s948_s1 + $0x50] sm:$0xff] %v658_v42   ;;  %675 = vst [vmem:[%s948_s1 + $0x58] sm:$0xff] %v663_v43  }
  0xbc   :  { %609 = vst [vmem:[%s948_s1] sm:$0xff] %v608_v44   ;;  %665 = vst [vmem:[%s948_s1 + $0x8] sm:$0xff] %v613_v48  }
  0xbd   :  { %666 = vst [vmem:[%s948_s1 + $0x10] sm:$0xff] %v618_v49   ;;  %667 = vst [vmem:[%s948_s1 + $0x18] sm:$0xff] %v623_v50  }

// kernel: forward.18
= control target key start
LH: loop header
LB: loop body
LE: loop exit
PB: predicated region body
PF: predicated region fallthrough
CT: control target
= control target key end

     0   :  { %v255_v0 = vmov 0   ;;  %vm146_vm0 = vcmask 719872   ;;  %vm150_vm1 = vcmask 1043456   ;;  %s336_s2 = inlined_call_operand.vmem [shape: bf16[1,216,128], index: 2, kind: input, shape index: {}]   ;;  %s337_s1 = inlined_call_operand.vmem [shape: f32[1,12,1], index: 1, kind: input, shape index: {}]   ;;  %s338_s0 = inlined_call_operand.vmem [shape: bf16[1,12,216], index: 0, kind: input, shape index: {}]   ;;  %s339_s3 = inlined_call_operand.vmem [shape: bf16[1,12,128], index: 3, kind: output, shape index: {}]  }
   0x1   :  { %154 = vmatprep.subr.bf16.mxu0 %v255_v0  ;;  %v238_v1 = vld [vmem:[%s336_s2 + $0x38] sm:$0xff]   ;;  %237 = vset.pattern.permute.xlu0 %v255_v0  ;;  %v239_v2 = vld [vmem:[%s336_s2 + $0x30] sm:$0xff]   ;;  %v240_v3 = vld [vmem:[%s336_s2 + $0x28] sm:$0xff]  }
   0x2   :  { %155 = vmatpush1.bf16.msra.mxu0 %v238_v1  ;;  %v241_v4 = vld [vmem:[%s336_s2 + $0x20] sm:$0xff]   ;;  %v242_v5 = vld [vmem:[%s336_s2 + $0x18] sm:$0xff]   ;;  %v45_v8 = vld [vmem:[%s337_s1 + $0x8] sm:$0xf] }
   0x3   :  { %156 = vmatprep.subr.bf16.mxu0 %v255_v0  ;;  %v44_v6 = vld [vmem:[%s337_s1] sm:$0xff]  ;;  %v243_v9 = vld [vmem:[%s336_s2 + $0x10] sm:$0xff]   ;;  %v244_v10 = vld [vmem:[%s336_s2 + $0x8] sm:$0xff]  }
   0x4   :  { %v254_v7 = vld [vmem:[%s338_s0 + $0x4] ss:$8 sps:$4 sm:$0x3f]   ;;  %48 = vperm.xlu0 %237, %v44_v6   ;;  %v246_v12 = vld [vmem:[%s336_s2 + $0x68] ss:$0 sps:$4 sm:$0xff]   ;;  %v248_v15 = vld [vmem:[%s336_s2 + $0x58] sm:$0xff]  }
   0x5   :  { %231 = vmatprep.mubr.msk.bf16.mxu0 %vm146_vm0, %v254_v7  ;;  %v245_v11 = vld [vmem:[%s336_s2] sm:$0xff]   ;;  %v152_v13 = vsel %vm150_vm1, %v246_v12, 0  ;;  %v249_v16 = vld [vmem:[%s336_s2 + $0x50] sm:$0xff]   ;;  %v250_v17 = vld [vmem:[%s336_s2 + $0x48] sm:$0xff]  }
   0x6   :  { %157 = vmatpush1.bf16.msra.mxu0 %v239_v2  ;;  %v247_v14 = vld [vmem:[%s336_s2 + $0x60] sm:$0xff]  }
   0x7   :  { %158 = vmatprep.subr.bf16.mxu0 %v255_v0  ;;  %v251_v18 = vld [vmem:[%s336_s2 + $0x40] sm:$0xff]  }
   0x8   :  { %53 = vperm.xlu0 %237, %v45_v8   ;;  %v252_v19 = vld [vmem:[%s338_s0] ss:$8 sps:$4 sm:$0x3f]  }
   0xa   :  { %159 = vmatpush1.bf16.msra.mxu0 %v240_v3 }
   0xb   :  { %160 = vmatprep.subr.bf16.mxu0 %v255_v0 }
   0xe   :  { %161 = vmatpush1.bf16.msra.mxu0 %v241_v4 }
   0xf   :  { %162 = vmatprep.subr.bf16.mxu0 %v255_v0 }
  0x12   :  { %163 = vmatpush1.bf16.msra.mxu0 %v242_v5 }
  0x13   :  { %164 = vmatprep.subr.bf16.mxu0 %v255_v0 }
  0x16   :  { %165 = vmatpush1.bf16.msra.mxu0 %v243_v9 }
  0x17   :  { %166 = vmatprep.subr.bf16.mxu0 %v255_v0 }
  0x1a   :  { %167 = vmatpush1.bf16.msra.mxu0 %v244_v10 }
  0x1b   :  { %168 = vmatprep.subr.bf16.mxu0 %v255_v0 }
  0x1e   :  { %169 = vmatpush1.bf16.msra.mxu0 %v245_v11 }
  0x1f   :  { %174 = vmatprep.subr.bf16.mxu0 %v255_v0 }
  0x22   :  { %175 = vmatpush2.bf16.msra.mxu0 %v152_v13 }
  0x23   :  { %176 = vmatprep.subr.bf16.mxu0 %v255_v0 }
  0x26   :  { %177 = vmatpush2.bf16.msra.mxu0 %v247_v14 }
  0x27   :  { %178 = vmatprep.subr.bf16.mxu0 %v255_v0 }
  0x2a   :  { %179 = vmatpush2.bf16.msra.mxu0 %v248_v15 }
  0x2b   :  { %180 = vmatprep.subr.bf16.mxu0 %v255_v0 }
  0x2e   :  { %181 = vmatpush2.bf16.msra.mxu0 %v249_v16 }
  0x2f   :  { %182 = vmatprep.subr.bf16.mxu0 %v255_v0 }
  0x32   :  { %183 = vmatpush2.bf16.msra.mxu0 %v250_v17 }
  0x33   :  { %184 = vmatprep.subr.bf16.mxu0 %v255_v0 }
  0x36   :  { %185 = vmatpush2.bf16.msra.mxu0 %v251_v18 }
  0x39   :  { %187 = vmatmul.mubr.bf16.vlgmr.msra.gmra.mxu0 %v252_v19 }
  0x7f   :  { %v49_v20 = vpop.permute.xlu0 %48 }
  0x83   :  { %v54_v25 = vpop.permute.xlu0 %53 }
  0xf9   :  { %v188_v21 = vpop.f32.mrf.mxu0 }
  0xfa   :  { %v189_v22 = vadd.f32 %v188_v21, %v49_v20 }
  0xfb   :  { %v190_v23 = vpop.f32.mrf.mxu0 }
  0xfc   :  { %vm195_vm2 = vcmp.ge.f32.partialorder %v189_v22, 0.0  ;;  %v197_v24 = vmul.f32 0.01, %v189_v22 }
  0xfd   :  { %v191_v26 = vpop.f32.mrf.mxu0 }
  0xfe   :  { %v199_v27 = vsel %vm195_vm2, %v189_v22, %v197_v24  ;;  %v192_v28 = vadd.f32 %v191_v26, %v54_v25 }
  0xff   :  { %v234_v29 = vpack.c.bf16 %v199_v27, %v199_v27  ;;  %v193_v30 = vpop.f32.mrf.mxu0 }
 0x100   :  { %vm196_vm3 = vcmp.ge.f32.partialorder %v192_v28, 0.0  ;;  %v198_v31 = vmul.f32 0.01, %v192_v28 }
 0x101   :  { %209 = vst [vmem:[%s339_s3] sm:$0xf] %v234_v29 }
 0x102   :  { %v200_v32 = vsel %vm196_vm3, %v192_v28, %v198_v31 }
 0x103   :  { %v235_v33 = vpack.c.bf16 %v200_v32, %v200_v32 }
 0x105   :  { %210 = vst [vmem:[%s339_s3 + $0x4] sm:$0x3] %v235_v33 }

// kernel: forward.19
= control target key start
LH: loop header
LB: loop body
LE: loop exit
PB: predicated region body
PF: predicated region fallthrough
CT: control target
= control target key end

     0   :  { %vm81_vm0 = vcmask 1045504   ;;  %v179_v0 = vmov 0.0   ;;  %vm180_vm1 = vmmov 0   ;;  %v181_v3 = vmov 0   ;;  %s232_s2 = inlined_call_operand.vmem [shape: bf16[1,108,128], index: 2, kind: input, shape index: {}]   ;;  %s233_s1 = inlined_call_operand.vmem [shape: f32[1,6,1], index: 1, kind: input, shape index: {}]   ;;  %s234_s0 = inlined_call_operand.vmem [shape: bf16[1,6,108], index: 0, kind: input, shape index: {}]   ;;  %s235_s3 = inlined_call_operand.vmem [shape: bf16[1,6,128], index: 3, kind: output, shape index: {}]  }
   0x1   :  { %150 = vmatprep.subr.bf16.mxu0 %v179_v0  ;;  %v172_v1 = vld [vmem:[%s232_s2 + $0x30] sm:$0x3f]   ;;  %164 = vmatprep.mubr.msk.bf16.mxu0 %vm180_vm1, %v179_v0  ;;  %v173_v4 = vld [vmem:[%s232_s2 + $0x28] sm:$0xff]   ;;  %v174_v5 = vld [vmem:[%s232_s2 + $0x20] sm:$0xff]   ;;  %vm77_vm2 = vcmask 883712  }
   0x2   :  { %v83_v2 = vsel %vm81_vm0, %v172_v1, 0  ;;  %171 = vset.pattern.permute.xlu0 %v181_v3  ;;  %v30_v6 = vld [vmem:[%s233_s1] sm:$0x3f]  ;;  %v175_v7 = vld [vmem:[%s232_s2 + $0x18] sm:$0xff]   ;;  %v176_v8 = vld [vmem:[%s232_s2 + $0x10] sm:$0xff]  }
   0x3   :  { %151 = vmatpush3.bf16.msra.mxu0 %v83_v2  ;;  %33 = vperm.xlu0 %171, %v30_v6   ;;  %v177_v9 = vld [vmem:[%s232_s2 + $0x8] sm:$0xff]   ;;  %v178_v10 = vld [vmem:[%s232_s2] sm:$0xff]  }
   0x4   :  { %152 = vmatprep.subr.bf16.mxu0 %v179_v0  ;;  %v15_v11 = vld [vmem:[%s234_s0] sm:$0x7] }
   0x7   :  { %153 = vmatpush3.bf16.msra.mxu0 %v173_v4 }
   0x8   :  { %154 = vmatprep.subr.bf16.mxu0 %v179_v0 }
   0xb   :  { %155 = vmatpush3.bf16.msra.mxu0 %v174_v5 }
   0xc   :  { %156 = vmatprep.subr.bf16.mxu0 %v179_v0 }
   0xf   :  { %157 = vmatpush3.bf16.msra.mxu0 %v175_v7 }
  0x10   :  { %158 = vmatprep.subr.bf16.mxu0 %v179_v0 }
  0x13   :  { %159 = vmatpush3.bf16.msra.mxu0 %v176_v8 }
  0x14   :  { %160 = vmatprep.subr.bf16.mxu0 %v179_v0 }
  0x17   :  { %161 = vmatpush3.bf16.msra.mxu0 %v177_v9 }
  0x18   :  { %162 = vmatprep.subr.bf16.mxu0 %v179_v0 }
  0x1b   :  { %163 = vmatpush3.bf16.msra.mxu0 %v178_v10 }
  0x1e   :  { %165 = vmatmul.mubr.msk.bf16.vlgmr.msra.gmra.mxu0 %vm77_vm2, %v15_v11 }
  0x7e   :  { %v34_v12 = vpop.permute.xlu0 %33 }
  0xde   :  { %v119_v13 = vpop.f32.mrf.mxu0 }
  0xdf   :  { %v120_v14 = vadd.f32 %v119_v13, %v34_v12 }
  0xe0   :  { %v166_v15 = vpop.f32.mrf.mxu0 }
  0xe1   :  { %vm125_vm3 = vcmp.ge.f32.partialorder %v120_v14, 0.0  ;;  %v126_v16 = vmul.f32 0.01, %v120_v14 }
  0xe2   :  { %v122_v17 = vpop.f32.mrf.mxu0 }
  0xe3   :  { %v127_v18 = vsel %vm125_vm3, %v120_v14, %v126_v16 }
  0xe4   :  { %v128_v19 = vpack.c.bf16 %v127_v18, %v127_v18  ;;  %v167_v20 = vpop.f32.mrf.mxu0 }
  0xe6   :  { %129 = vst [vmem:[%s235_s3] sm:$0x7] %v128_v19 }

// kernel: squeeze.20
= control target key start
LH: loop header
LB: loop body
LE: loop exit
PB: predicated region body
PF: predicated region fallthrough
CT: control target
= control target key end

     0   :  { %s343_s8 = smov 104   ;;  %s344_s9 = smov 112   ;;  %vm20_vm0 = vcmask 64512   ;;  %s436_s0 = inlined_call_operand.vmem [shape: bf16[1,6,128], index: 0, kind: input, shape index: {}]   ;;  %s437_s1 = inlined_call_operand.vmem [shape: bf16[6,2,8,8], index: 1, kind: output, shape index: {}]  }
   0x1   :  { %v15_v0 = vld [vmem:[%s436_s0] sm:$0xf]  ;;  %s342_s0 = smov 120   ;;  %s345_s10 = smov 96  }
   0x2   :  { %v16_v1 = vunpack.c.l.bf16 %v15_v0  ;;  %s346_s11 = smov 88   ;;  %s347_s12 = smov 80  }
   0x3   :  { %s348_s13 = smov 72   ;;  %s349_s14 = smov 64  }
   0x4   :  { %18 = vst [vmem:[#allocation1] sm:$0xff] %v16_v1  ;;  %s350_s15 = smov 56   ;;  %s351_s16 = smov 48  }
   0x5   :  { %s352_s17 = smov 40   ;;  %s353_s18 = smov 32  }
   0x6   :  { %s354_s19 = smov 24   ;;  %s355_s20 = smov 16  }
   0x7   :  { %s356_s21 = smov 8  }
   0xb   :  { %v24_v2 = vld [vmem:[#allocation1] sm:$0x3f]  }
   0xc   :  { %v44_v3 = vld [vmem:[#allocation1] sm:$0x3f]   ;;  %25 = vrot.lane.b32.xlu0 %v24_v2, %s342_s0 }
   0xd   :  { %45 = vrot.lane.b32.xlu1 %v44_v3, %s343_s8  ;;  %v34_v4 = vld [vmem:[#allocation1] sm:$0x3f]  }
   0xe   :  { %v54_v5 = vld [vmem:[#allocation1] sm:$0x3f]  }
   0xf   :  { %v19_v6 = vld [vmem:[#allocation1] sm:$0x3f]  }
  0x10   :  { %35 = vrot.lane.b32.xlu0 %v34_v4, %s344_s9  ;;  %v64_v7 = vld [vmem:[#allocation1] sm:$0x3f]   ;;  %23 = vst.msk [vmem:[#allocation0] ss:$16 sm:$0x30] %vm20_vm0, %v19_v6  }
  0x11   :  { %55 = vrot.lane.b32.xlu1 %v54_v5, %s345_s10  ;;  %v74_v8 = vld [vmem:[#allocation1] sm:$0x3f]   ;;  %21 = vst.msk [vmem:[#allocation0] ss:$16 sm:$0x3] %vm20_vm0, %v19_v6  }
  0x12   :  { %22 = vst.msk [vmem:[#allocation0] ss:$16 sm:$0xc] %vm20_vm0, %v19_v6   ;;  %v84_v9 = vld [vmem:[#allocation1] sm:$0x3f]  }
  0x13   :  { %v94_v10 = vld [vmem:[#allocation1] sm:$0x3f]  }
  0x14   :  { %65 = vrot.lane.b32.xlu0 %v64_v7, %s346_s11  ;;  %v104_v11 = vld [vmem:[#allocation1] sm:$0x3f]  }
  0x15   :  { %75 = vrot.lane.b32.xlu1 %v74_v8, %s347_s12  ;;  %v114_v12 = vld [vmem:[#allocation1] sm:$0x3f]  }
  0x16   :  { %v124_v13 = vld [vmem:[#allocation1] sm:$0x3f]  }
  0x17   :  { %v134_v14 = vld [vmem:[#allocation1] sm:$0x3f]  }
  0x18   :  { %85 = vrot.lane.b32.xlu0 %v84_v9, %s348_s13  ;;  %v144_v15 = vld [vmem:[#allocation1] sm:$0x3f]  }
  0x19   :  { %95 = vrot.lane.b32.xlu1 %v94_v10, %s349_s14  ;;  %v154_v16 = vld [vmem:[#allocation1] sm:$0x3f]  }
  0x1a   :  { %v164_v17 = vld [vmem:[#allocation1] sm:$0x3f]  }
  0x1c   :  { %105 = vrot.lane.b32.xlu0 %v104_v11, %s350_s15 }
  0x1d   :  { %115 = vrot.lane.b32.xlu1 %v114_v12, %s351_s16 }
  0x20   :  { %125 = vrot.lane.b32.xlu0 %v124_v13, %s352_s17 }
  0x21   :  { %135 = vrot.lane.b32.xlu1 %v134_v14, %s353_s18 }
  0x24   :  { %145 = vrot.lane.b32.xlu0 %v144_v15, %s354_s19 }
  0x25   :  { %155 = vrot.lane.b32.xlu1 %v154_v16, %s355_s20 }
  0x28   :  { %165 = vrot.lane.b32.xlu0 %v164_v17, %s356_s21 }
  0x7e   :  { %v26_v18 = vpop.permute.xlu0 %25  }
  0x7f   :  { %v46_v19 = vpop.permute.xlu1 %45   ;;  %29 = vst.msk [vmem:[#allocation0 + $0x1] ss:$16 sm:$0x3] %vm20_vm0, %v26_v18   ;;  %31 = vst.msk [vmem:[#allocation0 + $0x1] ss:$16 sm:$0xc] %vm20_vm0, %v26_v18  }
  0x80   :  { %33 = vst.msk [vmem:[#allocation0 + $0x1] ss:$16 sm:$0x30] %vm20_vm0, %v26_v18   ;;  %49 = vst.msk [vmem:[#allocation0 + $0x3] ss:$16 sm:$0x3] %vm20_vm0, %v46_v19  }
  0x81   :  { %51 = vst.msk [vmem:[#allocation0 + $0x3] ss:$16 sm:$0xc] %vm20_vm0, %v46_v19   ;;  %53 = vst.msk [vmem:[#allocation0 + $0x3] ss:$16 sm:$0x30] %vm20_vm0, %v46_v19  }
  0x82   :  { %v36_v20 = vpop.permute.xlu0 %35  }
  0x83   :  { %v56_v21 = vpop.permute.xlu1 %55   ;;  %39 = vst.msk [vmem:[#allocation0 + $0x2] ss:$16 sm:$0x3] %vm20_vm0, %v36_v20   ;;  %41 = vst.msk [vmem:[#allocation0 + $0x2] ss:$16 sm:$0xc] %vm20_vm0, %v36_v20  }
  0x84   :  { %43 = vst.msk [vmem:[#allocation0 + $0x2] ss:$16 sm:$0x30] %vm20_vm0, %v36_v20   ;;  %59 = vst.msk [vmem:[#allocation0 + $0x4] ss:$16 sm:$0x3] %vm20_vm0, %v56_v21  }
  0x85   :  { %61 = vst.msk [vmem:[#allocation0 + $0x4] ss:$16 sm:$0xc] %vm20_vm0, %v56_v21   ;;  %63 = vst.msk [vmem:[#allocation0 + $0x4] ss:$16 sm:$0x30] %vm20_vm0, %v56_v21  }
  0x86   :  { %v66_v22 = vpop.permute.xlu0 %65  }
  0x87   :  { %v76_v23 = vpop.permute.xlu1 %75   ;;  %69 = vst.msk [vmem:[#allocation0 + $0x5] ss:$16 sm:$0x3] %vm20_vm0, %v66_v22   ;;  %71 = vst.msk [vmem:[#allocation0 + $0x5] ss:$16 sm:$0xc] %vm20_vm0, %v66_v22  }
  0x88   :  { %73 = vst.msk [vmem:[#allocation0 + $0x5] ss:$16 sm:$0x30] %vm20_vm0, %v66_v22   ;;  %79 = vst.msk [vmem:[#allocation0 + $0x6] ss:$16 sm:$0x3] %vm20_vm0, %v76_v23  }
  0x89   :  { %81 = vst.msk [vmem:[#allocation0 + $0x6] ss:$16 sm:$0xc] %vm20_vm0, %v76_v23   ;;  %83 = vst.msk [vmem:[#allocation0 + $0x6] ss:$16 sm:$0x30] %vm20_vm0, %v76_v23  }
  0x8a   :  { %v86_v24 = vpop.permute.xlu0 %85  }
  0x8b   :  { %v96_v25 = vpop.permute.xlu1 %95   ;;  %89 = vst.msk [vmem:[#allocation0 + $0x7] ss:$16 sm:$0x3] %vm20_vm0, %v86_v24   ;;  %91 = vst.msk [vmem:[#allocation0 + $0x7] ss:$16 sm:$0xc] %vm20_vm0, %v86_v24  }
  0x8c   :  { %93 = vst.msk [vmem:[#allocation0 + $0x7] ss:$16 sm:$0x30] %vm20_vm0, %v86_v24   ;;  %99 = vst.msk [vmem:[#allocation0 + $0x8] ss:$16 sm:$0x3] %vm20_vm0, %v96_v25  }
  0x8d   :  { %101 = vst.msk [vmem:[#allocation0 + $0x8] ss:$16 sm:$0xc] %vm20_vm0, %v96_v25   ;;  %103 = vst.msk [vmem:[#allocation0 + $0x8] ss:$16 sm:$0x30] %vm20_vm0, %v96_v25  }
  0x8e   :  { %v106_v26 = vpop.permute.xlu0 %105  }
  0x8f   :  { %v116_v27 = vpop.permute.xlu1 %115   ;;  %109 = vst.msk [vmem:[#allocation0 + $0x9] ss:$16 sm:$0x3] %vm20_vm0, %v106_v26   ;;  %111 = vst.msk [vmem:[#allocation0 + $0x9] ss:$16 sm:$0xc] %vm20_vm0, %v106_v26  }
  0x90   :  { %113 = vst.msk [vmem:[#allocation0 + $0x9] ss:$16 sm:$0x30] %vm20_vm0, %v106_v26   ;;  %119 = vst.msk [vmem:[#allocation0 + $0xa] ss:$16 sm:$0x3] %vm20_vm0, %v116_v27  }
  0x91   :  { %121 = vst.msk [vmem:[#allocation0 + $0xa] ss:$16 sm:$0xc] %vm20_vm0, %v116_v27   ;;  %123 = vst.msk [vmem:[#allocation0 + $0xa] ss:$16 sm:$0x30] %vm20_vm0, %v116_v27  }
  0x92   :  { %v126_v28 = vpop.permute.xlu0 %125   ;;  %v179_v33 = vld [vmem:[#allocation0] sm:$0xff]  ;;  %v192_v34 = vld [vmem:[#allocation0 + $0x10] sm:$0xff] }
  0x93   :  { %v136_v29 = vpop.permute.xlu1 %135   ;;  %129 = vst.msk [vmem:[#allocation0 + $0xb] ss:$16 sm:$0x3] %vm20_vm0, %v126_v28   ;;  %131 = vst.msk [vmem:[#allocation0 + $0xb] ss:$16 sm:$0xc] %vm20_vm0, %v126_v28  }
  0x94   :  { %133 = vst.msk [vmem:[#allocation0 + $0xb] ss:$16 sm:$0x30] %vm20_vm0, %v126_v28   ;;  %139 = vst.msk [vmem:[#allocation0 + $0xc] ss:$16 sm:$0x3] %vm20_vm0, %v136_v29  }
  0x95   :  { %141 = vst.msk [vmem:[#allocation0 + $0xc] ss:$16 sm:$0xc] %vm20_vm0, %v136_v29   ;;  %143 = vst.msk [vmem:[#allocation0 + $0xc] ss:$16 sm:$0x30] %vm20_vm0, %v136_v29  }
  0x96   :  { %v146_v30 = vpop.permute.xlu0 %145   ;;  %v208_v35 = vld [vmem:[#allocation0 + $0x20] sm:$0xff]  ;;  %v224_v36 = vld [vmem:[#allocation0 + $0x30] sm:$0xff] }
  0x97   :  { %v156_v31 = vpop.permute.xlu1 %155   ;;  %149 = vst.msk [vmem:[#allocation0 + $0xd] ss:$16 sm:$0x3] %vm20_vm0, %v146_v30   ;;  %151 = vst.msk [vmem:[#allocation0 + $0xd] ss:$16 sm:$0xc] %vm20_vm0, %v146_v30  }
  0x98   :  { %153 = vst.msk [vmem:[#allocation0 + $0xd] ss:$16 sm:$0x30] %vm20_vm0, %v146_v30   ;;  %159 = vst.msk [vmem:[#allocation0 + $0xe] ss:$16 sm:$0x3] %vm20_vm0, %v156_v31  }
  0x99   :  { %161 = vst.msk [vmem:[#allocation0 + $0xe] ss:$16 sm:$0xc] %vm20_vm0, %v156_v31   ;;  %163 = vst.msk [vmem:[#allocation0 + $0xe] ss:$16 sm:$0x30] %vm20_vm0, %v156_v31  }
  0x9a   :  { %v166_v32 = vpop.permute.xlu0 %165   ;;  %v240_v37 = vld [vmem:[#allocation0 + $0x40] sm:$0xff]  ;;  %v256_v38 = vld [vmem:[#allocation0 + $0x50] sm:$0xff] }
  0x9b   :  { %169 = vst.msk [vmem:[#allocation0 + $0xf] ss:$16 sm:$0x3] %vm20_vm0, %v166_v32   ;;  %171 = vst.msk [vmem:[#allocation0 + $0xf] ss:$16 sm:$0xc] %vm20_vm0, %v166_v32  }
  0x9c   :  { %173 = vst.msk [vmem:[#allocation0 + $0xf] ss:$16 sm:$0x30] %vm20_vm0, %v166_v32  }
  0xa2   :  { %v185_v39 = vld [vmem:[#allocation0 + $0x8] sm:$0xff]  ;;  %v200_v40 = vld [vmem:[#allocation0 + $0x18] sm:$0xff] }
  0xa3   :  { %v216_v41 = vld [vmem:[#allocation0 + $0x28] sm:$0xff]  ;;  %v295_v42 = vpack.c.bf16 %v185_v39, %v179_v33  ;;  %v300_v43 = vpack.c.bf16 %v200_v40, %v192_v34  ;;  %v232_v45 = vld [vmem:[#allocation0 + $0x38] sm:$0xff] }
  0xa4   :  { %v305_v44 = vpack.c.bf16 %v216_v41, %v208_v35  ;;  %v248_v46 = vld [vmem:[#allocation0 + $0x48] sm:$0xff]  ;;  %v264_v47 = vld [vmem:[#allocation0 + $0x58] sm:$0xff]  ;;  %v310_v48 = vpack.c.bf16 %v232_v45, %v224_v36 }
  0xa5   :  { %v315_v49 = vpack.c.bf16 %v248_v46, %v240_v37  ;;  %v320_v50 = vpack.c.bf16 %v264_v47, %v256_v38  ;;  %296 = vst [vmem:[%s437_s1] sm:$0xff] %v295_v42   ;;  %322 = vst [vmem:[%s437_s1 + $0x8] sm:$0xff] %v300_v43  }
  0xa6   :  { %323 = vst [vmem:[%s437_s1 + $0x10] sm:$0xff] %v305_v44   ;;  %324 = vst [vmem:[%s437_s1 + $0x18] sm:$0xff] %v310_v48  }
  0xa7   :  { %325 = vst [vmem:[%s437_s1 + $0x20] sm:$0xff] %v315_v49   ;;  %326 = vst [vmem:[%s437_s1 + $0x28] sm:$0xff] %v320_v50  }

// kernel: forward.20
= control target key start
LH: loop header
LB: loop body
LE: loop exit
PB: predicated region body
PF: predicated region fallthrough
CT: control target
= control target key end

     0   :  { %vm54_vm0 = vcmask 1042432   ;;  %v137_v0 = vmov 0.0   ;;  %vm138_vm1 = vmmov 0   ;;  %v139_v4 = vmov 0   ;;  %s181_s2 = inlined_call_operand.vmem [shape: bf16[1,54,128], index: 2, kind: input, shape index: {}]   ;;  %s182_s1 = inlined_call_operand.vmem [shape: f32[1,6,1], index: 1, kind: input, shape index: {}]   ;;  %s183_s0 = inlined_call_operand.vmem [shape: bf16[1,6,54], index: 0, kind: input, shape index: {}]   ;;  %s184_s3 = inlined_call_operand.vmem [shape: bf16[1,6,128], index: 3, kind: output, shape index: {}]  }
   0x1   :  { %117 = vmatprep.subr.bf16.mxu0 %v137_v0  ;;  %v133_v1 = vld [vmem:[%s181_s2 + $0x18] ss:$0 sps:$4 sm:$0x77]   ;;  %125 = vmatprep.mubr.msk.bf16.mxu0 %vm138_vm1, %v137_v0  ;;  %v134_v3 = vld [vmem:[%s181_s2 + $0x10] sm:$0xff]   ;;  %v23_v5 = vld [vmem:[%s182_s1] sm:$0x3f] }
   0x2   :  { %v56_v2 = vsel %vm54_vm0, %v133_v1, 0  ;;  %132 = vset.pattern.permute.xlu0 %v139_v4  ;;  %v135_v6 = vld [vmem:[%s181_s2 + $0x8] sm:$0xff]   ;;  %v136_v7 = vld [vmem:[%s181_s2] sm:$0xff]   ;;  %vm50_vm2 = vcmask 441344  }
   0x3   :  { %118 = vmatpush3.bf16.msra.mxu0 %v56_v2  ;;  %26 = vperm.xlu0 %132, %v23_v5   ;;  %v15_v8 = vld [vmem:[%s183_s0] sm:$0x7] }
   0x4   :  { %119 = vmatprep.subr.bf16.mxu0 %v137_v0 }
   0x7   :  { %120 = vmatpush3.bf16.msra.mxu0 %v134_v3 }
   0x8   :  { %121 = vmatprep.subr.bf16.mxu0 %v137_v0 }
   0xb   :  { %122 = vmatpush3.bf16.msra.mxu0 %v135_v6 }
   0xc   :  { %123 = vmatprep.subr.bf16.mxu0 %v137_v0 }
   0xf   :  { %124 = vmatpush3.bf16.msra.mxu0 %v136_v7 }
  0x12   :  { %126 = vmatmul.mubr.msk.bf16.vlgmr.msra.gmra.mxu0 %vm50_vm2, %v15_v8 }
  0x7e   :  { %v27_v9 = vpop.permute.xlu0 %26 }
  0xd2   :  { %v92_v10 = vpop.f32.mrf.mxu0 }
  0xd3   :  { %v93_v11 = vadd.f32 %v92_v10, %v27_v9 }
  0xd4   :  { %v127_v12 = vpop.f32.mrf.mxu0 }
  0xd5   :  { %vm98_vm3 = vcmp.ge.f32.partialorder %v93_v11, 0.0  ;;  %v99_v13 = vmul.f32 0.01, %v93_v11 }
  0xd6   :  { %v95_v14 = vpop.f32.mrf.mxu0 }
  0xd7   :  { %v100_v15 = vsel %vm98_vm3, %v93_v11, %v99_v13 }
  0xd8   :  { %v101_v16 = vpack.c.bf16 %v100_v15, %v100_v15  ;;  %v128_v17 = vpop.f32.mrf.mxu0 }
  0xda   :  { %102 = vst [vmem:[%s184_s3] sm:$0x7] %v101_v16 }

// kernel: squeeze.22
= control target key start
LH: loop header
LB: loop body
LE: loop exit
PB: predicated region body
PF: predicated region fallthrough
CT: control target
= control target key end

     0   :  { %s179_s8 = smov 104   ;;  %s180_s9 = smov 112   ;;  %vm8_vm0 = vcmask 64512   ;;  %s334_s0 = inlined_call_operand.vmem [shape: f32[1,3,128], index: 0, kind: input, shape index: {}]   ;;  %s335_s1 = inlined_call_operand.vmem [shape: f32[3,2,8,8], index: 1, kind: output, shape index: {}]  }
   0x1   :  { %v5_v0 = vld [vmem:[%s334_s0] sm:$0xf]  ;;  %s178_s0 = smov 120   ;;  %s181_s10 = smov 96  }
   0x2   :  { %6 = vst [vmem:[#allocation0] sm:$0xf] %v5_v0  ;;  %s182_s11 = smov 88   ;;  %s183_s12 = smov 80  }
   0x3   :  { %s184_s13 = smov 72   ;;  %s185_s14 = smov 64  }
   0x4   :  { %s186_s19 = smov 56   ;;  %s187_s20 = smov 48  }
   0x5   :  { %s188_s21 = smov 40   ;;  %s189_s22 = smov 32  }
   0x6   :  { %s190_s23 = smov 24   ;;  %s191_s24 = smov 16  }
   0x7   :  { %s192_s25 = smov 8  }
   0x9   :  { %v12_v1 = vld [vmem:[#allocation0] sm:$0x7]  }
   0xa   :  { %v28_v2 = vld [vmem:[#allocation0] sm:$0x7]   ;;  %13 = vrot.lane.b32.xlu0 %v12_v1, %s178_s0 }
   0xb   :  { %29 = vrot.lane.b32.xlu1 %v28_v2, %s179_s8  ;;  %v20_v3 = vld [vmem:[#allocation0] sm:$0x7]  }
   0xc   :  { %v36_v4 = vld [vmem:[#allocation0] sm:$0x7]  }
   0xd   :  { %v44_v5 = vld [vmem:[#allocation0] sm:$0x7]  }
   0xe   :  { %21 = vrot.lane.b32.xlu0 %v20_v3, %s180_s9  ;;  %v52_v6 = vld [vmem:[#allocation0] sm:$0x7]  }
   0xf   :  { %37 = vrot.lane.b32.xlu1 %v36_v4, %s181_s10  ;;  %v60_v7 = vld [vmem:[#allocation0] sm:$0x7]  }
  0x10   :  { %v68_v8 = vld [vmem:[#allocation0] sm:$0x7]  }
  0x11   :  { %v76_v9 = vld [vmem:[#allocation0] sm:$0x7]  }
  0x12   :  { %45 = vrot.lane.b32.xlu0 %v44_v5, %s182_s11  ;;  %v84_v10 = vld [vmem:[#allocation0] sm:$0x7]  }
  0x13   :  { %53 = vrot.lane.b32.xlu1 %v52_v6, %s183_s12  ;;  %v7_v11 = vld [vmem:[#allocation0] sm:$0x7]  }
  0x14   :  { %9 = vst.msk [vmem:[%s335_s1] ss:$16 sm:$0x3] %vm8_vm0, %v7_v11   ;;  %132 = vst.msk [vmem:[%s335_s1 + $0x1e] sm:$0x4] %vm8_vm0, %v7_v11  }
  0x15   :  { %v92_v12 = vld [vmem:[#allocation0] sm:$0x7]  }
  0x16   :  { %61 = vrot.lane.b32.xlu0 %v60_v7, %s184_s13  ;;  %v100_v13 = vld [vmem:[#allocation0] sm:$0x7]  }
  0x17   :  { %69 = vrot.lane.b32.xlu1 %v68_v8, %s185_s14  ;;  %v108_v14 = vld [vmem:[#allocation0] sm:$0x7]  }
  0x18   :  { %v116_v15 = vld [vmem:[#allocation0] sm:$0x7]  }
  0x19   :  { %v124_v16 = vld [vmem:[#allocation0] sm:$0x7]  }
  0x1a   :  { %77 = vrot.lane.b32.xlu0 %v76_v9, %s186_s19 }
  0x1b   :  { %85 = vrot.lane.b32.xlu1 %v84_v10, %s187_s20 }
  0x1e   :  { %93 = vrot.lane.b32.xlu0 %v92_v12, %s188_s21 }
  0x1f   :  { %101 = vrot.lane.b32.xlu1 %v100_v13, %s189_s22 }
  0x22   :  { %109 = vrot.lane.b32.xlu0 %v108_v14, %s190_s23 }
  0x23   :  { %117 = vrot.lane.b32.xlu1 %v116_v15, %s191_s24 }
  0x26   :  { %125 = vrot.lane.b32.xlu0 %v124_v16, %s192_s25 }
  0x7c   :  { %v14_v17 = vpop.permute.xlu0 %13  }
  0x7d   :  { %v30_v18 = vpop.permute.xlu1 %29   ;;  %133 = vst.msk [vmem:[%s335_s1 + $0x1] ss:$16 sm:$0x3] %vm8_vm0, %v14_v17   ;;  %134 = vst.msk [vmem:[%s335_s1 + $0x1f] sm:$0x4] %vm8_vm0, %v14_v17  }
  0x7e   :  { %137 = vst.msk [vmem:[%s335_s1 + $0x3] ss:$16 sm:$0x3] %vm8_vm0, %v30_v18   ;;  %138 = vst.msk [vmem:[%s335_s1 + $0x21] sm:$0x4] %vm8_vm0, %v30_v18  }
  0x80   :  { %v22_v19 = vpop.permute.xlu0 %21  }
  0x81   :  { %v38_v20 = vpop.permute.xlu1 %37   ;;  %135 = vst.msk [vmem:[%s335_s1 + $0x2] ss:$16 sm:$0x3] %vm8_vm0, %v22_v19   ;;  %136 = vst.msk [vmem:[%s335_s1 + $0x20] sm:$0x4] %vm8_vm0, %v22_v19  }
  0x82   :  { %139 = vst.msk [vmem:[%s335_s1 + $0x4] ss:$16 sm:$0x3] %vm8_vm0, %v38_v20   ;;  %140 = vst.msk [vmem:[%s335_s1 + $0x22] sm:$0x4] %vm8_vm0, %v38_v20  }
  0x84   :  { %v46_v21 = vpop.permute.xlu0 %45  }
  0x85   :  { %v54_v22 = vpop.permute.xlu1 %53   ;;  %141 = vst.msk [vmem:[%s335_s1 + $0x5] ss:$16 sm:$0x3] %vm8_vm0, %v46_v21   ;;  %142 = vst.msk [vmem:[%s335_s1 + $0x23] sm:$0x4] %vm8_vm0, %v46_v21  }
  0x86   :  { %143 = vst.msk [vmem:[%s335_s1 + $0x6] ss:$16 sm:$0x3] %vm8_vm0, %v54_v22   ;;  %144 = vst.msk [vmem:[%s335_s1 + $0x24] sm:$0x4] %vm8_vm0, %v54_v22  }
  0x88   :  { %v62_v23 = vpop.permute.xlu0 %61  }
  0x89   :  { %v70_v24 = vpop.permute.xlu1 %69   ;;  %145 = vst.msk [vmem:[%s335_s1 + $0x7] ss:$16 sm:$0x3] %vm8_vm0, %v62_v23   ;;  %146 = vst.msk [vmem:[%s335_s1 + $0x25] sm:$0x4] %vm8_vm0, %v62_v23  }
  0x8a   :  { %147 = vst.msk [vmem:[%s335_s1 + $0x8] ss:$16 sm:$0x3] %vm8_vm0, %v70_v24   ;;  %148 = vst.msk [vmem:[%s335_s1 + $0x26] sm:$0x4] %vm8_vm0, %v70_v24  }
  0x8c   :  { %v78_v25 = vpop.permute.xlu0 %77  }
  0x8d   :  { %v86_v26 = vpop.permute.xlu1 %85   ;;  %149 = vst.msk [vmem:[%s335_s1 + $0x9] ss:$16 sm:$0x3] %vm8_vm0, %v78_v25   ;;  %150 = vst.msk [vmem:[%s335_s1 + $0x27] sm:$0x4] %vm8_vm0, %v78_v25  }
  0x8e   :  { %151 = vst.msk [vmem:[%s335_s1 + $0xa] ss:$16 sm:$0x3] %vm8_vm0, %v86_v26   ;;  %152 = vst.msk [vmem:[%s335_s1 + $0x28] sm:$0x4] %vm8_vm0, %v86_v26  }
  0x90   :  { %v94_v27 = vpop.permute.xlu0 %93  }
  0x91   :  { %v102_v28 = vpop.permute.xlu1 %101   ;;  %153 = vst.msk [vmem:[%s335_s1 + $0xb] ss:$16 sm:$0x3] %vm8_vm0, %v94_v27   ;;  %154 = vst.msk [vmem:[%s335_s1 + $0x29] sm:$0x4] %vm8_vm0, %v94_v27  }
  0x92   :  { %155 = vst.msk [vmem:[%s335_s1 + $0xc] ss:$16 sm:$0x3] %vm8_vm0, %v102_v28   ;;  %156 = vst.msk [vmem:[%s335_s1 + $0x2a] sm:$0x4] %vm8_vm0, %v102_v28  }
  0x94   :  { %v110_v29 = vpop.permute.xlu0 %109  }
  0x95   :  { %v118_v30 = vpop.permute.xlu1 %117   ;;  %157 = vst.msk [vmem:[%s335_s1 + $0xd] ss:$16 sm:$0x3] %vm8_vm0, %v110_v29   ;;  %158 = vst.msk [vmem:[%s335_s1 + $0x2b] sm:$0x4] %vm8_vm0, %v110_v29  }
  0x96   :  { %159 = vst.msk [vmem:[%s335_s1 + $0xe] ss:$16 sm:$0x3] %vm8_vm0, %v118_v30   ;;  %160 = vst.msk [vmem:[%s335_s1 + $0x2c] sm:$0x4] %vm8_vm0, %v118_v30  }
  0x98   :  { %v126_v31 = vpop.permute.xlu0 %125  }
  0x99   :  { %161 = vst.msk [vmem:[%s335_s1 + $0xf] ss:$16 sm:$0x3] %vm8_vm0, %v126_v31   ;;  %162 = vst.msk [vmem:[%s335_s1 + $0x2d] sm:$0x4] %vm8_vm0, %v126_v31  }

// kernel: forward.21
= control target key start
LH: loop header
LB: loop body
LE: loop exit
PB: predicated region body
PF: predicated region fallthrough
CT: control target
= control target key end

     0   :  { %vm57_vm0 = vcmask 1042432   ;;  %v216_v0 = vmov 0.0   ;;  %vm217_vm1 = vmmov 0   ;;  %v218_v4 = vmov 0   ;;  %s269_s2 = inlined_call_operand.vmem [shape: bf16[1,54,128], index: 2, kind: input, shape index: {}]   ;;  %s270_s1 = inlined_call_operand.vmem [shape: f32[1,6,1], index: 1, kind: input, shape index: {}]   ;;  %s271_s0 = inlined_call_operand.vmem [shape: bf16[1,6,54], index: 0, kind: input, shape index: {}]   ;;  %s272_s3 = inlined_call_operand.vmem [shape: f32[1,3,128], index: 3, kind: input, shape index: {}]   ;;  %s273_s4 = inlined_call_operand.vmem [shape: f32[1,3,128], index: 4, kind: output, shape index: {}]  }
   0x1   :  { %183 = vmatprep.subr.bf16.mxu0 %v216_v0  ;;  %v200_v1 = vld [vmem:[%s269_s2 + $0x18] ss:$0 sps:$4 sm:$0x77]   ;;  %191 = vmatprep.mubr.msk.bf16.mxu0 %vm217_vm1, %v216_v0  ;;  %v201_v3 = vld [vmem:[%s269_s2 + $0x10] sm:$0xff]   ;;  %v26_v5 = vld [vmem:[%s270_s1] sm:$0x3f] }
   0x2   :  { %v59_v2 = vsel %vm57_vm0, %v200_v1, 0  ;;  %199 = vset.pattern.permute.xlu0 %v218_v4  ;;  %v202_v6 = vld [vmem:[%s269_s2 + $0x8] sm:$0xff]   ;;  %v203_v7 = vld [vmem:[%s269_s2] sm:$0xff]   ;;  %vm53_vm2 = vcmask 441344  }
   0x3   :  { %184 = vmatpush3.bf16.msra.mxu0 %v59_v2  ;;  %29 = vperm.xlu0 %199, %v26_v5   ;;  %v18_v8 = vld [vmem:[%s271_s0] sm:$0x7] }
   0x4   :  { %185 = vmatprep.subr.bf16.mxu0 %v216_v0  ;;  %v104_v18 = vld [vmem:[%s272_s3] sm:$0x7] }
   0x5   :  { %v105_v19 = vand.u32 2147483647, %v104_v18 }
   0x7   :  { %186 = vmatpush3.bf16.msra.mxu0 %v201_v3  ;;  %v108_v20 = vsub.f32 0.5, %v105_v19  ;;  %v135_v21 = vsub.f32 -0.5, %v105_v19 }
   0x8   :  { %187 = vmatprep.subr.bf16.mxu0 %v216_v0 }
   0xb   :  { %188 = vmatpush3.bf16.msra.mxu0 %v202_v6 }
   0xc   :  { %189 = vmatprep.subr.bf16.mxu0 %v216_v0  ;;  %v219_v0 = vmov -1.0  }
   0xf   :  { %190 = vmatpush3.bf16.msra.mxu0 %v203_v7 }
  0x12   :  { %192 = vmatmul.mubr.msk.bf16.vlgmr.msra.gmra.mxu0 %vm53_vm2, %v18_v8 }
  0x7e   :  { %v30_v9 = vpop.permute.xlu0 %29 }
  0xd2   :  { %v95_v10 = vpop.f32.mrf.mxu0 }
  0xd3   :  { %v96_v11 = vadd.f32 %v95_v10, %v30_v9 }
  0xd4   :  { %v193_v12 = vpop.f32.mrf.mxu0 }
  0xd5   :  { %vm101_vm3 = vcmp.ge.f32.partialorder %v96_v11, 0.0  ;;  %v102_v13 = vmul.f32 0.01, %v96_v11 }
  0xd6   :  { %v98_v14 = vpop.f32.mrf.mxu0 }
  0xd7   :  { %v103_v15 = vsel %vm101_vm3, %v96_v11, %v102_v13 }
  0xd8   :  { %v106_v16 = vmax.f32 %v103_v15, 0.11  ;;  %v194_v17 = vpop.f32.mrf.mxu0 }
  0xda   :  { %204 = vrcp.f32 %v106_v16 }
  0xe7   :  { %v205_v22 = vpop.eup %204 }
  0xe8   :  { %v109_v23 = vmul.f32 %v205_v22, %v108_v20  ;;  %v136_v24 = vmul.f32 %v205_v22, %v135_v21 }
  0xea   :  { %v110_v25 = vmul.f32 0.70710677, %v109_v23  ;;  %v137_v26 = vmul.f32 0.70710677, %v136_v24 }
  0xec   :  { %v113_v27 = vand.u32 2147483647, %v110_v25  ;;  %v140_v28 = vand.u32 2147483647, %v137_v26  ;;  %vm111_vm4 = vcmp.ge.f32.partialorder %v110_v25, 0.0  ;;  %vm138_vm5 = vcmp.ge.f32.partialorder %v137_v26, 0.0 }
  0xed   :  { %v112_v1 = vsel %vm111_vm4, 1.0, %v219_v0  ;;  %v139_v4 = vsel %vm138_vm5, 1.0, %v219_v0 }
  0xee   :  { %v114_v29 = vmul.f32 0.3275911, %v113_v27  ;;  %v141_v30 = vmul.f32 0.3275911, %v140_v28  ;;  %v126_v33 = vsub.f32 0.0, %v113_v27  ;;  %v153_v34 = vsub.f32 0.0, %v140_v28 }
  0xf0   :  { %v115_v31 = vadd.f32 1.0, %v114_v29  ;;  %v142_v32 = vadd.f32 1.0, %v141_v30  ;;  %v127_v35 = vmul.f32 %v126_v33, %v113_v27  ;;  %v154_v36 = vmul.f32 %v153_v34, %v140_v28 }
  0xf2   :  { %206 = vrcp.f32 %v115_v31  ;;  %v128_v40 = vmul.f32 1.442695, %v127_v35  ;;  %v155_v42 = vmul.f32 1.442695, %v154_v36 }
  0xf3   :  { %208 = vrcp.f32 %v142_v32 }
  0xf4   :  { %210 = vpow2.f32 %v128_v40 }
  0xf5   :  { %212 = vpow2.f32 %v155_v42 }
  0xff   :  { %v207_v37 = vpop.eup %206 }
 0x100   :  { %v209_v38 = vpop.eup %208  ;;  %v117_v39 = vmul.f32 1.0614054, %v207_v37 }
 0x101   :  { %v144_v41 = vmul.f32 1.0614054, %v209_v38  ;;  %v211_v58 = vpop.eup %210 }
 0x102   :  { %v118_v43 = vadd.f32 -1.4531521, %v117_v39  ;;  %v213_v60 = vpop.eup %212 }
 0x103   :  { %v145_v44 = vadd.f32 -1.4531521, %v144_v41 }
 0x104   :  { %v119_v45 = vmul.f32 %v207_v37, %v118_v43 }
 0x105   :  { %v146_v46 = vmul.f32 %v209_v38, %v145_v44 }
 0x106   :  { %v120_v47 = vadd.f32 1.4214138, %v119_v45 }
 0x107   :  { %v147_v48 = vadd.f32 1.4214138, %v146_v46 }
 0x108   :  { %v121_v49 = vmul.f32 %v207_v37, %v120_v47 }
 0x109   :  { %v148_v50 = vmul.f32 %v209_v38, %v147_v48 }
 0x10a   :  { %v122_v51 = vadd.f32 -0.28449672, %v121_v49 }
 0x10b   :  { %v149_v52 = vadd.f32 -0.28449672, %v148_v50 }
 0x10c   :  { %v123_v53 = vmul.f32 %v207_v37, %v122_v51 }
 0x10d   :  { %v150_v54 = vmul.f32 %v209_v38, %v149_v52 }
 0x10e   :  { %v124_v55 = vadd.f32 0.2548296, %v123_v53 }
 0x10f   :  { %v151_v56 = vadd.f32 0.2548296, %v150_v54 }
 0x110   :  { %v125_v57 = vmul.f32 %v207_v37, %v124_v55 }
 0x111   :  { %v152_v59 = vmul.f32 %v209_v38, %v151_v56 }
 0x112   :  { %v130_v61 = vmul.f32 %v211_v58, %v125_v57 }
 0x113   :  { %v157_v62 = vmul.f32 %v213_v60, %v152_v59 }
 0x114   :  { %v131_v63 = vsub.f32 1.0, %v130_v61 }
 0x115   :  { %v158_v2 = vsub.f32 1.0, %v157_v62 }
 0x116   :  { %v132_v3 = vmul.f32 %v131_v63, %v112_v1 }
 0x117   :  { %v159_v5 = vmul.f32 %v158_v2, %v139_v4 }
 0x118   :  { %v133_v6 = vadd.f32 1.0, %v132_v3 }
 0x119   :  { %v160_v7 = vadd.f32 1.0, %v159_v5 }
 0x11a   :  { %v134_v8 = vmul.f32 0.5, %v133_v6 }
 0x11b   :  { %v161_v9 = vmul.f32 0.5, %v160_v7 }
 0x11d   :  { %v162_v10 = vsub.f32 %v134_v8, %v161_v9 }
 0x11f   :  { %v163_v11 = vmax.f32 %v162_v10, 1e-09 }
 0x121   :  { %214 = vlog2.f32 %v163_v11 }
 0x12e   :  { %v215_v12 = vpop.eup %214 }
 0x12f   :  { %v165_v13 = vmul.f32 0.6931472, %v215_v12 }
 0x131   :  { %v166_v14 = vsub.f32 0.0, %v165_v13 }
 0x133   :  { %v167_v15 = vmul.f32 1.442695, %v166_v14 }
 0x135   :  { %168 = vst [vmem:[%s273_s4] sm:$0x7] %v167_v15 }

// kernel: forward.22
= control target key start
LH: loop header
LB: loop body
LE: loop exit
PB: predicated region body
PF: predicated region fallthrough
CT: control target
= control target key end

     0   :  { %s641_s12 = smov 0   ;;  %s643_s13 = smov 0   ;;  %s686_s0 = inlined_call_operand.vmem [shape: bf16[3,8,25], index: 0, kind: input, shape index: {}]   ;;  %s687_s1 = inlined_call_operand.vmem [shape: f32[3,8,1], index: 1, kind: input, shape index: {}]   ;;  %s688_s2 = inlined_call_operand.vmem [shape: bf16[3,25,512], index: 2, kind: input, shape index: {}]   ;;  %s689_s3 = inlined_call_operand.vmem [shape: bf16[3,8,512], index: 3, kind: output, shape index: {}]  }
   0x1   :  { %s645_s14 = smov 0  }
   0x2 LB: > { %s25_s15 = sadd.s32 1, %s613_s13  ;;  %p531_p0 = scmp.ge.s32.totalorder %s617_s14, 1  ;;  %s617_s14 = sphi %s645_s14, %s13_s14   ;;  %s613_s13 = sphi %s643_s13, %s691_s13   ;;  %s609_s12 = sphi %s641_s12, %s690_s12  }
   0x3   : > { %p27_p1 = scmp.ge.s32.totalorder %s25_s15, 3  ;;  %p176_p2 = scmp.lt.s32.totalorder %s617_s14, 4 }
   0x5   : > { %s693_s15 = smov (%p27_p1, %s25_s15), 0  ;;  %p177_p3 = pnand %p531_p0, %p176_p2 }
   0x6   : > { %p216_p4 = scmp.lt.s32.totalorder (!%p177_p3), %s609_s12, 2 }
   0x7   : > { %180 = sbr.rel (%p177_p3) target bundleno = 226 (0xe2), region = 32 }
   0xc   : > { %vm300_vm0 = vcmask 1043456   ;;  %v619_v0 = vmov 0   ;;  %s695_s12 = smov (!%p216_p4, %s609_s12), 2  ;;  %vm301_vm1 = vcmask 1044480   ;;  %v620_v1 = vmov 65535  }
   0xd   : > { %348 = vmatprep.mubr.bf16.mxu0 %v619_v0  ;;  %389 = vmatprep.mubr.bf16.mxu1 %v619_v0  ;;  %v302_v2 = vsel %vm300_vm0, 4294967295, %v620_v1  ;;  %s552_s16 = sshll.u32 %s695_s12, 6  ;;  %s533_s20 = sshll.u32 %s695_s12, 3  ;;  %vm296_vm2 = vcmask 203776  }
   0xe   : > { %582 = vset.pattern.permute.xlu0 %v619_v0  ;;  %s232_s19 = scalar_lea.vmem %s688_s2, %s552_s16  ;;  %v303_v3 = vsel %vm301_vm1, %v302_v2, 0  ;;  %s532_s21 = sshll.u32 %s695_s12, 2 }
   0xf   : > { %v583_v4 = vld [vmem:[%s232_s19 + $0x24] ss:$16 sps:$4 sm:$0x1f]   ;;  %v585_v5 = vld [vmem:[%s232_s19 + $0x2c] ss:$16 sps:$4 sm:$0x1f]   ;;  %s223_s24 = scalar_lea.vmem %s687_s1, %s533_s20  ;;  %s219_s27 = scalar_lea.vmem %s686_s0, %s532_s21 }
  0x10   : > { %v308_v6 = vand.u32 %v583_v4, %v303_v3  ;;  %v587_v7 = vld [vmem:[%s232_s19 + $0x20] ss:$16 sps:$4 sm:$0x1f]   ;;  %v588_v8 = vld [vmem:[%s232_s19 + $0x28] ss:$16 sps:$4 sm:$0x1f]   ;;  %v314_v9 = vand.u32 %v585_v5, %v303_v3 }
  0x11   : > { %v589_v10 = vld [vmem:[%s232_s19 + $0x4] ss:$16 sps:$4 sm:$0xff]   ;;  %v305_v11 = vand.u32 %v587_v7, %v303_v3  ;;  %v311_v12 = vand.u32 %v588_v8, %v303_v3  ;;  %v591_v13 = vld [vmem:[%s232_s19 + $0xc] ss:$16 sps:$4 sm:$0xff]   ;;  %v593_v14 = vld [vmem:[%s232_s19] ss:$16 sps:$4 sm:$0xff]  }
  0x12   : > { %328 = vmatprep.subr.bf16.mxu0 %v308_v6  ;;  %369 = vmatprep.subr.bf16.mxu1 %v314_v9  ;;  %v594_v15 = vld [vmem:[%s232_s19 + $0x8] ss:$16 sps:$4 sm:$0xff]   ;;  %v254_v16 = vld [vmem:[%s223_s24] sm:$0xff]  ;;  %s553_s28 = sshll.u32 %s695_s12, 4 }
  0x13   : > { %329 = vmatpush1.bf16.msra.mxu0 %v305_v11  ;;  %370 = vmatpush1.bf16.msra.mxu1 %v311_v12  ;;  %v245_v17 = vld [vmem:[%s219_s27] sm:$0xf]  ;;  %s242_s4 = scalar_lea.vmem %s689_s3, %s553_s28 }
  0x14   : > { %330 = vmatprep.subr.bf16.mxu0 %v589_v10  ;;  %371 = vmatprep.subr.bf16.mxu1 %v591_v13 }
  0x15   : > { %257 = vperm.xlu0 %582, %v254_v16  }
  0x17   : > { %331 = vmatpush1.bf16.msra.mxu0 %v593_v14  ;;  %372 = vmatpush1.bf16.msra.mxu1 %v594_v15 }
  0x1a   : > { %546 = vmatmul.mubr.msk.bf16.vlgmr.msra.gmra.mxu0 %vm296_vm2, %v245_v17  ;;  %547 = vmatmul.mubr.msk.bf16.vlgmr.msra.gmra.mxu1 %vm296_vm2, %v245_v17 }
  0x90   : > { %v258_v18 = vpop.permute.xlu0 %257 }
  0xda   : > { %v350_v19 = vpop.f32.mrf.mxu0  ;;  %v391_v20 = vpop.f32.mrf.mxu1 }
  0xdb   : > { %v351_v23 = vadd.f32 %v350_v19, %v258_v18  ;;  %v392_v24 = vadd.f32 %v391_v20, %v258_v18 }
  0xdc   : > { %v352_v21 = vpop.f32.mrf.mxu0  ;;  %v393_v22 = vpop.f32.mrf.mxu1 }
  0xdd   : > { %v353_v25 = vadd.f32 %v352_v21, %v258_v18  ;;  %v394_v26 = vadd.f32 %v393_v22, %v258_v18 }
  0xde   : > { %v354_v27 = vpop.f32.mrf.mxu0  ;;  %v395_v28 = vpop.f32.mrf.mxu1 }
  0xdf   : > { %v554_v29 = vpack.c.bf16 %v353_v25, %v351_v23  ;;  %v555_v30 = vpack.c.bf16 %v394_v26, %v392_v24 }
  0xe0   : > { %v355_v31 = vpop.f32.mrf.mxu0  ;;  %v396_v32 = vpop.f32.mrf.mxu1 }
  0xe1   : > { %414 = vst [vmem:[%s242_s4] sm:$0xff] %v554_v29  ;;  %415 = vst [vmem:[%s242_s4 + $0x8] sm:$0xff] %v555_v30 }
  0xe2 PF: > { %s13_s14 = sadd.s32 1, %s617_s14   ;;  %s690_s12 = smov %s613_s13 }
  0xe3   : > { %p10_p5 = scmp.ge.s32.totalorder %s13_s14, 5   ;;  %s691_s13 = smov %s693_s15 }
  0xe5   :  { %12 = sbr.rel (!%p10_p5) target bundleno = 2 (0x2), region = 68 }

// kernel: squeeze.13
= control target key start
LH: loop header
LB: loop body
LE: loop exit
PB: predicated region body
PF: predicated region fallthrough
CT: control target
= control target key end

     0   :  { %vm20_vm0 = vcmask 64512   ;;  %s426_s8 = smov 104   ;;  %s427_s9 = smov 112   ;;  %s541_s0 = inlined_call_operand.vmem [shape: bf16[1,8,128], index: 0, kind: input, shape index: {}]   ;;  %s542_s1 = inlined_call_operand.vmem [shape: bf16[8,2,8,8], index: 1, kind: output, shape index: {}]  }
   0x1   :  { %v15_v0 = vld [vmem:[%s541_s0] sm:$0xf]  ;;  %s425_s0 = smov 120   ;;  %s428_s10 = smov 96  }
   0x2   :  { %v16_v1 = vunpack.c.l.bf16 %v15_v0  ;;  %s429_s11 = smov 88   ;;  %s430_s12 = smov 80  }
   0x3   :  { %s431_s13 = smov 72   ;;  %s432_s14 = smov 64  }
   0x4   :  { %26 = vrot.lane.b32.xlu0 %v16_v1, %s425_s0  ;;  %50 = vrot.lane.b32.xlu1 %v16_v1, %s426_s8  ;;  %21 = vst.msk [vmem:[#allocation0] ss:$16 sm:$0x3] %vm20_vm0, %v16_v1   ;;  %22 = vst.msk [vmem:[#allocation0] ss:$16 sm:$0xc] %vm20_vm0, %v16_v1  }
   0x5   :  { %23 = vst.msk [vmem:[#allocation0] ss:$16 sm:$0x30] %vm20_vm0, %v16_v1   ;;  %24 = vst.msk [vmem:[#allocation0] ss:$16 sm:$0xc0] %vm20_vm0, %v16_v1  }
   0x6   :  { %s433_s15 = smov 56   ;;  %s434_s16 = smov 48  }
   0x7   :  { %s435_s17 = smov 40   ;;  %s436_s18 = smov 32  }
   0x8   :  { %38 = vrot.lane.b32.xlu0 %v16_v1, %s427_s9  ;;  %62 = vrot.lane.b32.xlu1 %v16_v1, %s428_s10  ;;  %s437_s19 = smov 24   ;;  %s438_s20 = smov 16  }
   0x9   :  { %s439_s21 = smov 8  }
   0xc   :  { %74 = vrot.lane.b32.xlu0 %v16_v1, %s429_s11  ;;  %86 = vrot.lane.b32.xlu1 %v16_v1, %s430_s12 }
  0x10   :  { %98 = vrot.lane.b32.xlu0 %v16_v1, %s431_s13  ;;  %110 = vrot.lane.b32.xlu1 %v16_v1, %s432_s14 }
  0x14   :  { %122 = vrot.lane.b32.xlu0 %v16_v1, %s433_s15  ;;  %134 = vrot.lane.b32.xlu1 %v16_v1, %s434_s16 }
  0x18   :  { %146 = vrot.lane.b32.xlu0 %v16_v1, %s435_s17  ;;  %158 = vrot.lane.b32.xlu1 %v16_v1, %s436_s18 }
  0x1c   :  { %170 = vrot.lane.b32.xlu0 %v16_v1, %s437_s19  ;;  %182 = vrot.lane.b32.xlu1 %v16_v1, %s438_s20 }
  0x20   :  { %194 = vrot.lane.b32.xlu0 %v16_v1, %s439_s21 }
  0x76   :  { %v27_v2 = vpop.permute.xlu0 %26   ;;  %v51_v3 = vpop.permute.xlu1 %50  }
  0x77   :  { %30 = vst.msk [vmem:[#allocation0 + $0x1] ss:$16 sm:$0x3] %vm20_vm0, %v27_v2   ;;  %32 = vst.msk [vmem:[#allocation0 + $0x1] ss:$16 sm:$0xc] %vm20_vm0, %v27_v2  }
  0x78   :  { %34 = vst.msk [vmem:[#allocation0 + $0x1] ss:$16 sm:$0x30] %vm20_vm0, %v27_v2   ;;  %36 = vst.msk [vmem:[#allocation0 + $0x1] ss:$16 sm:$0xc0] %vm20_vm0, %v27_v2  }
  0x79   :  { %54 = vst.msk [vmem:[#allocation0 + $0x3] ss:$16 sm:$0x3] %vm20_vm0, %v51_v3   ;;  %56 = vst.msk [vmem:[#allocation0 + $0x3] ss:$16 sm:$0xc] %vm20_vm0, %v51_v3  }
  0x7a   :  { %58 = vst.msk [vmem:[#allocation0 + $0x3] ss:$16 sm:$0x30] %vm20_vm0, %v51_v3   ;;  %60 = vst.msk [vmem:[#allocation0 + $0x3] ss:$16 sm:$0xc0] %vm20_vm0, %v51_v3   ;;  %v39_v4 = vpop.permute.xlu0 %38   ;;  %v63_v5 = vpop.permute.xlu1 %62  }
  0x7b   :  { %42 = vst.msk [vmem:[#allocation0 + $0x2] ss:$16 sm:$0x3] %vm20_vm0, %v39_v4   ;;  %44 = vst.msk [vmem:[#allocation0 + $0x2] ss:$16 sm:$0xc] %vm20_vm0, %v39_v4  }
  0x7c   :  { %46 = vst.msk [vmem:[#allocation0 + $0x2] ss:$16 sm:$0x30] %vm20_vm0, %v39_v4   ;;  %48 = vst.msk [vmem:[#allocation0 + $0x2] ss:$16 sm:$0xc0] %vm20_vm0, %v39_v4  }
  0x7d   :  { %66 = vst.msk [vmem:[#allocation0 + $0x4] ss:$16 sm:$0x3] %vm20_vm0, %v63_v5   ;;  %68 = vst.msk [vmem:[#allocation0 + $0x4] ss:$16 sm:$0xc] %vm20_vm0, %v63_v5  }
  0x7e   :  { %70 = vst.msk [vmem:[#allocation0 + $0x4] ss:$16 sm:$0x30] %vm20_vm0, %v63_v5   ;;  %72 = vst.msk [vmem:[#allocation0 + $0x4] ss:$16 sm:$0xc0] %vm20_vm0, %v63_v5   ;;  %v75_v6 = vpop.permute.xlu0 %74   ;;  %v87_v7 = vpop.permute.xlu1 %86  }
  0x7f   :  { %78 = vst.msk [vmem:[#allocation0 + $0x5] ss:$16 sm:$0x3] %vm20_vm0, %v75_v6   ;;  %80 = vst.msk [vmem:[#allocation0 + $0x5] ss:$16 sm:$0xc] %vm20_vm0, %v75_v6  }
  0x80   :  { %82 = vst.msk [vmem:[#allocation0 + $0x5] ss:$16 sm:$0x30] %vm20_vm0, %v75_v6   ;;  %84 = vst.msk [vmem:[#allocation0 + $0x5] ss:$16 sm:$0xc0] %vm20_vm0, %v75_v6  }
  0x81   :  { %90 = vst.msk [vmem:[#allocation0 + $0x6] ss:$16 sm:$0x3] %vm20_vm0, %v87_v7   ;;  %92 = vst.msk [vmem:[#allocation0 + $0x6] ss:$16 sm:$0xc] %vm20_vm0, %v87_v7  }
  0x82   :  { %94 = vst.msk [vmem:[#allocation0 + $0x6] ss:$16 sm:$0x30] %vm20_vm0, %v87_v7   ;;  %96 = vst.msk [vmem:[#allocation0 + $0x6] ss:$16 sm:$0xc0] %vm20_vm0, %v87_v7   ;;  %v99_v8 = vpop.permute.xlu0 %98   ;;  %v111_v9 = vpop.permute.xlu1 %110  }
  0x83   :  { %102 = vst.msk [vmem:[#allocation0 + $0x7] ss:$16 sm:$0x3] %vm20_vm0, %v99_v8   ;;  %104 = vst.msk [vmem:[#allocation0 + $0x7] ss:$16 sm:$0xc] %vm20_vm0, %v99_v8  }
  0x84   :  { %106 = vst.msk [vmem:[#allocation0 + $0x7] ss:$16 sm:$0x30] %vm20_vm0, %v99_v8   ;;  %108 = vst.msk [vmem:[#allocation0 + $0x7] ss:$16 sm:$0xc0] %vm20_vm0, %v99_v8  }
  0x85   :  { %114 = vst.msk [vmem:[#allocation0 + $0x8] ss:$16 sm:$0x3] %vm20_vm0, %v111_v9   ;;  %116 = vst.msk [vmem:[#allocation0 + $0x8] ss:$16 sm:$0xc] %vm20_vm0, %v111_v9  }
  0x86   :  { %118 = vst.msk [vmem:[#allocation0 + $0x8] ss:$16 sm:$0x30] %vm20_vm0, %v111_v9   ;;  %120 = vst.msk [vmem:[#allocation0 + $0x8] ss:$16 sm:$0xc0] %vm20_vm0, %v111_v9   ;;  %v123_v10 = vpop.permute.xlu0 %122   ;;  %v135_v11 = vpop.permute.xlu1 %134  }
  0x87   :  { %126 = vst.msk [vmem:[#allocation0 + $0x9] ss:$16 sm:$0x3] %vm20_vm0, %v123_v10   ;;  %128 = vst.msk [vmem:[#allocation0 + $0x9] ss:$16 sm:$0xc] %vm20_vm0, %v123_v10  }
  0x88   :  { %130 = vst.msk [vmem:[#allocation0 + $0x9] ss:$16 sm:$0x30] %vm20_vm0, %v123_v10   ;;  %132 = vst.msk [vmem:[#allocation0 + $0x9] ss:$16 sm:$0xc0] %vm20_vm0, %v123_v10  }
  0x89   :  { %138 = vst.msk [vmem:[#allocation0 + $0xa] ss:$16 sm:$0x3] %vm20_vm0, %v135_v11   ;;  %140 = vst.msk [vmem:[#allocation0 + $0xa] ss:$16 sm:$0xc] %vm20_vm0, %v135_v11  }
  0x8a   :  { %142 = vst.msk [vmem:[#allocation0 + $0xa] ss:$16 sm:$0x30] %vm20_vm0, %v135_v11   ;;  %144 = vst.msk [vmem:[#allocation0 + $0xa] ss:$16 sm:$0xc0] %vm20_vm0, %v135_v11   ;;  %v147_v12 = vpop.permute.xlu0 %146   ;;  %v159_v13 = vpop.permute.xlu1 %158  }
  0x8b   :  { %150 = vst.msk [vmem:[#allocation0 + $0xb] ss:$16 sm:$0x3] %vm20_vm0, %v147_v12   ;;  %152 = vst.msk [vmem:[#allocation0 + $0xb] ss:$16 sm:$0xc] %vm20_vm0, %v147_v12  }
  0x8c   :  { %154 = vst.msk [vmem:[#allocation0 + $0xb] ss:$16 sm:$0x30] %vm20_vm0, %v147_v12   ;;  %156 = vst.msk [vmem:[#allocation0 + $0xb] ss:$16 sm:$0xc0] %vm20_vm0, %v147_v12  }
  0x8d   :  { %162 = vst.msk [vmem:[#allocation0 + $0xc] ss:$16 sm:$0x3] %vm20_vm0, %v159_v13   ;;  %164 = vst.msk [vmem:[#allocation0 + $0xc] ss:$16 sm:$0xc] %vm20_vm0, %v159_v13  }
  0x8e   :  { %166 = vst.msk [vmem:[#allocation0 + $0xc] ss:$16 sm:$0x30] %vm20_vm0, %v159_v13   ;;  %168 = vst.msk [vmem:[#allocation0 + $0xc] ss:$16 sm:$0xc0] %vm20_vm0, %v159_v13   ;;  %v171_v14 = vpop.permute.xlu0 %170   ;;  %v183_v15 = vpop.permute.xlu1 %182  }
  0x8f   :  { %174 = vst.msk [vmem:[#allocation0 + $0xd] ss:$16 sm:$0x3] %vm20_vm0, %v171_v14   ;;  %176 = vst.msk [vmem:[#allocation0 + $0xd] ss:$16 sm:$0xc] %vm20_vm0, %v171_v14  }
  0x90   :  { %178 = vst.msk [vmem:[#allocation0 + $0xd] ss:$16 sm:$0x30] %vm20_vm0, %v171_v14   ;;  %180 = vst.msk [vmem:[#allocation0 + $0xd] ss:$16 sm:$0xc0] %vm20_vm0, %v171_v14  }
  0x91   :  { %186 = vst.msk [vmem:[#allocation0 + $0xe] ss:$16 sm:$0x3] %vm20_vm0, %v183_v15   ;;  %188 = vst.msk [vmem:[#allocation0 + $0xe] ss:$16 sm:$0xc] %vm20_vm0, %v183_v15  }
  0x92   :  { %190 = vst.msk [vmem:[#allocation0 + $0xe] ss:$16 sm:$0x30] %vm20_vm0, %v183_v15   ;;  %192 = vst.msk [vmem:[#allocation0 + $0xe] ss:$16 sm:$0xc0] %vm20_vm0, %v183_v15   ;;  %v195_v16 = vpop.permute.xlu0 %194  }
  0x93   :  { %198 = vst.msk [vmem:[#allocation0 + $0xf] ss:$16 sm:$0x3] %vm20_vm0, %v195_v16   ;;  %200 = vst.msk [vmem:[#allocation0 + $0xf] ss:$16 sm:$0xc] %vm20_vm0, %v195_v16  }
  0x94   :  { %202 = vst.msk [vmem:[#allocation0 + $0xf] ss:$16 sm:$0x30] %vm20_vm0, %v195_v16   ;;  %204 = vst.msk [vmem:[#allocation0 + $0xf] ss:$16 sm:$0xc0] %vm20_vm0, %v195_v16  }
  0x95   :  { %v210_v17 = vld [vmem:[#allocation0] sm:$0xff]  ;;  %v223_v18 = vld [vmem:[#allocation0 + $0x10] sm:$0xff] }
  0x96   :  { %v239_v19 = vld [vmem:[#allocation0 + $0x20] sm:$0xff]  ;;  %v255_v20 = vld [vmem:[#allocation0 + $0x30] sm:$0xff] }
  0x97   :  { %v303_v21 = vld [vmem:[#allocation0 + $0x60] sm:$0xff]  ;;  %v319_v22 = vld [vmem:[#allocation0 + $0x70] sm:$0xff] }
  0x98   :  { %v271_v23 = vld [vmem:[#allocation0 + $0x40] sm:$0xff]  ;;  %v287_v33 = vld [vmem:[#allocation0 + $0x50] sm:$0xff] }
  0x9a   :  { %v216_v26 = vld [vmem:[#allocation0 + $0x8] sm:$0xff]  ;;  %v231_v30 = vld [vmem:[#allocation0 + $0x18] sm:$0xff] }
  0x9b   :  { %v311_v24 = vld [vmem:[#allocation0 + $0x68] sm:$0xff]  ;;  %v327_v25 = vld [vmem:[#allocation0 + $0x78] sm:$0xff]  ;;  %v366_v29 = vpack.c.bf16 %v216_v26, %v210_v17  ;;  %v371_v34 = vpack.c.bf16 %v231_v30, %v223_v18 }
  0x9c   :  { %v396_v27 = vpack.c.bf16 %v311_v24, %v303_v21  ;;  %v401_v28 = vpack.c.bf16 %v327_v25, %v319_v22  ;;  %v247_v31 = vld [vmem:[#allocation0 + $0x28] sm:$0xff]  ;;  %v263_v32 = vld [vmem:[#allocation0 + $0x38] sm:$0xff] }
  0x9d   :  { %v376_v35 = vpack.c.bf16 %v247_v31, %v239_v19  ;;  %v381_v36 = vpack.c.bf16 %v263_v32, %v255_v20  ;;  %v279_v37 = vld [vmem:[#allocation0 + $0x48] sm:$0xff]  ;;  %v295_v38 = vld [vmem:[#allocation0 + $0x58] sm:$0xff]  ;;  %367 = vst [vmem:[%s542_s1] sm:$0xff] %v366_v29   ;;  %403 = vst [vmem:[%s542_s1 + $0x8] sm:$0xff] %v371_v34  }
  0x9e   :  { %408 = vst [vmem:[%s542_s1 + $0x30] sm:$0xff] %v396_v27   ;;  %409 = vst [vmem:[%s542_s1 + $0x38] sm:$0xff] %v401_v28   ;;  %v386_v39 = vpack.c.bf16 %v279_v37, %v271_v23  ;;  %v391_v40 = vpack.c.bf16 %v295_v38, %v287_v33 }
  0x9f   :  { %404 = vst [vmem:[%s542_s1 + $0x10] sm:$0xff] %v376_v35   ;;  %405 = vst [vmem:[%s542_s1 + $0x18] sm:$0xff] %v381_v36  }
  0xa0   :  { %406 = vst [vmem:[%s542_s1 + $0x20] sm:$0xff] %v386_v39   ;;  %407 = vst [vmem:[%s542_s1 + $0x28] sm:$0xff] %v391_v40  }

// kernel: forward.12
= control target key start
LH: loop header
LB: loop body
LE: loop exit
PB: predicated region body
PF: predicated region fallthrough
CT: control target
= control target key end

     0   :  { %vm33_vm0 = vcmask 1043456   ;;  %vm34_vm1 = vcmask 1044480   ;;  %v105_v0 = vmov 0.0   ;;  %v106_v2 = vmov 65535   ;;  %s141_s2 = inlined_call_operand.vmem [shape: bf16[1,9,128], index: 2, kind: input, shape index: {}]   ;;  %s142_s1 = inlined_call_operand.vmem [shape: f32[1,8,1], index: 1, kind: input, shape index: {}]   ;;  %s143_s0 = inlined_call_operand.vmem [shape: bf16[1,8,9], index: 0, kind: input, shape index: {}]   ;;  %s144_s3 = inlined_call_operand.vmem [shape: bf16[1,8,128], index: 3, kind: output, shape index: {}]  }
   0x1   :  { %93 = vmatprep.subr.bf16.mxu0 %v105_v0  ;;  %v104_v1 = vld [vmem:[%s141_s2] sm:$0x1f]   ;;  %v35_v3 = vsel %vm33_vm0, 4294967295, %v106_v2  ;;  %vm107_vm2 = vmmov 0   ;;  %v108_v5 = vmov 0   ;;  %vm29_vm3 = vcmask 72704  }
   0x2   :  { %v36_v4 = vsel %vm34_vm1, %v35_v3, 0  ;;  %95 = vmatprep.mubr.msk.bf16.mxu0 %vm107_vm2, %v105_v0  ;;  %103 = vset.pattern.permute.xlu0 %v108_v5  ;;  %v18_v6 = vld [vmem:[%s142_s1] sm:$0xff] }
   0x3   :  { %v38_v7 = vand.u32 %v104_v1, %v36_v4  ;;  %21 = vperm.xlu0 %103, %v18_v6   ;;  %v15_v8 = vld [vmem:[%s143_s0] sm:$0xf] }
   0x5   :  { %94 = vmatpush3.bf16.msra.mxu0 %v38_v7 }
   0x8   :  { %96 = vmatmul.mubr.msk.bf16.vlgmr.msra.gmra.mxu0 %vm29_vm3, %v15_v8 }
  0x7e   :  { %v22_v9 = vpop.permute.xlu0 %21 }
  0xc8   :  { %v74_v10 = vpop.f32.mrf.mxu0 }
  0xc9   :  { %v75_v11 = vadd.f32 %v74_v10, %v22_v9 }
  0xca   :  { %v97_v12 = vpop.f32.mrf.mxu0 }
  0xcb   :  { %vm80_vm4 = vcmp.ge.f32.partialorder %v75_v11, 0.0  ;;  %v81_v13 = vmul.f32 0.01, %v75_v11 }
  0xcc   :  { %v77_v14 = vpop.f32.mrf.mxu0 }
  0xcd   :  { %v82_v15 = vsel %vm80_vm4, %v75_v11, %v81_v13 }
  0xce   :  { %v83_v16 = vpack.c.bf16 %v82_v15, %v82_v15  ;;  %v98_v17 = vpop.f32.mrf.mxu0 }
  0xd0   :  { %84 = vst [vmem:[%s144_s3] sm:$0xf] %v83_v16 }

// kernel: forward.23
= control target key start
LH: loop header
LB: loop body
LE: loop exit
PB: predicated region body
PF: predicated region fallthrough
CT: control target
= control target key end

     0   :  { %s2086_s29 = smov 0   ;;  %s2088_s30 = smov 0   ;;  %s2242_s0 = inlined_call_operand.vmem [shape: bf16[3,4,512], index: 0, kind: input, shape index: {}]   ;;  %s2243_s1 = inlined_call_operand.vmem [shape: bf16[3,8,512], index: 1, kind: input, shape index: {}]   ;;  %s2244_s2 = inlined_call_operand.vmem [shape: f32[3,1,512], index: 2, kind: input, shape index: {}]   ;;  %s2245_s3 = inlined_call_operand.vmem [shape: bf16[3,8,4], index: 3, kind: input, shape index: {}]   ;;  %s2246_s4 = inlined_call_operand.vmem [shape: f32[3,8,1], index: 4, kind: input, shape index: {}]   ;;  %s2247_s5 = inlined_call_operand.vmem [shape: bf16[3,16,8], index: 5, kind: input, shape index: {}]   ;;  %s2248_s6 = inlined_call_operand.vmem [shape: bf16[3,16,8], index: 6, kind: input, shape index: {}]   ;;  %s2249_s7 = inlined_call_operand.vmem [shape: f32[3,16,1], index: 7, kind: input, shape index: {}]   ;;  %s2250_s8 = inlined_call_operand.vmem [shape: bf16[3,8,16], index: 8, kind: input, shape index: {}]   ;;  %s2251_s9 = inlined_call_operand.vmem [shape: f32[3,8,1], index: 9, kind: input, shape index: {}]   ;;  %s2252_s10 = inlined_call_operand.vmem [shape: bf16[3,4,8], index: 10, kind: input, shape index: {}]   ;;  %s2253_s11 = inlined_call_operand.vmem [shape: f32[3,4,1], index: 11, kind: input, shape index: {}]   ;;  %s2254_s12 = inlined_call_operand.vmem [shape: bf16[3,2,4], index: 12, kind: input, shape index: {}]   ;;  %s2255_s13 = inlined_call_operand.vmem [shape: f32[3,2,1], index: 13, kind: input, shape index: {}]   ;;  %s2256_s14 = inlined_call_operand.vmem [shape: f32[3,1,512], index: 14, kind: output, shape index: {}]  }
   0x1   :  { %2258 = sst [smem:[#allocation4_spill]] %s2242_s0  ;;  %s2090_s15 = smov 0  }
   0x2 LB: > { %2259 = sst [smem:[#allocation2_spill]] %s2001_s30  ;;  %s36_s16 = sadd.s32 1, %s2001_s30  ;;  %s2005_s15 = sphi %s2090_s15, %s24_s15   ;;  %s2001_s30 = sphi %s2088_s30, %s2263_s30   ;;  %s1997_s29 = sphi %s2086_s29, %s2262_s29  }
   0x3   : > { %p1881_p0 = scmp.ge.s32.totalorder %s2005_s15, 1  ;;  %p38_p1 = scmp.ge.s32.totalorder %s36_s16, 3 }
   0x4   : > { %p567_p2 = scmp.lt.s32.totalorder %s2005_s15, 4 }
   0x5   : > { %s2265_s16 = smov (%p38_p1, %s36_s16), 0 }
   0x6   : > { %2260 = sst [smem:[#allocation3_spill]] %s2265_s16  ;;  %p568_p3 = pnand %p1881_p0, %p567_p2 }
   0x7   : > { %p684_p4 = scmp.lt.s32.totalorder (!%p568_p3), %s1997_s29, 2  ;;  %s2261_s0 = sld [smem:[#allocation4_spill]] (!%p568_p3) }
   0x8   : > { %571 = sbr.rel (%p568_p3) target bundleno = 1160 (0x488), region = 76 }
   0xd   : > { %v781_v0 = vlaneseq  ;;  %v2007_v1 = vmov 1983009808   ;;  %s2267_s29 = smov (!%p684_p4, %s1997_s29), 2  ;;  %v2008_v4 = vmov 0   ;;  %vm798_vm0 = vcmask 1041408  }
   0xe   : > { %v779_v2 = vunpack.c.l.s4 %v2007_v1  ;;  %843 = vmatprep.mubr.bf16.mxu0 %v2008_v4  ;;  %884 = vmatprep.mubr.bf16.mxu1 %v2008_v4  ;;  %s2114_s17 = sshll.u32 %s2267_s29, 3  ;;  %s2117_s18 = sshll.u32 %s2267_s29, 2  ;;  %vm794_vm1 = vcmask 31744   ;;  %vm944_vm6 = vcmask 1043456   ;;  %vm940_vm7 = vcmask 64512  }
   0xf   : > { %v2107_v3 = vshrl.u32 %v781_v0, 7  ;;  %1960 = vset.pattern.permute.xlu0 %v2008_v4  ;;  %1961 = vset.pattern.permute.xlu1 %v2008_v4  ;;  %s691_s21 = scalar_lea.vmem %s2261_s0, %s2114_s17  ;;  %s715_s24 = scalar_lea.vmem %s2245_s3, %s2117_s18 }
  0x10   : > { %v780_v5 = vunpack.c.0.s8 %v779_v2  ;;  %v769_v7 = vld [vmem:[%s691_s21] sm:$0xff]  ;;  %s719_s27 = scalar_lea.vmem %s2246_s4, %s2114_s17  ;;  %s1928_s28 = sshll.u32 %s2267_s29, 4 }
  0x11   : > { %v777_v9 = vcombine.high %v769_v7, %v769_v7  ;;  %v770_v10 = vld [vmem:[%s719_s27] sm:$0xff]  ;;  %s701_s20 = scalar_lea.vmem %s2243_s1, %s1928_s28  ;;  %s2139_s21 = scalar_lea.vmem %s2249_s7, %s1928_s28 }
  0x12   : > { %v783_v6 = vsub.s32 %v780_v5, %v2107_v3  ;;  %773 = vperm.xlu0 %1960, %v770_v10   ;;  %v893_v14 = vld [vmem:[%s701_s20] sm:$0xff]  ;;  %v894_v15 = vld [vmem:[%s701_s20 + $0x8] sm:$0xff]  ;;  %s750_s16 = scalar_lea.vmem %s2253_s11, %s2117_s18  ;;  %s724_s27 = scalar_lea.vmem %s2247_s5, %s2114_s17 }
  0x13   : > { %v895_v16 = vunpack.c.l.bf16 %v893_v14  ;;  %v896_v17 = vunpack.c.h.bf16 %v893_v14  ;;  %v897_v18 = vunpack.c.l.bf16 %v894_v15  ;;  %v1149_v19 = vld [vmem:[%s2139_s21] sm:$0xff]  ;;  %v898_v23 = vunpack.c.h.bf16 %v894_v15  ;;  %v1150_v40 = vld [vmem:[%s2139_s21 + $0x8] sm:$0xff]  ;;  %s742_s20 = scalar_lea.vmem %s2251_s9, %s2114_s17  ;;  %s1897_s0 = sshll.u32 %s2267_s29, 1 }
  0x14   : > { %v784_v8 = vrot.slane %v769_v7, %v783_v6  ;;  %v791_v13 = vrot.slane %v777_v9, %v783_v6  ;;  %v768_v22 = vld [vmem:[%s715_s24] sm:$0xf]  ;;  %s729_s24 = scalar_lea.vmem %s2248_s6, %s2114_s17  ;;  %1158 = vperm.xlu1 %1961, %v1150_v40   ;;  %s757_s22 = scalar_lea.vmem %s2255_s13, %s1897_s0 }
  0x15   : > { %v924_v24 = vmul.f32 0.01, %v896_v17  ;;  %vm920_vm2 = vcmp.ge.f32.partialorder %v896_v17, 0.0  ;;  %vm919_vm3 = vcmp.ge.f32.partialorder %v895_v16, 0.0  ;;  %v923_v25 = vmul.f32 0.01, %v895_v16  ;;  %s738_s25 = scalar_lea.vmem %s2250_s8, %s2117_s18  ;;  %s746_s28 = scalar_lea.vmem %s2252_s10, %s1897_s0 }
  0x16   : > { %v792_v11 = vcombine.high %v784_v8, %v784_v8  ;;  %v800_v12 = vsel %vm798_vm0, %v784_v8, 0  ;;  %v793_v20 = vcombine.high %v791_v13, %v791_v13  ;;  %v806_v21 = vsel %vm798_vm0, %v791_v13, 0  ;;  %1153 = vperm.xlu0 %1960, %v1149_v19   ;;  %v1307_v28 = vld [vmem:[%s750_s16] sm:$0xf]  ;;  %s753_s0 = scalar_lea.vmem %s2254_s12, %s2267_s29  ;;  %s710_s16 = scalar_lea.vmem %s2244_s2, %s2117_s18 }
  0x17   : > { %v926_v26 = vmul.f32 0.01, %v898_v23  ;;  %vm922_vm4 = vcmp.ge.f32.partialorder %v898_v23, 0.0  ;;  %vm921_vm5 = vcmp.ge.f32.partialorder %v897_v18, 0.0  ;;  %v925_v27 = vmul.f32 0.01, %v897_v18  ;;  %s765_s23 = scalar_lea.vmem %s2256_s14, %s2117_s18 }
  0x18   : > { %1901 = vmatprep.subr.msk.bf16.mxu0 %vm798_vm0, %v792_v11  ;;  %1903 = vmatprep.subr.msk.bf16.mxu1 %vm798_vm0, %v793_v20  ;;  %v928_v29 = vsel %vm920_vm2, %v896_v17, %v924_v24  ;;  %v927_v30 = vsel %vm919_vm3, %v895_v16, %v923_v25  ;;  %v1963_v39 = vld [vmem:[%s729_s24] sm:$0xff]  }
  0x19   : > { %826 = vmatpush1.bf16.msra.mxu0 %v800_v12  ;;  %867 = vmatpush1.bf16.msra.mxu1 %v806_v21  ;;  %v932_v31 = vpack.c.bf16 %v928_v29, %v928_v29  ;;  %v930_v32 = vsel %vm922_vm4, %v898_v23, %v926_v26  ;;  %v931_v33 = vpack.c.bf16 %v927_v30, %v927_v30  ;;  %v1198_v41 = vld [vmem:[%s742_s20] sm:$0xff] }
  0x1a   : > { %v929_v34 = vsel %vm921_vm5, %v897_v18, %v925_v27  ;;  %v934_v35 = vpack.c.bf16 %v930_v32, %v930_v32  ;;  %1310 = vperm.xlu0 %1960, %v1307_v28   ;;  %1201 = vperm.xlu1 %1961, %v1198_v41   ;;  %v1427_v42 = vld [vmem:[%s757_s22] sm:$0x3] }
  0x1b   : > { %v933_v36 = vpack.c.bf16 %v929_v34, %v929_v34  ;;  %v946_v37 = vsel %vm944_vm6, %v931_v33, 0  ;;  %1906 = vmatprep.subr.msk.bf16.mxu0 %vm944_vm6, %v932_v31  ;;  %v1964_v7 = vld [vmem:[%s724_s27] sm:$0xff]  }
  0x1c   : > { %1902 = vmatmul.mubr.msk.bf16.vlgmr.msra.gmra.mxu0 %vm794_vm1, %v768_v22  ;;  %1904 = vmatmul.mubr.msk.bf16.vlgmr.msra.gmra.mxu1 %vm794_vm1, %v768_v22 }
  0x1d   : > { %989 = vmatprep.mubr.bf16.mxu0 %v2008_v4  ;;  %1908 = vmatprep.subr.msk.bf16.mxu1 %vm944_vm6, %v934_v35  ;;  %v952_v38 = vsel %vm944_vm6, %v933_v36, 0 }
  0x1e   : > { %972 = vmatpush1.bf16.msra.mxu0 %v946_v37  ;;  %1015 = vmatpush1.bf16.msra.mxu1 %v952_v38 }
  0x1f   : > { %1032 = vmatprep.mubr.bf16.mxu1 %v2008_v4  ;;  %1430 = vperm.xlu1 %1961, %v1427_v42  }
  0x24   : > { %1907 = vmatmul.mubr.msk.bf16.vlgmr.msra.gmra.mxu0 %vm940_vm7, %v1963_v39  ;;  %1909 = vmatmul.mubr.msk.bf16.vlgmr.msra.gmra.mxu1 %vm940_vm7, %v1963_v39 }
  0x25   : > { %1095 = vmatprep.mubr.bf16.mxu0 %v2008_v4  ;;  %1138 = vmatprep.mubr.bf16.mxu1 %v2008_v4 }
  0x8d   : > { %v774_v43 = vpop.permute.xlu0 %773 }
  0x8f   : > { %v1159_v28 = vpop.permute.xlu1 %1158 }
  0x91   : > { %v1154_v21 = vpop.permute.xlu0 %1153 }
  0xdc   : > { %v845_v44 = vpop.f32.mrf.mxu0  ;;  %v886_v47 = vpop.f32.mrf.mxu1 }
  0xdd   : > { %v846_v45 = vadd.f32 %v845_v44, %v774_v43  ;;  %v887_v50 = vadd.f32 %v886_v47, %v774_v43 }
  0xde   : > { %v847_v46 = vpop.f32.mrf.mxu0  ;;  %v888_v52 = vpop.f32.mrf.mxu1 }
  0xdf   : > { %vm901_vm8 = vcmp.ge.f32.partialorder %v846_v45, 0.0  ;;  %v905_v48 = vmul.f32 0.01, %v846_v45  ;;  %v848_v49 = vadd.f32 %v847_v46, %v774_v43  ;;  %vm903_vm10 = vcmp.ge.f32.partialorder %v887_v50, 0.0 }
  0xe0   : > { %v849_v51 = vpop.f32.mrf.mxu0  ;;  %v907_v56 = vmul.f32 0.01, %v887_v50  ;;  %v889_v57 = vadd.f32 %v888_v52, %v774_v43  ;;  %v890_v59 = vpop.f32.mrf.mxu1 }
  0xe1   : > { %v909_v53 = vsel %vm901_vm8, %v846_v45, %v905_v48  ;;  %vm902_vm9 = vcmp.ge.f32.partialorder %v848_v49, 0.0  ;;  %v906_v54 = vmul.f32 0.01, %v848_v49  ;;  %vm1204_vm8 = vcmask 130048  }
  0xe2   : > { %v913_v55 = vpack.c.bf16 %v909_v53, %v909_v53  ;;  %v850_v58 = vpop.f32.mrf.mxu0  ;;  %v911_v62 = vsel %vm903_vm10, %v887_v50, %v907_v56  ;;  %vm904_vm11 = vcmp.ge.f32.partialorder %v889_v57, 0.0  ;;  %v908_v63 = vmul.f32 0.01, %v889_v57  ;;  %v891_v1 = vpop.f32.mrf.mxu1 }
  0xe3   : > { %v910_v60 = vsel %vm902_vm9, %v848_v49, %v906_v54  ;;  %v915_v2 = vpack.c.bf16 %v911_v62, %v911_v62 }
  0xe4   : > { %v914_v61 = vpack.c.bf16 %v910_v60, %v910_v60  ;;  %v912_v5 = vsel %vm904_vm11, %v889_v57, %v908_v63  ;;  %v1052_v6 = vsel %vm944_vm6, %v913_v55, 0  ;;  %v991_v10 = vpop.f32.mrf.mxu0  ;;  %v1034_v11 = vpop.f32.mrf.mxu1  ;;  %v1169_v63 = vld [vmem:[%s738_s25] sm:$0xf] }
  0xe5   : > { %v916_v8 = vpack.c.bf16 %v912_v5, %v912_v5  ;;  %v1058_v9 = vsel %vm944_vm6, %v915_v2, 0  ;;  %v1202_v2 = vpop.permute.xlu1 %1201 }
  0xe6   : > { %1911 = vmatprep.subr.msk.bf16.mxu0 %vm944_vm6, %v914_v61  ;;  %v993_v12 = vpop.f32.mrf.mxu0  ;;  %v1036_v13 = vpop.f32.mrf.mxu1 }
  0xe7   : > { %1078 = vmatpush1.bf16.msra.mxu0 %v1052_v6  ;;  %1913 = vmatprep.subr.msk.bf16.mxu1 %vm944_vm6, %v916_v8 }
  0xe8   : > { %1121 = vmatpush1.bf16.msra.mxu1 %v1058_v9  ;;  %v995_v14 = vpop.f32.mrf.mxu0  ;;  %v1038_v15 = vpop.f32.mrf.mxu1 }
  0xea   : > { %1912 = vmatmul.mubr.msk.bf16.vlgmr.msra.gmra.mxu0 %vm940_vm7, %v1964_v7  ;;  %v997_v16 = vpop.f32.mrf.mxu0  ;;  %v1040_v18 = vpop.f32.mrf.mxu1 }
  0xeb   : > { %1240 = vmatprep.mubr.bf16.mxu0 %v2008_v4  ;;  %1914 = vmatmul.mubr.msk.bf16.vlgmr.msra.gmra.mxu1 %vm940_vm7, %v1964_v7 }
  0xec   : > { %1281 = vmatprep.mubr.bf16.mxu1 %v2008_v4 }
 0x1aa   : > { %v1097_v17 = vpop.f32.mrf.mxu0 }
 0x1ab   : > { %v1098_v19 = vadd.f32 %v1097_v17, %v991_v10  ;;  %v1140_v23 = vpop.f32.mrf.mxu1 }
 0x1ac   : > { %v1099_v20 = vpop.f32.mrf.mxu0  ;;  %v1141_v30 = vadd.f32 %v1140_v23, %v1034_v11 }
 0x1ad   : > { %v1100_v22 = vadd.f32 %v1099_v20, %v993_v12  ;;  %v1161_v24 = vadd.f32 %v1154_v21, %v1098_v19  ;;  %v1142_v27 = vpop.f32.mrf.mxu1 }
 0x1ae   : > { %v1101_v25 = vpop.f32.mrf.mxu0  ;;  %v1143_v31 = vadd.f32 %v1142_v27, %v1036_v13  ;;  %v1163_v42 = vadd.f32 %v1154_v21, %v1141_v30 }
 0x1af   : > { %v1102_v26 = vadd.f32 %v1101_v25, %v995_v14  ;;  %v1162_v29 = vadd.f32 %v1154_v21, %v1100_v22  ;;  %v1144_v34 = vpop.f32.mrf.mxu1  ;;  %v1178_v35 = vmul.f32 0.01, %v1161_v24  ;;  %vm1170_vm12 = vcmp.ge.f32.partialorder %v1161_v24, 0.0 }
 0x1b0   : > { %v1103_v32 = vpop.f32.mrf.mxu0  ;;  %v1164_v36 = vadd.f32 %v1154_v21, %v1143_v31  ;;  %v1145_v39 = vadd.f32 %v1144_v34, %v1038_v15  ;;  %v1180_v52 = vmul.f32 0.01, %v1163_v42  ;;  %vm1172_vm4 = vcmp.ge.f32.partialorder %v1163_v42, 0.0 }
 0x1b1   : > { %v1165_v33 = vadd.f32 %v1159_v28, %v1102_v26  ;;  %v1104_v37 = vadd.f32 %v1103_v32, %v997_v16  ;;  %v1146_v40 = vpop.f32.mrf.mxu1  ;;  %v1179_v41 = vmul.f32 0.01, %v1162_v29  ;;  %vm1171_vm14 = vcmp.ge.f32.partialorder %v1162_v29, 0.0  ;;  %v1311_v32 = vpop.permute.xlu0 %1310 }
 0x1b2   : > { %v1167_v44 = vadd.f32 %v1159_v28, %v1145_v39  ;;  %v1147_v45 = vadd.f32 %v1146_v40, %v1040_v18  ;;  %v1186_v46 = vsel %vm1170_vm12, %v1161_v24, %v1178_v35  ;;  %v1181_v47 = vmul.f32 0.01, %v1164_v36 }
 0x1b3   : > { %v1182_v38 = vmul.f32 0.01, %v1165_v33  ;;  %vm1174_vm13 = vcmp.ge.f32.partialorder %v1165_v33, 0.0  ;;  %v1166_v43 = vadd.f32 %v1159_v28, %v1104_v37  ;;  %vm1173_vm3 = vcmp.ge.f32.partialorder %v1164_v36, 0.0 }
 0x1b4   : > { %vm1176_vm2 = vcmp.ge.f32.partialorder %v1167_v44, 0.0  ;;  %v1184_v50 = vmul.f32 0.01, %v1167_v44  ;;  %v1168_v51 = vadd.f32 %v1159_v28, %v1147_v45  ;;  %v1187_v53 = vsel %vm1171_vm14, %v1162_v29, %v1179_v41  ;;  %v1290_v29 = vld [vmem:[%s746_s28] sm:$0x3] }
 0x1b5   : > { %vm1175_vm15 = vcmp.ge.f32.partialorder %v1166_v43, 0.0  ;;  %v1183_v48 = vmul.f32 0.01, %v1166_v43  ;;  %v1190_v49 = vsel %vm1174_vm13, %v1165_v33, %v1182_v38  ;;  %v1189_v59 = vsel %vm1173_vm3, %v1164_v36, %v1181_v47 }
 0x1b6   : > { %vm1177_vm5 = vcmp.ge.f32.partialorder %v1168_v51, 0.0  ;;  %v1185_v55 = vmul.f32 0.01, %v1168_v51  ;;  %v1192_v57 = vsel %vm1176_vm2, %v1167_v44, %v1184_v50  ;;  %v1194_v58 = vpack.c.bf16 %v1190_v49, %v1186_v46 }
 0x1b7   : > { %v1191_v54 = vsel %vm1175_vm15, %v1166_v43, %v1183_v48  ;;  %v1188_v61 = vsel %vm1172_vm4, %v1163_v42, %v1180_v52  ;;  %vm1631_vm15 = vcmp.lt.s32.totalorder %v781_v0, 512 }
 0x1b8   : > { %v1195_v56 = vpack.c.bf16 %v1191_v54, %v1187_v53  ;;  %v1193_v60 = vsel %vm1177_vm5, %v1168_v51, %v1185_v55  ;;  %v1196_v1 = vpack.c.bf16 %v1192_v57, %v1188_v61  ;;  %v1410_v57 = vld [vmem:[%s753_s0] sm:$0x1] }
 0x1b9   : > { %v1197_v62 = vpack.c.bf16 %v1193_v60, %v1189_v59  ;;  %v1431_v59 = vpop.permute.xlu1 %1430 }
 0x1ba   : > { %1222 = vmatprep.subr.bf16.mxu0 %v1195_v56 }
 0x1bb   : > { %1223 = vmatpush1.bf16.msra.mxu0 %v1194_v58  ;;  %1263 = vmatprep.subr.bf16.mxu1 %v1197_v62 }
 0x1bc   : > { %1264 = vmatpush1.bf16.msra.mxu1 %v1196_v1 }
 0x1be   : > { %1915 = vmatmul.mubr.msk.bf16.vlgmr.msra.gmra.mxu0 %vm1204_vm8, %v1169_v63 }
 0x1bf   : > { %1360 = vmatprep.mubr.bf16.mxu0 %v2008_v4  ;;  %1916 = vmatmul.mubr.msk.bf16.vlgmr.msra.gmra.mxu1 %vm1204_vm8, %v1169_v63 }
 0x1c0   : > { %1401 = vmatprep.mubr.bf16.mxu1 %v2008_v4 }
 0x27e   : > { %v1242_v5 = vpop.f32.mrf.mxu0 }
 0x27f   : > { %v1243_v6 = vadd.f32 %v1242_v5, %v1202_v2  ;;  %v1283_v10 = vpop.f32.mrf.mxu1 }
 0x280   : > { %v1244_v7 = vpop.f32.mrf.mxu0  ;;  %v1284_v11 = vadd.f32 %v1283_v10, %v1202_v2 }
 0x281   : > { %vm1291_vm9 = vcmp.ge.f32.partialorder %v1243_v6, 0.0  ;;  %v1295_v8 = vmul.f32 0.01, %v1243_v6  ;;  %v1245_v9 = vadd.f32 %v1244_v7, %v1202_v2  ;;  %v1285_v15 = vpop.f32.mrf.mxu1 }
 0x282   : > { %v1246_v12 = vpop.f32.mrf.mxu0  ;;  %vm1293_vm11 = vcmp.ge.f32.partialorder %v1284_v11, 0.0  ;;  %v1297_v17 = vmul.f32 0.01, %v1284_v11  ;;  %v1286_v18 = vadd.f32 %v1285_v15, %v1202_v2  ;;  %v2009_v15 = vmov 1966171168  }
 0x283   : > { %v1299_v13 = vsel %vm1291_vm9, %v1243_v6, %v1295_v8  ;;  %vm1292_vm10 = vcmp.ge.f32.partialorder %v1245_v9, 0.0  ;;  %v1296_v14 = vmul.f32 0.01, %v1245_v9  ;;  %v1287_v21 = vpop.f32.mrf.mxu1 }
 0x284   : > { %v1303_v16 = vpack.c.bf16 %v1299_v13, %v1299_v13  ;;  %v1247_v19 = vpop.f32.mrf.mxu0  ;;  %v1301_v23 = vsel %vm1293_vm11, %v1284_v11, %v1297_v17  ;;  %vm1294_vm12 = vcmp.ge.f32.partialorder %v1286_v18, 0.0  ;;  %v1298_v24 = vmul.f32 0.01, %v1286_v18 }
 0x285   : > { %v1300_v20 = vsel %vm1292_vm10, %v1245_v9, %v1296_v14  ;;  %v1305_v25 = vpack.c.bf16 %v1301_v23, %v1301_v23  ;;  %v1288_v26 = vpop.f32.mrf.mxu1 }
 0x286   : > { %v1304_v22 = vpack.c.bf16 %v1300_v20, %v1300_v20  ;;  %v1302_v27 = vsel %vm1294_vm12, %v1286_v18, %v1298_v24  ;;  %v1317_v28 = vsel %vm944_vm6, %v1303_v16, 0  ;;  %v1548_v16 = vunpack.c.l.s4 %v2009_v15  ;;  %v1530_v20 = vld [vmem:[%s710_s16] sm:$0xf] }
 0x287   : > { %v1306_v30 = vpack.c.bf16 %v1302_v27, %v1302_v27  ;;  %v1323_v31 = vsel %vm944_vm6, %v1305_v25, 0  ;;  %v1531_v25 = vand.u32 2147483647, %v1530_v20 }
 0x288   : > { %1917 = vmatprep.subr.msk.bf16.mxu0 %vm944_vm6, %v1304_v22  ;;  %v1549_v17 = vunpack.c.0.s8 %v1548_v16 }
 0x289   : > { %1343 = vmatpush1.bf16.msra.mxu0 %v1317_v28  ;;  %1919 = vmatprep.subr.msk.bf16.mxu1 %vm944_vm6, %v1306_v30  ;;  %v1596_v30 = vsub.f32 -0.5, %v1531_v25 }
 0x28a   : > { %1384 = vmatpush1.bf16.msra.mxu1 %v1323_v31  ;;  %v1552_v22 = vsub.s32 %v1549_v17, %v2107_v3 }
 0x28c   : > { %1918 = vmatmul.mubr.msk.bf16.vlgmr.msra.gmra.mxu0 %vm940_vm7, %v1290_v29 }
 0x28d   : > { %1480 = vmatprep.mubr.bf16.mxu0 %v2008_v4  ;;  %1920 = vmatmul.mubr.msk.bf16.vlgmr.msra.gmra.mxu1 %vm940_vm7, %v1290_v29  ;;  %v1540_v29 = vsub.f32 0.5, %v1531_v25 }
 0x28e   : > { %1521 = vmatprep.mubr.bf16.mxu1 %v2008_v4 }
 0x34c   : > { %v1362_v33 = vpop.f32.mrf.mxu0 }
 0x34d   : > { %v1363_v34 = vadd.f32 %v1362_v33, %v1311_v32  ;;  %v1403_v38 = vpop.f32.mrf.mxu1 }
 0x34e   : > { %v1364_v35 = vpop.f32.mrf.mxu0  ;;  %v1404_v39 = vadd.f32 %v1403_v38, %v1311_v32 }
 0x34f   : > { %vm1411_vm13 = vcmp.ge.f32.partialorder %v1363_v34, 0.0  ;;  %v1415_v36 = vmul.f32 0.01, %v1363_v34  ;;  %v1365_v37 = vadd.f32 %v1364_v35, %v1311_v32  ;;  %v1405_v43 = vpop.f32.mrf.mxu1 }
 0x350   : > { %v1366_v40 = vpop.f32.mrf.mxu0  ;;  %vm1413_vm14 = vcmp.ge.f32.partialorder %v1404_v39, 0.0  ;;  %v1417_v45 = vmul.f32 0.01, %v1404_v39  ;;  %v1406_v46 = vadd.f32 %v1405_v43, %v1311_v32 }
 0x351   : > { %v1419_v41 = vsel %vm1411_vm13, %v1363_v34, %v1415_v36  ;;  %vm1412_vm6 = vcmp.ge.f32.partialorder %v1365_v37, 0.0  ;;  %v1416_v42 = vmul.f32 0.01, %v1365_v37  ;;  %v1407_v48 = vpop.f32.mrf.mxu1 }
 0x352   : > { %v1423_v44 = vpack.c.bf16 %v1419_v41, %v1419_v41  ;;  %v1367_v4 = vpop.f32.mrf.mxu0  ;;  %v1421_v50 = vsel %vm1413_vm14, %v1404_v39, %v1417_v45  ;;  %vm1414_vm7 = vcmp.ge.f32.partialorder %v1406_v46, 0.0  ;;  %v1418_v51 = vmul.f32 0.01, %v1406_v46 }
 0x353   : > { %v1420_v47 = vsel %vm1412_vm6, %v1365_v37, %v1416_v42  ;;  %v1425_v52 = vpack.c.bf16 %v1421_v50, %v1421_v50  ;;  %v1408_v53 = vpop.f32.mrf.mxu1 }
 0x354   : > { %v1424_v49 = vpack.c.bf16 %v1420_v47, %v1420_v47  ;;  %v1422_v54 = vsel %vm1414_vm7, %v1406_v46, %v1418_v51  ;;  %v1437_v55 = vsel %vm798_vm0, %v1423_v44, 0 }
 0x355   : > { %v1426_v56 = vpack.c.bf16 %v1422_v54, %v1422_v54  ;;  %v1443_v58 = vsel %vm798_vm0, %v1425_v52, 0 }
 0x356   : > { %1921 = vmatprep.subr.msk.bf16.mxu0 %vm798_vm0, %v1424_v49 }
 0x357   : > { %1463 = vmatpush1.bf16.msra.mxu0 %v1437_v55  ;;  %1923 = vmatprep.subr.msk.bf16.mxu1 %vm798_vm0, %v1426_v56 }
 0x358   : > { %1504 = vmatpush1.bf16.msra.mxu1 %v1443_v58 }
 0x35a   : > { %1922 = vmatmul.mubr.msk.bf16.vlgmr.msra.gmra.mxu0 %vm794_vm1, %v1410_v57 }
 0x35b   : > { %1924 = vmatmul.mubr.msk.bf16.vlgmr.msra.gmra.mxu1 %vm794_vm1, %v1410_v57 }
 0x41a   : > { %v1482_v60 = vpop.f32.mrf.mxu0 }
 0x41b   : > { %v1483_v61 = vadd.f32 %v1482_v60, %v1431_v59  ;;  %v1523_v1 = vpop.f32.mrf.mxu1 }
 0x41c   : > { %v1484_v62 = vpop.f32.mrf.mxu0  ;;  %v1524_v5 = vadd.f32 %v1523_v1, %v1431_v59 }
 0x41d   : > { %v1485_v63 = vadd.f32 %v1484_v62, %v1431_v59  ;;  %v1532_v2 = vmax.f32 %v1483_v61, 0.11  ;;  %v1525_v8 = vpop.f32.mrf.mxu1 }
 0x41e   : > { %v1486_v6 = vpop.f32.mrf.mxu0  ;;  %v1534_v9 = vmax.f32 %v1524_v5, 0.11  ;;  %v1526_v10 = vadd.f32 %v1525_v8, %v1431_v59 }
 0x41f   : > { %v1533_v7 = vmax.f32 %v1485_v63, 0.11  ;;  %v1527_v12 = vpop.f32.mrf.mxu1 }
 0x420   : > { %v1487_v11 = vpop.f32.mrf.mxu0  ;;  %v1535_v13 = vmax.f32 %v1526_v10, 0.11 }
 0x421   : > { %1965 = vrcp.f32 %v1533_v7  ;;  %v1528_v14 = vpop.f32.mrf.mxu1  ;;  %v2010_v11 = vmov -1.0  }
 0x422   : > { %1967 = vrcp.f32 %v1532_v2 }
 0x423   : > { %1969 = vrcp.f32 %v1534_v9 }
 0x424   : > { %1971 = vrcp.f32 %v1535_v13 }
 0x42e   : > { %v1966_v18 = vpop.eup %1965 }
 0x42f   : > { %v1968_v19 = vpop.eup %1967 }
 0x430   : > { %v1970_v21 = vpop.eup %1969  ;;  %v1545_v23 = vcombine.low %v1968_v19, %v1966_v18 }
 0x431   : > { %v1972_v24 = vpop.eup %1971 }
 0x432   : > { %v1546_v26 = vcombine.low %v1970_v21, %v1972_v24  ;;  %v1553_v27 = vrot.slane %v1545_v23, %v1552_v22 }
 0x434   : > { %v1560_v28 = vrot.slane %v1546_v26, %v1552_v22 }
 0x436   : > { %v1561_v31 = vcombine.low %v1553_v27, %v1560_v28 }
 0x438   : > { %v1568_v32 = vrot.slane %v1561_v31, %v1552_v22 }
 0x43a   : > { %v1570_v33 = vmul.f32 %v1568_v32, %v1540_v29  ;;  %v1597_v34 = vmul.f32 %v1596_v30, %v1568_v32 }
 0x43c   : > { %v1571_v35 = vmul.f32 0.70710677, %v1570_v33  ;;  %v1598_v36 = vmul.f32 0.70710677, %v1597_v34 }
 0x43e   : > { %v1574_v37 = vand.u32 2147483647, %v1571_v35  ;;  %v1601_v38 = vand.u32 2147483647, %v1598_v36  ;;  %vm1572_vm0 = vcmp.ge.f32.partialorder %v1571_v35, 0.0  ;;  %vm1599_vm1 = vcmp.ge.f32.partialorder %v1598_v36, 0.0 }
 0x43f   : > { %v1573_v12 = vsel %vm1572_vm0, 1.0, %v2010_v11  ;;  %v1600_v15 = vsel %vm1599_vm1, 1.0, %v2010_v11 }
 0x440   : > { %v1575_v39 = vmul.f32 0.3275911, %v1574_v37  ;;  %v1602_v40 = vmul.f32 0.3275911, %v1601_v38  ;;  %v1587_v42 = vsub.f32 0.0, %v1574_v37  ;;  %v1614_v43 = vsub.f32 0.0, %v1601_v38 }
 0x442   : > { %v1576_v41 = vadd.f32 1.0, %v1575_v39  ;;  %v1603_v3 = vadd.f32 1.0, %v1602_v40  ;;  %v1588_v44 = vmul.f32 %v1587_v42, %v1574_v37  ;;  %v1615_v45 = vmul.f32 %v1614_v43, %v1601_v38 }
 0x444   : > { %1973 = vrcp.f32 %v1576_v41  ;;  %v1589_v48 = vmul.f32 1.442695, %v1588_v44  ;;  %v1616_v50 = vmul.f32 1.442695, %v1615_v45 }
 0x445   : > { %1975 = vrcp.f32 %v1603_v3 }
 0x446   : > { %1977 = vpow2.f32 %v1589_v48 }
 0x447   : > { %1979 = vpow2.f32 %v1616_v50 }
 0x451   : > { %v1974_v46 = vpop.eup %1973 }
 0x452   : > { %v1976_v4 = vpop.eup %1975  ;;  %v1578_v47 = vmul.f32 1.0614054, %v1974_v46 }
 0x453   : > { %v1605_v49 = vmul.f32 1.0614054, %v1976_v4  ;;  %v1978_v5 = vpop.eup %1977 }
 0x454   : > { %v1579_v51 = vadd.f32 -1.4531521, %v1578_v47  ;;  %v1980_v7 = vpop.eup %1979 }
 0x455   : > { %v1606_v52 = vadd.f32 -1.4531521, %v1605_v49 }
 0x456   : > { %v1580_v53 = vmul.f32 %v1974_v46, %v1579_v51 }
 0x457   : > { %v1607_v54 = vmul.f32 %v1976_v4, %v1606_v52 }
 0x458   : > { %v1581_v55 = vadd.f32 1.4214138, %v1580_v53 }
 0x459   : > { %v1608_v56 = vadd.f32 1.4214138, %v1607_v54 }
 0x45a   : > { %v1582_v57 = vmul.f32 %v1974_v46, %v1581_v55 }
 0x45b   : > { %v1609_v58 = vmul.f32 %v1976_v4, %v1608_v56 }
 0x45c   : > { %v1583_v59 = vadd.f32 -0.28449672, %v1582_v57 }
 0x45d   : > { %v1610_v60 = vadd.f32 -0.28449672, %v1609_v58 }
 0x45e   : > { %v1584_v61 = vmul.f32 %v1974_v46, %v1583_v59 }
 0x45f   : > { %v1611_v62 = vmul.f32 %v1976_v4, %v1610_v60 }
 0x460   : > { %v1585_v63 = vadd.f32 0.2548296, %v1584_v61 }
 0x461   : > { %v1612_v1 = vadd.f32 0.2548296, %v1611_v62 }
 0x462   : > { %v1586_v2 = vmul.f32 %v1974_v46, %v1585_v63 }
 0x463   : > { %v1613_v6 = vmul.f32 %v1976_v4, %v1612_v1 }
 0x464   : > { %v1591_v8 = vmul.f32 %v1978_v5, %v1586_v2 }
 0x465   : > { %v1618_v9 = vmul.f32 %v1980_v7, %v1613_v6 }
 0x466   : > { %v1592_v10 = vsub.f32 1.0, %v1591_v8 }
 0x467   : > { %v1619_v13 = vsub.f32 1.0, %v1618_v9 }
 0x468   : > { %v1593_v14 = vmul.f32 %v1592_v10, %v1573_v12 }
 0x469   : > { %v1620_v16 = vmul.f32 %v1619_v13, %v1600_v15 }
 0x46a   : > { %v1594_v17 = vadd.f32 1.0, %v1593_v14 }
 0x46b   : > { %v1621_v18 = vadd.f32 1.0, %v1620_v16 }
 0x46c   : > { %v1595_v19 = vmul.f32 0.5, %v1594_v17 }
 0x46d   : > { %v1622_v20 = vmul.f32 0.5, %v1621_v18 }
 0x46f   : > { %v1623_v21 = vsub.f32 %v1595_v19, %v1622_v20 }
 0x471   : > { %v1624_v22 = vmax.f32 %v1623_v21, 1e-09 }
 0x473   : > { %1981 = vlog2.f32 %v1624_v22 }
 0x480   : > { %v1982_v23 = vpop.eup %1981 }
 0x481   : > { %v1626_v24 = vmul.f32 0.6931472, %v1982_v23 }
 0x483   : > { %v1627_v25 = vsub.f32 0.0, %v1626_v24 }
 0x485   : > { %v1628_v26 = vmul.f32 1.442695, %v1627_v25 }
 0x487   : > { %1633 = vst.msk [vmem:[%s765_s23] sm:$0xf] %vm1631_vm15, %v1628_v26 }
 0x488 PF: > { %s24_s15 = sadd.s32 1, %s2005_s15   ;;  %s2262_s29 = sld [smem:[#allocation2_spill]] }
 0x489   : > { %p21_p5 = scmp.ge.s32.totalorder %s24_s15, 5   ;;  %s2263_s30 = sld [smem:[#allocation3_spill]] }
 0x48b   :  { %23 = sbr.rel (!%p21_p5) target bundleno = 2 (0x2), region = 145 }

// kernel: squeeze.14
= control target key start
LH: loop header
LB: loop body
LE: loop exit
PB: predicated region body
PF: predicated region fallthrough
CT: control target
= control target key end

     0   :  { %s260_s8 = smov 104   ;;  %s261_s9 = smov 112   ;;  %vm20_vm0 = vcmask 64512   ;;  %s331_s0 = inlined_call_operand.vmem [shape: bf16[1,4,128], index: 0, kind: input, shape index: {}]   ;;  %s332_s1 = inlined_call_operand.vmem [shape: bf16[4,2,8,8], index: 1, kind: output, shape index: {}]  }
   0x1   :  { %v15_v0 = vld [vmem:[%s331_s0] sm:$0x3]  ;;  %s259_s0 = smov 120   ;;  %s262_s10 = smov 96  }
   0x2   :  { %v16_v1 = vunpack.c.l.bf16 %v15_v0  ;;  %s263_s11 = smov 88   ;;  %s264_s12 = smov 80  }
   0x3   :  { %s265_s13 = smov 72   ;;  %s266_s14 = smov 64  }
   0x4   :  { %18 = vst [vmem:[#allocation1] sm:$0xf] %v16_v1  ;;  %s267_s15 = smov 56   ;;  %s268_s16 = smov 48  }
   0x5   :  { %s269_s17 = smov 40   ;;  %s270_s18 = smov 32  }
   0x6   :  { %s271_s19 = smov 24   ;;  %s272_s20 = smov 16  }
   0x7   :  { %s273_s21 = smov 8  }
   0xb   :  { %v23_v2 = vld [vmem:[#allocation1] sm:$0xf]  }
   0xc   :  { %v39_v3 = vld [vmem:[#allocation1] sm:$0xf]   ;;  %24 = vrot.lane.b32.xlu0 %v23_v2, %s259_s0 }
   0xd   :  { %40 = vrot.lane.b32.xlu1 %v39_v3, %s260_s8  ;;  %v31_v4 = vld [vmem:[#allocation1] sm:$0xf]  }
   0xe   :  { %v47_v5 = vld [vmem:[#allocation1] sm:$0xf]  }
   0xf   :  { %v19_v6 = vld [vmem:[#allocation1] sm:$0xf]  }
  0x10   :  { %32 = vrot.lane.b32.xlu0 %v31_v4, %s261_s9  ;;  %v55_v7 = vld [vmem:[#allocation1] sm:$0xf]   ;;  %21 = vst.msk [vmem:[#allocation0] ss:$16 sm:$0x3] %vm20_vm0, %v19_v6  }
  0x11   :  { %48 = vrot.lane.b32.xlu1 %v47_v5, %s262_s10  ;;  %v63_v8 = vld [vmem:[#allocation1] sm:$0xf]   ;;  %22 = vst.msk [vmem:[#allocation0] ss:$16 sm:$0xc] %vm20_vm0, %v19_v6  }
  0x12   :  { %v71_v9 = vld [vmem:[#allocation1] sm:$0xf]  }
  0x13   :  { %v79_v10 = vld [vmem:[#allocation1] sm:$0xf]  }
  0x14   :  { %56 = vrot.lane.b32.xlu0 %v55_v7, %s263_s11  ;;  %v87_v11 = vld [vmem:[#allocation1] sm:$0xf]  }
  0x15   :  { %64 = vrot.lane.b32.xlu1 %v63_v8, %s264_s12  ;;  %v95_v12 = vld [vmem:[#allocation1] sm:$0xf]  }
  0x16   :  { %v103_v13 = vld [vmem:[#allocation1] sm:$0xf]  }
  0x17   :  { %v111_v14 = vld [vmem:[#allocation1] sm:$0xf]  }
  0x18   :  { %72 = vrot.lane.b32.xlu0 %v71_v9, %s265_s13  ;;  %v119_v15 = vld [vmem:[#allocation1] sm:$0xf]  }
  0x19   :  { %80 = vrot.lane.b32.xlu1 %v79_v10, %s266_s14  ;;  %v127_v16 = vld [vmem:[#allocation1] sm:$0xf]  }
  0x1a   :  { %v135_v17 = vld [vmem:[#allocation1] sm:$0xf]  }
  0x1c   :  { %88 = vrot.lane.b32.xlu0 %v87_v11, %s267_s15 }
  0x1d   :  { %96 = vrot.lane.b32.xlu1 %v95_v12, %s268_s16 }
  0x20   :  { %104 = vrot.lane.b32.xlu0 %v103_v13, %s269_s17 }
  0x21   :  { %112 = vrot.lane.b32.xlu1 %v111_v14, %s270_s18 }
  0x24   :  { %120 = vrot.lane.b32.xlu0 %v119_v15, %s271_s19 }
  0x25   :  { %128 = vrot.lane.b32.xlu1 %v127_v16, %s272_s20 }
  0x28   :  { %136 = vrot.lane.b32.xlu0 %v135_v17, %s273_s21 }
  0x7e   :  { %v25_v18 = vpop.permute.xlu0 %24  }
  0x7f   :  { %v41_v19 = vpop.permute.xlu1 %40   ;;  %28 = vst.msk [vmem:[#allocation0 + $0x1] ss:$16 sm:$0x3] %vm20_vm0, %v25_v18   ;;  %30 = vst.msk [vmem:[#allocation0 + $0x1] ss:$16 sm:$0xc] %vm20_vm0, %v25_v18  }
  0x80   :  { %44 = vst.msk [vmem:[#allocation0 + $0x3] ss:$16 sm:$0x3] %vm20_vm0, %v41_v19   ;;  %46 = vst.msk [vmem:[#allocation0 + $0x3] ss:$16 sm:$0xc] %vm20_vm0, %v41_v19  }
  0x82   :  { %v33_v20 = vpop.permute.xlu0 %32  }
  0x83   :  { %v49_v21 = vpop.permute.xlu1 %48   ;;  %36 = vst.msk [vmem:[#allocation0 + $0x2] ss:$16 sm:$0x3] %vm20_vm0, %v33_v20   ;;  %38 = vst.msk [vmem:[#allocation0 + $0x2] ss:$16 sm:$0xc] %vm20_vm0, %v33_v20  }
  0x84   :  { %52 = vst.msk [vmem:[#allocation0 + $0x4] ss:$16 sm:$0x3] %vm20_vm0, %v49_v21   ;;  %54 = vst.msk [vmem:[#allocation0 + $0x4] ss:$16 sm:$0xc] %vm20_vm0, %v49_v21  }
  0x86   :  { %v57_v22 = vpop.permute.xlu0 %56  }
  0x87   :  { %v65_v23 = vpop.permute.xlu1 %64   ;;  %60 = vst.msk [vmem:[#allocation0 + $0x5] ss:$16 sm:$0x3] %vm20_vm0, %v57_v22   ;;  %62 = vst.msk [vmem:[#allocation0 + $0x5] ss:$16 sm:$0xc] %vm20_vm0, %v57_v22  }
  0x88   :  { %68 = vst.msk [vmem:[#allocation0 + $0x6] ss:$16 sm:$0x3] %vm20_vm0, %v65_v23   ;;  %70 = vst.msk [vmem:[#allocation0 + $0x6] ss:$16 sm:$0xc] %vm20_vm0, %v65_v23  }
  0x8a   :  { %v73_v24 = vpop.permute.xlu0 %72  }
  0x8b   :  { %v81_v25 = vpop.permute.xlu1 %80   ;;  %76 = vst.msk [vmem:[#allocation0 + $0x7] ss:$16 sm:$0x3] %vm20_vm0, %v73_v24   ;;  %78 = vst.msk [vmem:[#allocation0 + $0x7] ss:$16 sm:$0xc] %vm20_vm0, %v73_v24  }
  0x8c   :  { %84 = vst.msk [vmem:[#allocation0 + $0x8] ss:$16 sm:$0x3] %vm20_vm0, %v81_v25   ;;  %86 = vst.msk [vmem:[#allocation0 + $0x8] ss:$16 sm:$0xc] %vm20_vm0, %v81_v25  }
  0x8e   :  { %v89_v26 = vpop.permute.xlu0 %88  }
  0x8f   :  { %v97_v27 = vpop.permute.xlu1 %96   ;;  %92 = vst.msk [vmem:[#allocation0 + $0x9] ss:$16 sm:$0x3] %vm20_vm0, %v89_v26   ;;  %94 = vst.msk [vmem:[#allocation0 + $0x9] ss:$16 sm:$0xc] %vm20_vm0, %v89_v26  }
  0x90   :  { %100 = vst.msk [vmem:[#allocation0 + $0xa] ss:$16 sm:$0x3] %vm20_vm0, %v97_v27   ;;  %102 = vst.msk [vmem:[#allocation0 + $0xa] ss:$16 sm:$0xc] %vm20_vm0, %v97_v27  }
  0x92   :  { %v105_v28 = vpop.permute.xlu0 %104   ;;  %v148_v33 = vld [vmem:[#allocation0] sm:$0xff]  ;;  %v161_v34 = vld [vmem:[#allocation0 + $0x10] sm:$0xff] }
  0x93   :  { %v113_v29 = vpop.permute.xlu1 %112   ;;  %108 = vst.msk [vmem:[#allocation0 + $0xb] ss:$16 sm:$0x3] %vm20_vm0, %v105_v28   ;;  %110 = vst.msk [vmem:[#allocation0 + $0xb] ss:$16 sm:$0xc] %vm20_vm0, %v105_v28  }
  0x94   :  { %116 = vst.msk [vmem:[#allocation0 + $0xc] ss:$16 sm:$0x3] %vm20_vm0, %v113_v29   ;;  %118 = vst.msk [vmem:[#allocation0 + $0xc] ss:$16 sm:$0xc] %vm20_vm0, %v113_v29  }
  0x95   :  { %v177_v35 = vld [vmem:[#allocation0 + $0x20] sm:$0xff]  ;;  %v193_v39 = vld [vmem:[#allocation0 + $0x30] sm:$0xff] }
  0x96   :  { %v121_v30 = vpop.permute.xlu0 %120  }
  0x97   :  { %v129_v31 = vpop.permute.xlu1 %128   ;;  %124 = vst.msk [vmem:[#allocation0 + $0xd] ss:$16 sm:$0x3] %vm20_vm0, %v121_v30   ;;  %126 = vst.msk [vmem:[#allocation0 + $0xd] ss:$16 sm:$0xc] %vm20_vm0, %v121_v30  }
  0x98   :  { %132 = vst.msk [vmem:[#allocation0 + $0xe] ss:$16 sm:$0x3] %vm20_vm0, %v129_v31   ;;  %134 = vst.msk [vmem:[#allocation0 + $0xe] ss:$16 sm:$0xc] %vm20_vm0, %v129_v31  }
  0x9a   :  { %v137_v32 = vpop.permute.xlu0 %136  }
  0x9b   :  { %140 = vst.msk [vmem:[#allocation0 + $0xf] ss:$16 sm:$0x3] %vm20_vm0, %v137_v32   ;;  %142 = vst.msk [vmem:[#allocation0 + $0xf] ss:$16 sm:$0xc] %vm20_vm0, %v137_v32  }
  0xa2   :  { %v154_v36 = vld [vmem:[#allocation0 + $0x8] sm:$0xff]  ;;  %v169_v37 = vld [vmem:[#allocation0 + $0x18] sm:$0xff] }
  0xa3   :  { %v185_v38 = vld [vmem:[#allocation0 + $0x28] sm:$0xff]  ;;  %v224_v40 = vpack.c.bf16 %v154_v36, %v148_v33  ;;  %v229_v41 = vpack.c.bf16 %v169_v37, %v161_v34  ;;  %v201_v43 = vld [vmem:[#allocation0 + $0x38] sm:$0xff] }
  0xa4   :  { %v234_v42 = vpack.c.bf16 %v185_v38, %v177_v35  ;;  %v239_v44 = vpack.c.bf16 %v201_v43, %v193_v39 }
  0xa5   :  { %225 = vst [vmem:[%s332_s1] sm:$0xff] %v224_v40   ;;  %241 = vst [vmem:[%s332_s1 + $0x8] sm:$0xff] %v229_v41  }
  0xa6   :  { %242 = vst [vmem:[%s332_s1 + $0x10] sm:$0xff] %v234_v42   ;;  %243 = vst [vmem:[%s332_s1 + $0x18] sm:$0xff] %v239_v44  }

// kernel: forward.13
= control target key start
LH: loop header
LB: loop body
LE: loop exit
PB: predicated region body
PF: predicated region fallthrough
CT: control target
= control target key end

     0   :  { %vm62_vm0 = vcmask 1043456   ;;  %v150_v0 = vmov 0.0   ;;  %vm151_vm1 = vmmov 0   ;;  %v152_v3 = vmov 0   ;;  %s197_s2 = inlined_call_operand.vmem [shape: bf16[1,72,128], index: 2, kind: input, shape index: {}]   ;;  %s198_s1 = inlined_call_operand.vmem [shape: f32[1,4,1], index: 1, kind: input, shape index: {}]   ;;  %s199_s0 = inlined_call_operand.vmem [shape: bf16[1,4,72], index: 0, kind: input, shape index: {}]   ;;  %s200_s3 = inlined_call_operand.vmem [shape: bf16[1,4,128], index: 3, kind: output, shape index: {}]  }
   0x1   :  { %127 = vmatprep.subr.bf16.mxu0 %v150_v0  ;;  %v145_v1 = vld [vmem:[%s197_s2 + $0x20] ss:$0 sps:$4 sm:$0xff]   ;;  %137 = vmatprep.mubr.msk.bf16.mxu0 %vm151_vm1, %v150_v0  ;;  %v146_v4 = vld [vmem:[%s197_s2 + $0x18] sm:$0xff]   ;;  %v147_v6 = vld [vmem:[%s197_s2 + $0x10] sm:$0xff]   ;;  %vm58_vm2 = vcmask 588800  }
   0x2   :  { %v64_v2 = vsel %vm62_vm0, %v145_v1, 0  ;;  %144 = vset.pattern.permute.xlu0 %v152_v3  ;;  %v25_v5 = vld [vmem:[%s198_s1] sm:$0xf]  ;;  %v148_v7 = vld [vmem:[%s197_s2 + $0x8] sm:$0xff]  }
   0x3   :  { %128 = vmatpush3.bf16.msra.mxu0 %v64_v2  ;;  %28 = vperm.xlu0 %144, %v25_v5   ;;  %v149_v8 = vld [vmem:[%s197_s2] sm:$0xff]  }
   0x4   :  { %129 = vmatprep.subr.bf16.mxu0 %v150_v0  ;;  %v15_v9 = vld [vmem:[%s199_s0] sm:$0x3] }
   0x7   :  { %130 = vmatpush3.bf16.msra.mxu0 %v146_v4 }
   0x8   :  { %131 = vmatprep.subr.bf16.mxu0 %v150_v0 }
   0xb   :  { %132 = vmatpush3.bf16.msra.mxu0 %v147_v6 }
   0xc   :  { %133 = vmatprep.subr.bf16.mxu0 %v150_v0 }
   0xf   :  { %134 = vmatpush3.bf16.msra.mxu0 %v148_v7 }
  0x10   :  { %135 = vmatprep.subr.bf16.mxu0 %v150_v0 }
  0x13   :  { %136 = vmatpush3.bf16.msra.mxu0 %v149_v8 }
  0x16   :  { %138 = vmatmul.mubr.msk.bf16.vlgmr.msra.gmra.mxu0 %vm58_vm2, %v15_v9 }
  0x7e   :  { %v29_v10 = vpop.permute.xlu0 %28 }
  0xd6   :  { %v100_v11 = vpop.f32.mrf.mxu0 }
  0xd7   :  { %v101_v12 = vadd.f32 %v100_v11, %v29_v10 }
  0xd8   :  { %v139_v13 = vpop.f32.mrf.mxu0 }
  0xd9   :  { %vm106_vm3 = vcmp.ge.f32.partialorder %v101_v12, 0.0  ;;  %v107_v14 = vmul.f32 0.01, %v101_v12 }
  0xda   :  { %v103_v15 = vpop.f32.mrf.mxu0 }
  0xdb   :  { %v108_v16 = vsel %vm106_vm3, %v101_v12, %v107_v14 }
  0xdc   :  { %v109_v17 = vpack.c.bf16 %v108_v16, %v108_v16  ;;  %v140_v18 = vpop.f32.mrf.mxu0 }
  0xde   :  { %110 = vst [vmem:[%s200_s3] sm:$0x3] %v109_v17 }

// kernel: squeeze.15
= control target key start
LH: loop header
LB: loop body
LE: loop exit
PB: predicated region body
PF: predicated region fallthrough
CT: control target
= control target key end

     0   :  { %s177_s8 = smov 104   ;;  %s178_s9 = smov 112   ;;  %vm20_vm0 = vcmask 64512   ;;  %s226_s0 = inlined_call_operand.vmem [shape: bf16[1,2,128], index: 0, kind: input, shape index: {}]   ;;  %s227_s1 = inlined_call_operand.vmem [shape: bf16[2,2,8,8], index: 1, kind: output, shape index: {}]  }
   0x1   :  { %v15_v0 = vld [vmem:[%s226_s0] sm:$0x1]  ;;  %s176_s0 = smov 120   ;;  %s179_s10 = smov 96  }
   0x2   :  { %v16_v1 = vunpack.c.l.bf16 %v15_v0  ;;  %s180_s11 = smov 88   ;;  %s181_s12 = smov 80  }
   0x3   :  { %s182_s13 = smov 72   ;;  %s183_s14 = smov 64  }
   0x4   :  { %18 = vst [vmem:[#allocation1] sm:$0x3] %v16_v1  ;;  %s184_s15 = smov 56   ;;  %s185_s16 = smov 48  }
   0x5   :  { %s186_s17 = smov 40   ;;  %s187_s18 = smov 32  }
   0x6   :  { %s188_s19 = smov 24   ;;  %s189_s20 = smov 16  }
   0x7   :  { %s190_s21 = smov 8  }
   0xb   :  { %v22_v2 = vld [vmem:[#allocation1] sm:$0x3]  }
   0xc   :  { %v34_v3 = vld [vmem:[#allocation1] sm:$0x3]   ;;  %23 = vrot.lane.b32.xlu0 %v22_v2, %s176_s0 }
   0xd   :  { %35 = vrot.lane.b32.xlu1 %v34_v3, %s177_s8  ;;  %v28_v4 = vld [vmem:[#allocation1] sm:$0x3]  }
   0xe   :  { %v40_v5 = vld [vmem:[#allocation1] sm:$0x3]  }
   0xf   :  { %v19_v6 = vld [vmem:[#allocation1] sm:$0x3]  }
  0x10   :  { %29 = vrot.lane.b32.xlu0 %v28_v4, %s178_s9  ;;  %v46_v7 = vld [vmem:[#allocation1] sm:$0x3]   ;;  %21 = vst.msk [vmem:[#allocation0] ss:$16 sm:$0x3] %vm20_vm0, %v19_v6  }
  0x11   :  { %41 = vrot.lane.b32.xlu1 %v40_v5, %s179_s10  ;;  %v52_v8 = vld [vmem:[#allocation1] sm:$0x3]  }
  0x12   :  { %v58_v9 = vld [vmem:[#allocation1] sm:$0x3]  }
  0x13   :  { %v64_v10 = vld [vmem:[#allocation1] sm:$0x3]  }
  0x14   :  { %47 = vrot.lane.b32.xlu0 %v46_v7, %s180_s11  ;;  %v70_v11 = vld [vmem:[#allocation1] sm:$0x3]  }
  0x15   :  { %53 = vrot.lane.b32.xlu1 %v52_v8, %s181_s12  ;;  %v76_v12 = vld [vmem:[#allocation1] sm:$0x3]  }
  0x16   :  { %v82_v13 = vld [vmem:[#allocation1] sm:$0x3]  }
  0x17   :  { %v88_v14 = vld [vmem:[#allocation1] sm:$0x3]  }
  0x18   :  { %59 = vrot.lane.b32.xlu0 %v58_v9, %s182_s13  ;;  %v94_v15 = vld [vmem:[#allocation1] sm:$0x3]  }
  0x19   :  { %65 = vrot.lane.b32.xlu1 %v64_v10, %s183_s14  ;;  %v100_v16 = vld [vmem:[#allocation1] sm:$0x3]  }
  0x1a   :  { %v106_v17 = vld [vmem:[#allocation1] sm:$0x3]  }
  0x1c   :  { %71 = vrot.lane.b32.xlu0 %v70_v11, %s184_s15 }
  0x1d   :  { %77 = vrot.lane.b32.xlu1 %v76_v12, %s185_s16 }
  0x20   :  { %83 = vrot.lane.b32.xlu0 %v82_v13, %s186_s17 }
  0x21   :  { %89 = vrot.lane.b32.xlu1 %v88_v14, %s187_s18 }
  0x24   :  { %95 = vrot.lane.b32.xlu0 %v94_v15, %s188_s19 }
  0x25   :  { %101 = vrot.lane.b32.xlu1 %v100_v16, %s189_s20 }
  0x28   :  { %107 = vrot.lane.b32.xlu0 %v106_v17, %s190_s21 }
  0x7e   :  { %v24_v18 = vpop.permute.xlu0 %23  }
  0x7f   :  { %v36_v19 = vpop.permute.xlu1 %35   ;;  %27 = vst.msk [vmem:[#allocation0 + $0x1] ss:$16 sm:$0x3] %vm20_vm0, %v24_v18  }
  0x80   :  { %39 = vst.msk [vmem:[#allocation0 + $0x3] ss:$16 sm:$0x3] %vm20_vm0, %v36_v19  }
  0x82   :  { %v30_v20 = vpop.permute.xlu0 %29  }
  0x83   :  { %v42_v21 = vpop.permute.xlu1 %41   ;;  %33 = vst.msk [vmem:[#allocation0 + $0x2] ss:$16 sm:$0x3] %vm20_vm0, %v30_v20  }
  0x84   :  { %45 = vst.msk [vmem:[#allocation0 + $0x4] ss:$16 sm:$0x3] %vm20_vm0, %v42_v21  }
  0x86   :  { %v48_v22 = vpop.permute.xlu0 %47  }
  0x87   :  { %v54_v23 = vpop.permute.xlu1 %53   ;;  %51 = vst.msk [vmem:[#allocation0 + $0x5] ss:$16 sm:$0x3] %vm20_vm0, %v48_v22  }
  0x88   :  { %57 = vst.msk [vmem:[#allocation0 + $0x6] ss:$16 sm:$0x3] %vm20_vm0, %v54_v23  }
  0x8a   :  { %v60_v24 = vpop.permute.xlu0 %59  }
  0x8b   :  { %v66_v25 = vpop.permute.xlu1 %65   ;;  %63 = vst.msk [vmem:[#allocation0 + $0x7] ss:$16 sm:$0x3] %vm20_vm0, %v60_v24  }
  0x8c   :  { %69 = vst.msk [vmem:[#allocation0 + $0x8] ss:$16 sm:$0x3] %vm20_vm0, %v66_v25  }
  0x8e   :  { %v72_v26 = vpop.permute.xlu0 %71  }
  0x8f   :  { %v78_v27 = vpop.permute.xlu1 %77   ;;  %75 = vst.msk [vmem:[#allocation0 + $0x9] ss:$16 sm:$0x3] %vm20_vm0, %v72_v26  }
  0x90   :  { %81 = vst.msk [vmem:[#allocation0 + $0xa] ss:$16 sm:$0x3] %vm20_vm0, %v78_v27  }
  0x92   :  { %v84_v28 = vpop.permute.xlu0 %83   ;;  %v117_v33 = vld [vmem:[#allocation0] sm:$0xff]  ;;  %v130_v34 = vld [vmem:[#allocation0 + $0x10] sm:$0xff] }
  0x93   :  { %v90_v29 = vpop.permute.xlu1 %89   ;;  %87 = vst.msk [vmem:[#allocation0 + $0xb] ss:$16 sm:$0x3] %vm20_vm0, %v84_v28  }
  0x94   :  { %93 = vst.msk [vmem:[#allocation0 + $0xc] ss:$16 sm:$0x3] %vm20_vm0, %v90_v29  }
  0x96   :  { %v96_v30 = vpop.permute.xlu0 %95  }
  0x97   :  { %v102_v31 = vpop.permute.xlu1 %101   ;;  %99 = vst.msk [vmem:[#allocation0 + $0xd] ss:$16 sm:$0x3] %vm20_vm0, %v96_v30  }
  0x98   :  { %105 = vst.msk [vmem:[#allocation0 + $0xe] ss:$16 sm:$0x3] %vm20_vm0, %v102_v31  }
  0x9a   :  { %v108_v32 = vpop.permute.xlu0 %107  }
  0x9b   :  { %111 = vst.msk [vmem:[#allocation0 + $0xf] ss:$16 sm:$0x3] %vm20_vm0, %v108_v32  }
  0xa2   :  { %v123_v35 = vld [vmem:[#allocation0 + $0x8] sm:$0xff]  ;;  %v138_v36 = vld [vmem:[#allocation0 + $0x18] sm:$0xff] }
  0xa3   :  { %v153_v37 = vpack.c.bf16 %v123_v35, %v117_v33  ;;  %v158_v38 = vpack.c.bf16 %v138_v36, %v130_v34 }
  0xa5   :  { %154 = vst [vmem:[%s227_s1] sm:$0xff] %v153_v37   ;;  %160 = vst [vmem:[%s227_s1 + $0x8] sm:$0xff] %v158_v38  }

// kernel: forward.14
= control target key start
LH: loop header
LB: loop body
LE: loop exit
PB: predicated region body
PF: predicated region fallthrough
CT: control target
= control target key end

     0   :  { %vm46_vm0 = vcmask 1041408   ;;  %v124_v0 = vmov 0.0   ;;  %vm125_vm1 = vmmov 0   ;;  %v126_v5 = vmov 0   ;;  %s165_s2 = inlined_call_operand.vmem [shape: bf16[1,36,128], index: 2, kind: input, shape index: {}]   ;;  %s166_s1 = inlined_call_operand.vmem [shape: f32[1,2,1], index: 1, kind: input, shape index: {}]   ;;  %s167_s0 = inlined_call_operand.vmem [shape: bf16[1,2,36], index: 0, kind: input, shape index: {}]   ;;  %s168_s3 = inlined_call_operand.vmem [shape: bf16[1,2,128], index: 3, kind: output, shape index: {}]  }
   0x1   :  { %107 = vmatprep.subr.bf16.mxu0 %v124_v0  ;;  %v121_v1 = vld [vmem:[%s165_s2 + $0x10] ss:$0 sps:$4 sm:$0x33]   ;;  %113 = vmatprep.mubr.msk.bf16.mxu0 %vm125_vm1, %v124_v0  ;;  %v122_v3 = vld [vmem:[%s165_s2 + $0x8] sm:$0xff]   ;;  %v21_v4 = vld [vmem:[%s166_s1] sm:$0x3] }
   0x2   :  { %v48_v2 = vsel %vm46_vm0, %v121_v1, 0  ;;  %120 = vset.pattern.permute.xlu0 %v126_v5  ;;  %v123_v6 = vld [vmem:[%s165_s2] sm:$0xff]   ;;  %vm42_vm2 = vcmask 293888  }
   0x3   :  { %108 = vmatpush3.bf16.msra.mxu0 %v48_v2  ;;  %24 = vperm.xlu0 %120, %v21_v4   ;;  %v15_v7 = vld [vmem:[%s167_s0] sm:$0x1] }
   0x4   :  { %109 = vmatprep.subr.bf16.mxu0 %v124_v0 }
   0x7   :  { %110 = vmatpush3.bf16.msra.mxu0 %v122_v3 }
   0x8   :  { %111 = vmatprep.subr.bf16.mxu0 %v124_v0 }
   0xb   :  { %112 = vmatpush3.bf16.msra.mxu0 %v123_v6 }
   0xe   :  { %114 = vmatmul.mubr.msk.bf16.vlgmr.msra.gmra.mxu0 %vm42_vm2, %v15_v7 }
  0x7e   :  { %v25_v8 = vpop.permute.xlu0 %24 }
  0xce   :  { %v84_v9 = vpop.f32.mrf.mxu0 }
  0xcf   :  { %v85_v10 = vadd.f32 %v84_v9, %v25_v8 }
  0xd0   :  { %v115_v11 = vpop.f32.mrf.mxu0 }
  0xd1   :  { %vm90_vm3 = vcmp.ge.f32.partialorder %v85_v10, 0.0  ;;  %v91_v12 = vmul.f32 0.01, %v85_v10 }
  0xd2   :  { %v87_v13 = vpop.f32.mrf.mxu0 }
  0xd3   :  { %v92_v14 = vsel %vm90_vm3, %v85_v10, %v91_v12 }
  0xd4   :  { %v93_v15 = vpack.c.bf16 %v92_v14, %v92_v14  ;;  %v116_v16 = vpop.f32.mrf.mxu0 }
  0xd6   :  { %94 = vst [vmem:[%s168_s3] sm:$0x1] %v93_v15 }

// kernel: squeeze.17
= control target key start
LH: loop header
LB: loop body
LE: loop exit
PB: predicated region body
PF: predicated region fallthrough
CT: control target
= control target key end

     0   :  { %s197_s0 = inlined_call_operand.vmem [shape: f32[128], index: 0, kind: input, shape index: {}]   ;;  %s198_s1 = inlined_call_operand.hbm [shape: f32[2,1,8,8], index: 1, kind: output, shape index: {}]  }
   0x1   :  { %v6_v0 = vld [vmem:[%s197_s0] sm:$0x1] }
   0x2   :  { %7 = vst [vmem:[#allocation2] sm:$0x1] %v6_v0 }
   0x3   :  { %2 = vsyncpa [#allocation1], 0  ;;  %s149_s0 = smov 120   ;;  %s150_s8 = smov 104   ;;  %vm9_vm0 = vcmask 64512  }
   0x4   :  { %s151_s9 = smov 112   ;;  %s152_s10 = smov 96  }
   0x5   :  { %s153_s11 = smov 88   ;;  %s154_s12 = smov 80  }
   0x6   :  { %s155_s13 = smov 72   ;;  %s156_s14 = smov 64  }
   0x7   :  { %s157_s15 = smov 56   ;;  %s158_s16 = smov 48  }
   0x8   :  { %s159_s17 = smov 40   ;;  %s160_s18 = smov 32  }
   0x9   :  { %v11_v1 = vld [vmem:[#allocation2] sm:$0x1]   ;;  %s161_s19 = smov 24   ;;  %s162_s20 = smov 16  }
   0xa   :  { %v23_v2 = vld [vmem:[#allocation2] sm:$0x1]   ;;  %12 = vrot.lane.b32.xlu0 %v11_v1, %s149_s0  ;;  %s163_s21 = smov 8   ;;  %s164_s22 = smov [#allocation0]  }
   0xb   :  { %24 = vrot.lane.b32.xlu1 %v23_v2, %s150_s8  ;;  %v17_v3 = vld [vmem:[#allocation2] sm:$0x1]   ;;  %s105_s23 = sshll.u32 %s164_s22, 4  ;;  %s106_s23 = int_to_ptr.vmem [resolvable:$true] %s105_s23 }
   0xc   :  { %v29_v4 = vld [vmem:[#allocation2] sm:$0x1]   ;;  %s127_s24 = scalar_lea.vmem %s106_s23, 256  ;;  %p132_p1 = scmp.lt.s32.totalorder %s106_s23, %s106_s23 }
   0xd   :  { %v35_v5 = vld [vmem:[#allocation2] sm:$0x1]   ;;  %p128_p0 = scmp.ne.s32.totalorder %s106_s23, %s127_s24  ;;  %p133_p2 = scmp.lt.s32.totalorder %s127_s24, %s127_s24 }
   0xe   :  { %18 = vrot.lane.b32.xlu0 %v17_v3, %s151_s9  ;;  %v41_v6 = vld [vmem:[#allocation2] sm:$0x1]  }
   0xf   :  { %30 = vrot.lane.b32.xlu1 %v29_v4, %s152_s10  ;;  %v47_v7 = vld [vmem:[#allocation2] sm:$0x1]   ;;  %p134_p3 = por %p133_p2, %p132_p1 }
  0x10   :  { %v53_v8 = vld [vmem:[#allocation2] sm:$0x1]  }
  0x11   :  { %v59_v9 = vld [vmem:[#allocation2] sm:$0x1]   ;;  %p135_p4 = pnand %p134_p3, %p128_p0 }
  0x12   :  { %36 = vrot.lane.b32.xlu0 %v35_v5, %s153_s11  ;;  %v65_v10 = vld [vmem:[#allocation2] sm:$0x1]  }
  0x13   :  { %42 = vrot.lane.b32.xlu1 %v41_v6, %s154_s12  ;;  %v8_v11 = vld [vmem:[#allocation2] sm:$0x1]  }
  0x14   :  { %10 = vst.msk [vmem:[#allocation0] sm:$0x1] %vm9_vm0, %v8_v11   ;;  %v71_v12 = vld [vmem:[#allocation2] sm:$0x1]  }
  0x15   :  { %v77_v13 = vld [vmem:[#allocation2] sm:$0x1]  }
  0x16   :  { %48 = vrot.lane.b32.xlu0 %v47_v7, %s155_s13  ;;  %v83_v14 = vld [vmem:[#allocation2] sm:$0x1]  }
  0x17   :  { %54 = vrot.lane.b32.xlu1 %v53_v8, %s156_s14  ;;  %v89_v15 = vld [vmem:[#allocation2] sm:$0x1]  }
  0x18   :  { %v95_v16 = vld [vmem:[#allocation2] sm:$0x1]  }
  0x1a   :  { %60 = vrot.lane.b32.xlu0 %v59_v9, %s157_s15 }
  0x1b   :  { %66 = vrot.lane.b32.xlu1 %v65_v10, %s158_s16 }
  0x1e   :  { %72 = vrot.lane.b32.xlu0 %v71_v12, %s159_s17 }
  0x1f   :  { %78 = vrot.lane.b32.xlu1 %v77_v13, %s160_s18 }
  0x22   :  { %84 = vrot.lane.b32.xlu0 %v83_v14, %s161_s19 }
  0x23   :  { %90 = vrot.lane.b32.xlu1 %v89_v15, %s162_s20 }
  0x26   :  { %96 = vrot.lane.b32.xlu0 %v95_v16, %s163_s21 }
  0x7c   :  { %v13_v17 = vpop.permute.xlu0 %12  }
  0x7d   :  { %v25_v18 = vpop.permute.xlu1 %24   ;;  %16 = vst.msk [vmem:[#allocation0 + $0x1] sm:$0x1] %vm9_vm0, %v13_v17  }
  0x7e   :  { %28 = vst.msk [vmem:[#allocation0 + $0x3] sm:$0x1] %vm9_vm0, %v25_v18  }
  0x80   :  { %v19_v19 = vpop.permute.xlu0 %18  }
  0x81   :  { %v31_v20 = vpop.permute.xlu1 %30   ;;  %22 = vst.msk [vmem:[#allocation0 + $0x2] sm:$0x1] %vm9_vm0, %v19_v19  }
  0x82   :  { %34 = vst.msk [vmem:[#allocation0 + $0x4] sm:$0x1] %vm9_vm0, %v31_v20  }
  0x84   :  { %v37_v21 = vpop.permute.xlu0 %36  }
  0x85   :  { %v43_v22 = vpop.permute.xlu1 %42   ;;  %40 = vst.msk [vmem:[#allocation0 + $0x5] sm:$0x1] %vm9_vm0, %v37_v21  }
  0x86   :  { %46 = vst.msk [vmem:[#allocation0 + $0x6] sm:$0x1] %vm9_vm0, %v43_v22  }
  0x88   :  { %v49_v23 = vpop.permute.xlu0 %48  }
  0x89   :  { %v55_v24 = vpop.permute.xlu1 %54   ;;  %52 = vst.msk [vmem:[#allocation0 + $0x7] sm:$0x1] %vm9_vm0, %v49_v23  }
  0x8a   :  { %58 = vst.msk [vmem:[#allocation0 + $0x8] sm:$0x1] %vm9_vm0, %v55_v24  }
  0x8c   :  { %v61_v25 = vpop.permute.xlu0 %60  }
  0x8d   :  { %v67_v26 = vpop.permute.xlu1 %66   ;;  %64 = vst.msk [vmem:[#allocation0 + $0x9] sm:$0x1] %vm9_vm0, %v61_v25  }
  0x8e   :  { %70 = vst.msk [vmem:[#allocation0 + $0xa] sm:$0x1] %vm9_vm0, %v67_v26  }
  0x90   :  { %v73_v27 = vpop.permute.xlu0 %72  }
  0x91   :  { %v79_v28 = vpop.permute.xlu1 %78   ;;  %76 = vst.msk [vmem:[#allocation0 + $0xb] sm:$0x1] %vm9_vm0, %v73_v27  }
  0x92   :  { %82 = vst.msk [vmem:[#allocation0 + $0xc] sm:$0x1] %vm9_vm0, %v79_v28  }
  0x94   :  { %v85_v29 = vpop.permute.xlu0 %84  }
  0x95   :  { %v91_v30 = vpop.permute.xlu1 %90   ;;  %88 = vst.msk [vmem:[#allocation0 + $0xd] sm:$0x1] %vm9_vm0, %v85_v29  }
  0x96   :  { %94 = vst.msk [vmem:[#allocation0 + $0xe] sm:$0x1] %vm9_vm0, %v91_v30  }
  0x98   :  { %v97_v31 = vpop.permute.xlu0 %96  }
  0x99   :  { %100 = vst.msk [vmem:[#allocation0 + $0xf] sm:$0x1] %vm9_vm0, %v97_v31  }
  0x9a   :  { %138 = shalt.err (!%p135_p4)
}
  0x9b   :  { %108 = dma.vmem_to_hbm [thread:$0]  %s106_s23, 256, %s198_s1, [#allocation1]  }
  0x9c   :  { %147 = dma.done.wait [#allocation1], 256  }
  0x9d   :  { %148 = vsyncadd [#allocation1], 4294967040 }
  0x9e   :  { %110 = vsyncpa [#allocation1], 1 }

// kernel: forward.16
= control target key start
LH: loop header
LB: loop body
LE: loop exit
PB: predicated region body
PF: predicated region fallthrough
CT: control target
= control target key end

     0   :  { %vm41_vm0 = vcmask 1040384   ;;  %v190_v0 = vmov 0.0   ;;  %vm191_vm1 = vmmov 0   ;;  %v192_v5 = vmov 0   ;;  %s237_s2 = inlined_call_operand.vmem [shape: bf16[1,18,128], index: 2, kind: input, shape index: {}]   ;;  %s238_s1 = inlined_call_operand.vmem [shape: f32[1,2,1], index: 1, kind: input, shape index: {}]   ;;  %s239_s0 = inlined_call_operand.vmem [shape: bf16[1,2,18], index: 0, kind: input, shape index: {}]   ;;  %s240_s3 = inlined_call_operand.vmem [shape: f32[1,1,128], index: 3, kind: input, shape index: {}]   ;;  %s241_s4 = inlined_call_operand.vmem [shape: f32[1,1,128], index: 4, kind: output, shape index: {}]  }
   0x1   :  { %163 = vmatprep.subr.bf16.mxu0 %v190_v0  ;;  %v176_v1 = vld [vmem:[%s237_s2 + $0x8] ss:$0 sps:$4 sm:$0x11]   ;;  %167 = vmatprep.mubr.msk.bf16.mxu0 %vm191_vm1, %v190_v0  ;;  %v22_v3 = vld [vmem:[%s238_s1] sm:$0x3]  ;;  %vm37_vm2 = vcmask 146432  }
   0x2   :  { %v43_v2 = vsel %vm41_vm0, %v176_v1, 0  ;;  %v177_v4 = vld [vmem:[%s237_s2] sm:$0xff]   ;;  %175 = vset.pattern.permute.xlu0 %v192_v5  ;;  %v193_v62 = vmov -1.0  }
   0x3   :  { %164 = vmatpush3.bf16.msra.mxu0 %v43_v2  ;;  %25 = vperm.xlu0 %175, %v22_v3   ;;  %v18_v6 = vld [vmem:[%s239_s0] sm:$0x1] }
   0x4   :  { %165 = vmatprep.subr.bf16.mxu0 %v190_v0  ;;  %v88_v16 = vld [vmem:[%s240_s3] sm:$0x1] }
   0x5   :  { %v89_v17 = vand.u32 2147483647, %v88_v16 }
   0x7   :  { %166 = vmatpush3.bf16.msra.mxu0 %v177_v4  ;;  %v92_v18 = vsub.f32 0.5, %v89_v17  ;;  %v119_v19 = vsub.f32 -0.5, %v89_v17 }
   0xa   :  { %168 = vmatmul.mubr.msk.bf16.vlgmr.msra.gmra.mxu0 %vm37_vm2, %v18_v6 }
  0x7e   :  { %v26_v7 = vpop.permute.xlu0 %25 }
  0xca   :  { %v79_v8 = vpop.f32.mrf.mxu0 }
  0xcb   :  { %v80_v9 = vadd.f32 %v79_v8, %v26_v7 }
  0xcc   :  { %v169_v10 = vpop.f32.mrf.mxu0 }
  0xcd   :  { %vm85_vm3 = vcmp.ge.f32.partialorder %v80_v9, 0.0  ;;  %v86_v11 = vmul.f32 0.01, %v80_v9 }
  0xce   :  { %v82_v12 = vpop.f32.mrf.mxu0 }
  0xcf   :  { %v87_v13 = vsel %vm85_vm3, %v80_v9, %v86_v11 }
  0xd0   :  { %v90_v14 = vmax.f32 %v87_v13, 0.11  ;;  %v170_v15 = vpop.f32.mrf.mxu0 }
  0xd2   :  { %178 = vrcp.f32 %v90_v14 }
  0xdf   :  { %v179_v20 = vpop.eup %178 }
  0xe0   :  { %v93_v21 = vmul.f32 %v179_v20, %v92_v18  ;;  %v120_v22 = vmul.f32 %v179_v20, %v119_v19 }
  0xe2   :  { %v94_v23 = vmul.f32 0.70710677, %v93_v21  ;;  %v121_v24 = vmul.f32 0.70710677, %v120_v22 }
  0xe4   :  { %v97_v25 = vand.u32 2147483647, %v94_v23  ;;  %v124_v26 = vand.u32 2147483647, %v121_v24  ;;  %vm95_vm4 = vcmp.ge.f32.partialorder %v94_v23, 0.0  ;;  %vm122_vm5 = vcmp.ge.f32.partialorder %v121_v24, 0.0 }
  0xe5   :  { %v96_v63 = vsel %vm95_vm4, 1.0, %v193_v62  ;;  %v123_v2 = vsel %vm122_vm5, 1.0, %v193_v62 }
  0xe6   :  { %v98_v27 = vmul.f32 0.3275911, %v97_v25  ;;  %v125_v28 = vmul.f32 0.3275911, %v124_v26  ;;  %v110_v31 = vsub.f32 0.0, %v97_v25  ;;  %v137_v32 = vsub.f32 0.0, %v124_v26 }
  0xe8   :  { %v99_v29 = vadd.f32 1.0, %v98_v27  ;;  %v126_v30 = vadd.f32 1.0, %v125_v28  ;;  %v111_v33 = vmul.f32 %v110_v31, %v97_v25  ;;  %v138_v34 = vmul.f32 %v137_v32, %v124_v26 }
  0xea   :  { %180 = vrcp.f32 %v99_v29  ;;  %v112_v38 = vmul.f32 1.442695, %v111_v33  ;;  %v139_v40 = vmul.f32 1.442695, %v138_v34 }
  0xeb   :  { %182 = vrcp.f32 %v126_v30 }
  0xec   :  { %184 = vpow2.f32 %v112_v38 }
  0xed   :  { %186 = vpow2.f32 %v139_v40 }
  0xf7   :  { %v181_v35 = vpop.eup %180 }
  0xf8   :  { %v183_v36 = vpop.eup %182  ;;  %v101_v37 = vmul.f32 1.0614054, %v181_v35 }
  0xf9   :  { %v128_v39 = vmul.f32 1.0614054, %v183_v36  ;;  %v185_v56 = vpop.eup %184 }
  0xfa   :  { %v102_v41 = vadd.f32 -1.4531521, %v101_v37  ;;  %v187_v58 = vpop.eup %186 }
  0xfb   :  { %v129_v42 = vadd.f32 -1.4531521, %v128_v39 }
  0xfc   :  { %v103_v43 = vmul.f32 %v181_v35, %v102_v41 }
  0xfd   :  { %v130_v44 = vmul.f32 %v183_v36, %v129_v42 }
  0xfe   :  { %v104_v45 = vadd.f32 1.4214138, %v103_v43 }
  0xff   :  { %v131_v46 = vadd.f32 1.4214138, %v130_v44 }
 0x100   :  { %v105_v47 = vmul.f32 %v181_v35, %v104_v45 }
 0x101   :  { %v132_v48 = vmul.f32 %v183_v36, %v131_v46 }
 0x102   :  { %v106_v49 = vadd.f32 -0.28449672, %v105_v47 }
 0x103   :  { %v133_v50 = vadd.f32 -0.28449672, %v132_v48 }
 0x104   :  { %v107_v51 = vmul.f32 %v181_v35, %v106_v49 }
 0x105   :  { %v134_v52 = vmul.f32 %v183_v36, %v133_v50 }
 0x106   :  { %v108_v53 = vadd.f32 0.2548296, %v107_v51 }
 0x107   :  { %v135_v54 = vadd.f32 0.2548296, %v134_v52 }
 0x108   :  { %v109_v55 = vmul.f32 %v181_v35, %v108_v53 }
 0x109   :  { %v136_v57 = vmul.f32 %v183_v36, %v135_v54 }
 0x10a   :  { %v114_v59 = vmul.f32 %v185_v56, %v109_v55 }
 0x10b   :  { %v141_v60 = vmul.f32 %v187_v58, %v136_v57 }
 0x10c   :  { %v115_v61 = vsub.f32 1.0, %v114_v59 }
 0x10d   :  { %v142_v0 = vsub.f32 1.0, %v141_v60 }
 0x10e   :  { %v116_v1 = vmul.f32 %v115_v61, %v96_v63 }
 0x10f   :  { %v143_v3 = vmul.f32 %v142_v0, %v123_v2 }
 0x110   :  { %v117_v4 = vadd.f32 1.0, %v116_v1 }
 0x111   :  { %v144_v5 = vadd.f32 1.0, %v143_v3 }
 0x112   :  { %v118_v6 = vmul.f32 0.5, %v117_v4 }
 0x113   :  { %v145_v7 = vmul.f32 0.5, %v144_v5 }
 0x115   :  { %v146_v8 = vsub.f32 %v118_v6, %v145_v7 }
 0x117   :  { %v147_v9 = vmax.f32 %v146_v8, 1e-09 }
 0x119   :  { %188 = vlog2.f32 %v147_v9 }
 0x126   :  { %v189_v10 = vpop.eup %188 }
 0x127   :  { %v149_v11 = vmul.f32 0.6931472, %v189_v10 }
 0x129   :  { %v150_v12 = vsub.f32 0.0, %v149_v11 }
 0x12b   :  { %v151_v13 = vmul.f32 1.442695, %v150_v12 }
 0x12d   :  { %152 = vst [vmem:[%s241_s4] sm:$0x1] %v151_v13 }

// kernel: forward.15
= control target key start
LH: loop header
LB: loop body
LE: loop exit
PB: predicated region body
PF: predicated region fallthrough
CT: control target
= control target key end

     0   :  { %vm38_vm0 = vcmask 1040384   ;;  %v111_v0 = vmov 0.0   ;;  %vm112_vm1 = vmmov 0   ;;  %v113_v5 = vmov 0   ;;  %s149_s2 = inlined_call_operand.vmem [shape: bf16[1,18,128], index: 2, kind: input, shape index: {}]   ;;  %s150_s1 = inlined_call_operand.vmem [shape: f32[1,2,1], index: 1, kind: input, shape index: {}]   ;;  %s151_s0 = inlined_call_operand.vmem [shape: bf16[1,2,18], index: 0, kind: input, shape index: {}]   ;;  %s152_s3 = inlined_call_operand.vmem [shape: bf16[1,2,128], index: 3, kind: output, shape index: {}]  }
   0x1   :  { %97 = vmatprep.subr.bf16.mxu0 %v111_v0  ;;  %v109_v1 = vld [vmem:[%s149_s2 + $0x8] ss:$0 sps:$4 sm:$0x11]   ;;  %101 = vmatprep.mubr.msk.bf16.mxu0 %vm112_vm1, %v111_v0  ;;  %v19_v3 = vld [vmem:[%s150_s1] sm:$0x3]  ;;  %vm34_vm2 = vcmask 146432  }
   0x2   :  { %v40_v2 = vsel %vm38_vm0, %v109_v1, 0  ;;  %v110_v4 = vld [vmem:[%s149_s2] sm:$0xff]   ;;  %108 = vset.pattern.permute.xlu0 %v113_v5 }
   0x3   :  { %98 = vmatpush3.bf16.msra.mxu0 %v40_v2  ;;  %22 = vperm.xlu0 %108, %v19_v3   ;;  %v15_v6 = vld [vmem:[%s151_s0] sm:$0x1] }
   0x4   :  { %99 = vmatprep.subr.bf16.mxu0 %v111_v0 }
   0x7   :  { %100 = vmatpush3.bf16.msra.mxu0 %v110_v4 }
   0xa   :  { %102 = vmatmul.mubr.msk.bf16.vlgmr.msra.gmra.mxu0 %vm34_vm2, %v15_v6 }
  0x7e   :  { %v23_v7 = vpop.permute.xlu0 %22 }
  0xca   :  { %v76_v8 = vpop.f32.mrf.mxu0 }
  0xcb   :  { %v77_v9 = vadd.f32 %v76_v8, %v23_v7 }
  0xcc   :  { %v103_v10 = vpop.f32.mrf.mxu0 }
  0xcd   :  { %vm82_vm3 = vcmp.ge.f32.partialorder %v77_v9, 0.0  ;;  %v83_v11 = vmul.f32 0.01, %v77_v9 }
  0xce   :  { %v79_v12 = vpop.f32.mrf.mxu0 }
  0xcf   :  { %v84_v13 = vsel %vm82_vm3, %v77_v9, %v83_v11 }
  0xd0   :  { %v85_v14 = vpack.c.bf16 %v84_v13, %v84_v13  ;;  %v104_v15 = vpop.f32.mrf.mxu0 }
  0xd2   :  { %86 = vst [vmem:[%s152_s3] sm:$0x1] %v85_v14 }

</bundles_post_ra>
